<compile_context>
chip_gen: v6e
topology: v6e:2x2x1
jax: 0.10.0
libtpu: 0.0.40
codegen_flags: <defaults>
</compile_context>

<pallas_src>
import functools
import math

import jax
import jax.numpy as jnp
from jax import lax
from jax.experimental import pallas as pl
from jax.experimental.pallas import tpu as pltpu

# ---------------- small, module-consistent config ----------------
D_MODEL = 32          # (512 in the module; scaled down, semantics identical)
NHEAD = 4             # (8)
DH = D_MODEL // NHEAD
DIM_FF = 64           # (2048)
FF_PAD = 128          # zero-padded FFN hidden width (lane-dense)
NUM_ENC = 3
NUM_DEC = 3
SRC_VOCAB_SIZE = 19   # synthetic build_vocab() result
TGT_VOCAB_SIZE = 23
LOGIT_PAD = 128       # lane-dense padded fc_out width (sliced back to vocab)
MAX_LEN = 64
LN_EPS = 1e-5
ATTN_SCALE = 1.0 / math.sqrt(DH)

# MXU operand dtype (accumulation is always f32 via preferred_element_type).
# Flip to jnp.float32 for bit-closer parity with the f32 PyTorch reference.
MXU_DTYPE = jnp.bfloat16


# ======================= in-kernel helpers =======================

def _mm(a, b):
    """Weight matmul: bf16 operands, f32 accumulation."""
    return jnp.dot(a.astype(MXU_DTYPE), b.astype(MXU_DTYPE),
                   preferred_element_type=jnp.float32)


def _layernorm(x, g, b):
    mu = jnp.mean(x, axis=-1, keepdims=True)
    var = jnp.mean((x - mu) ** 2, axis=-1, keepdims=True)
    return (x - mu) * lax.rsqrt(var + LN_EPS) * g + b


def _softmax_rows(s):
    s = s - jnp.max(s, axis=-1, keepdims=True)
    p = jnp.exp(s)
    return p / jnp.sum(p, axis=-1, keepdims=True)


def _mha(q, k, v):
    """Multi-head attention for ONE batch, value-based.

    q: (Sq, D), k/v: (Sk, D) f32 values. Heads are statically unrolled; scores
    contract the last axes via dot_general (no materialized transpose); head
    outputs are concatenated once along the lane axis. No scratch stores.
    """
    outs = []
    for h in range(NHEAD):
        c = h * DH
        qh = q[:, c:c + DH]
        kh = k[:, c:c + DH]
        vh = v[:, c:c + DH]
        s = lax.dot_general(qh, kh, (((1,), (1,)), ((), ())),
                            preferred_element_type=jnp.float32) * ATTN_SCALE
        p = _softmax_rows(s)
        outs.append(jnp.dot(p, vh, preferred_element_type=jnp.float32))
    return jnp.concatenate(outs, axis=-1)


# ======================= fused stack kernels =======================
# grid = (B, NUM_LAYERS); axis 0 "parallel" (batch), axis 1 "arbitrary" (layer).

def _encoder_stack_kernel(x_ref,
                          q_w, q_b, k_w, k_b, v_w, v_b, out_w, out_b,
                          ln1_g, ln1_b, ff_w1, ff_b1, ff_w2, ff_b2,
                          ln2_g, ln2_b,
                          mem_ref):
    layer = pl.program_id(1)

    # Output block is resident across the layer axis -> use it as the
    # activation accumulator; seed it with the embeddings on layer 0.
    @pl.when(layer == 0)
    def _():
        mem_ref[...] = x_ref[...]

    x = mem_ref[...]                                         # (S, D) f32

    # --- multi-head self-attention (separate lane-aligned Q/K/V projections) ---
    q = _mm(x, q_w[0]) + q_b[0]
    k = _mm(x, k_w[0]) + k_b[0]
    v = _mm(x, v_w[0]) + v_b[0]
    a = _mha(q, k, v)
    a = _mm(a, out_w[0]) + out_b[0]
    x1 = _layernorm(x + a, ln1_g[0], ln1_b[0])

    # --- feed-forward (hidden zero-padded to 128 lanes), post-norm residual ---
    h = jnp.maximum(_mm(x1, ff_w1[0]) + ff_b1[0], 0.0)
    f = _mm(h, ff_w2[0]) + ff_b2[0]
    mem_ref[...] = _layernorm(x1 + f, ln2_g[0], ln2_b[0])


def _decoder_stack_kernel(tgt_ref, mem_ref, fc_w_ref, fc_b_ref,
                          sa_q_w, sa_q_b, sa_k_w, sa_k_b, sa_v_w, sa_v_b,
                          sa_out_w, sa_out_b, ln1_g, ln1_b,
                          ca_q_w, ca_q_b, ca_k_w, ca_k_b, ca_v_w, ca_v_b,
                          ca_out_w, ca_out_b, ln2_g, ln2_b,
                          ff_w1, ff_b1, ff_w2, ff_b2, ln3_g, ln3_b,
                          logits_ref, x_acc):
    layer = pl.program_id(1)

    @pl.when(layer == 0)
    def _():
        x_acc[...] = tgt_ref[...]

    x = x_acc[...]                                           # (T, D) f32
    mem = mem_ref[...]                                       # (S, D) f32

    # --- self-attention (tgt_mask=None per the module's forward defaults) ---
    q = _mm(x, sa_q_w[0]) + sa_q_b[0]
    k = _mm(x, sa_k_w[0]) + sa_k_b[0]
    v = _mm(x, sa_v_w[0]) + sa_v_b[0]
    a = _mha(q, k, v)
    a = _mm(a, sa_out_w[0]) + sa_out_b[0]
    x1 = _layernorm(x + a, ln1_g[0], ln1_b[0])

    # --- cross-attention over encoder memory ---
    q = _mm(x1, ca_q_w[0]) + ca_q_b[0]
    k = _mm(mem, ca_k_w[0]) + ca_k_b[0]
    v = _mm(mem, ca_v_w[0]) + ca_v_b[0]
    c = _mha(q, k, v)
    c = _mm(c, ca_out_w[0]) + ca_out_b[0]
    x2 = _layernorm(x1 + c, ln2_g[0], ln2_b[0])

    # --- feed-forward ---
    h = jnp.maximum(_mm(x2, ff_w1[0]) + ff_b1[0], 0.0)
    f = _mm(h, ff_w2[0]) + ff_b2[0]
    x3 = _layernorm(x2 + f, ln3_g[0], ln3_b[0])
    x_acc[...] = x3

    # --- fc_out fused into the last layer step (lane-dense 128-wide output) ---
    @pl.when(layer == pl.num_programs(1) - 1)
    def _():
        logits_ref[...] = _mm(x3, fc_w_ref[...]) + fc_b_ref[...]


# ======================= stack wrappers =======================

ENC_KEYS = ("q_w", "q_b", "k_w", "k_b", "v_w", "v_b", "out_w", "out_b",
            "ln1_g", "ln1_b", "ff_w1", "ff_b1", "ff_w2", "ff_b2",
            "ln2_g", "ln2_b")

DEC_KEYS = ("sa_q_w", "sa_q_b", "sa_k_w", "sa_k_b", "sa_v_w", "sa_v_b",
            "sa_out_w", "sa_out_b", "ln1_g", "ln1_b",
            "ca_q_w", "ca_q_b", "ca_k_w", "ca_k_b", "ca_v_w", "ca_v_b",
            "ca_out_w", "ca_out_b", "ln2_g", "ln2_b",
            "ff_w1", "ff_b1", "ff_w2", "ff_b2", "ln3_g", "ln3_b")


def encoder_stack(src_emb, enc, B, S):
    ws = [enc[k] for k in ENC_KEYS]                  # each (NUM_ENC, ...)
    act_map = lambda b, l: (b, 0)
    w_map = lambda b, l: (l, 0, 0)
    return pl.pallas_call(
        _encoder_stack_kernel,
        out_shape=jax.ShapeDtypeStruct((B * S, D_MODEL), jnp.float32),
        grid_spec=pltpu.PrefetchScalarGridSpec(
            num_scalar_prefetch=0,
            grid=(B, NUM_ENC),
            in_specs=[pl.BlockSpec((S, D_MODEL), act_map)]
                     + [pl.BlockSpec((1,) + w.shape[1:], w_map) for w in ws],
            out_specs=pl.BlockSpec((S, D_MODEL), act_map),
        ),
        compiler_params=pltpu.CompilerParams(
            dimension_semantics=("parallel", "arbitrary")),
    )(src_emb, *ws)


def decoder_stack(tgt_emb, memory, fc_w, fc_b, dec, B, T, S):
    ws = [dec[k] for k in DEC_KEYS]                  # each (NUM_DEC, ...)
    tgt_map = lambda b, l: (b, 0)
    mem_map = lambda b, l: (b, 0)
    fixed_map = lambda b, l: (0, 0)
    w_map = lambda b, l: (l, 0, 0)
    return pl.pallas_call(
        _decoder_stack_kernel,
        out_shape=jax.ShapeDtypeStruct((B * T, LOGIT_PAD), jnp.float32),
        grid_spec=pltpu.PrefetchScalarGridSpec(
            num_scalar_prefetch=0,
            grid=(B, NUM_DEC),
            in_specs=[pl.BlockSpec((T, D_MODEL), tgt_map),
                      pl.BlockSpec((S, D_MODEL), mem_map),
                      pl.BlockSpec((D_MODEL, LOGIT_PAD), fixed_map),
                      pl.BlockSpec((1, LOGIT_PAD), fixed_map)]
                     + [pl.BlockSpec((1,) + w.shape[1:], w_map) for w in ws],
            out_specs=pl.BlockSpec((T, LOGIT_PAD), tgt_map),
            scratch_shapes=[pltpu.VMEM((T, D_MODEL), jnp.float32)],
        ),
        compiler_params=pltpu.CompilerParams(
            dimension_semantics=("parallel", "arbitrary")),
    )(tgt_emb, memory, fc_w, fc_b, *ws)


# ======================= model glue (plain JAX) =======================

def positional_encoding_table(max_len, d_model):
    position = jnp.arange(max_len, dtype=jnp.float32)[:, None]
    div_term = jnp.exp(
        jnp.arange(0, d_model, 2, dtype=jnp.float32) * (-math.log(10000.0) / d_model))
    pe = jnp.zeros((max_len, d_model), dtype=jnp.float32)
    pe = pe.at[:, 0::2].set(jnp.sin(position * div_term))
    pe = pe.at[:, 1::2].set(jnp.cos(position * div_term))
    return pe


def transformer_forward(params, src, tgt):
    B, S = src.shape
    _, T = tgt.shape
    pe = params["pe"]
    scale = math.sqrt(D_MODEL)

    # TODO(synk): embedding gather + positional-encoding add kept in plain JAX
    # (tiny int gather; no clean Pallas win at this size).
    src_emb = (params["src_embedding"][src] * scale + pe[None, :S, :]).reshape(B * S, D_MODEL)
    tgt_emb = (params["tgt_embedding"][tgt] * scale + pe[None, :T, :]).reshape(B * T, D_MODEL)

    memory = encoder_stack(src_emb, params["encoder"], B, S)
    logits = decoder_stack(tgt_emb, memory, params["fc_out_w"], params["fc_out_b"],
                           params["decoder"], B, T, S)
    return logits[:, :TGT_VOCAB_SIZE].reshape(B, T, TGT_VOCAB_SIZE)


# ======================= deterministic parameter init =======================
# Weights stored pre-transposed as (in_features, out_features) in bf16; biases
# and LayerNorm params stay f32.  (Init distribution does not exactly match
# PyTorch's xavier/kaiming — irrelevant when real weights are loaded.)

def _uniform(key, shape, lo, hi):
    return jax.random.uniform(key, shape, dtype=jnp.float32, minval=lo, maxval=hi)


def _proj(key, bound):
    return _uniform(key, (D_MODEL, D_MODEL), -bound, bound).astype(MXU_DTYPE)


def _ln_pair():
    return jnp.ones((1, D_MODEL), jnp.float32), jnp.zeros((1, D_MODEL), jnp.float32)


def _ffn_params(keys):
    bd = 1.0 / math.sqrt(D_MODEL)
    bf = 1.0 / math.sqrt(DIM_FF)
    w1 = _uniform(keys[0], (D_MODEL, DIM_FF), -bd, bd)
    b1 = _uniform(keys[1], (1, DIM_FF), -bd, bd)
    w2 = _uniform(keys[2], (DIM_FF, D_MODEL), -bf, bf)
    b2 = _uniform(keys[3], (1, D_MODEL), -bf, bf)
    # Zero-pad hidden dim 64 -> 128: ReLU(0)=0 and matching ff_w2 rows are 0,
    # so this is numerically identical but lane-dense.
    return {
        "ff_w1": jnp.zeros((D_MODEL, FF_PAD), jnp.float32).at[:, :DIM_FF].set(w1).astype(MXU_DTYPE),
        "ff_b1": jnp.zeros((1, FF_PAD), jnp.float32).at[:, :DIM_FF].set(b1),
        "ff_w2": jnp.zeros((FF_PAD, D_MODEL), jnp.float32).at[:DIM_FF, :].set(w2).astype(MXU_DTYPE),
        "ff_b2": b2,
    }


def init_encoder_layer(key):
    ks = jax.random.split(key, 8)
    bd = 1.0 / math.sqrt(D_MODEL)
    zb = jnp.zeros((1, D_MODEL), jnp.float32)
    p = {
        "q_w": _proj(ks[0], bd), "q_b": zb,
        "k_w": _proj(ks[1], bd), "k_b": zb,
        "v_w": _proj(ks[2], bd), "v_b": zb,
        "out_w": _proj(ks[3], bd), "out_b": zb,
    }
    p["ln1_g"], p["ln1_b"] = _ln_pair()
    p["ln2_g"], p["ln2_b"] = _ln_pair()
    p.update(_ffn_params(ks[4:8]))
    return p


def init_decoder_layer(key):
    ks = jax.random.split(key, 12)
    bd = 1.0 / math.sqrt(D_MODEL)
    zb = jnp.zeros((1, D_MODEL), jnp.float32)
    p = {
        "sa_q_w": _proj(ks[0], bd), "sa_q_b": zb,
        "sa_k_w": _proj(ks[1], bd), "sa_k_b": zb,
        "sa_v_w": _proj(ks[2], bd), "sa_v_b": zb,
        "sa_out_w": _proj(ks[3], bd), "sa_out_b": zb,
        "ca_q_w": _proj(ks[4], bd), "ca_q_b": zb,
        "ca_k_w": _proj(ks[5], bd), "ca_k_b": zb,
        "ca_v_w": _proj(ks[6], bd), "ca_v_b": zb,
        "ca_out_w": _proj(ks[7], bd), "ca_out_b": zb,
    }
    p["ln1_g"], p["ln1_b"] = _ln_pair()
    p["ln2_g"], p["ln2_b"] = _ln_pair()
    p["ln3_g"], p["ln3_b"] = _ln_pair()
    p.update(_ffn_params(ks[8:12]))
    return p


def _stack_layers(layers):
    return {k: jnp.stack([lp[k] for lp in layers]) for k in layers[0]}


def init_params(key):
    keys = jax.random.split(key, 3 + NUM_ENC + NUM_DEC)
    initrange = 0.1
    fc_w = _uniform(keys[2], (D_MODEL, TGT_VOCAB_SIZE), -initrange, initrange)
    fc_w_pad = (jnp.zeros((D_MODEL, LOGIT_PAD), jnp.float32)
                .at[:, :TGT_VOCAB_SIZE].set(fc_w).astype(MXU_DTYPE))
    enc_layers = [init_encoder_layer(keys[3 + i]) for i in range(NUM_ENC)]
    dec_layers = [init_decoder_layer(keys[3 + NUM_ENC + i]) for i in range(NUM_DEC)]
    return {
        "src_embedding": _uniform(keys[0], (SRC_VOCAB_SIZE, D_MODEL), -initrange, initrange),
        "tgt_embedding": _uniform(keys[1], (TGT_VOCAB_SIZE, D_MODEL), -initrange, initrange),
        "fc_out_w": fc_w_pad,                               # (D, 128) lane-dense padded
        "fc_out_b": jnp.zeros((1, LOGIT_PAD), jnp.float32),
        "pe": positional_encoding_table(MAX_LEN, D_MODEL),
        "encoder": _stack_layers(enc_layers),               # dict of (NUM_ENC, ...) arrays
        "decoder": _stack_layers(dec_layers),               # dict of (NUM_DEC, ...) arrays
    }


# ======================= main =======================

if __name__ == "__main__":
    key = jax.random.PRNGKey(0)
    pkey, skey, tkey = jax.random.split(key, 3)

    params = init_params(pkey)

    B, S_SRC, S_TGT = 2, 8, 8
    src = jax.random.randint(skey, (B, S_SRC), 0, SRC_VOCAB_SIZE, dtype=jnp.int32)
    tgt = jax.random.randint(tkey, (B, S_TGT), 0, TGT_VOCAB_SIZE, dtype=jnp.int32)

    fwd = jax.jit(transformer_forward)
    logits = jax.block_until_ready(fwd(params, src, tgt))

    assert logits.shape == (B, S_TGT, TGT_VOCAB_SIZE)
    assert bool(jnp.all(jnp.isfinite(logits)))
    print("KERNEL_OK")
</pallas_src>

<mosaic_0001>
module attributes {stable_mosaic.version = 11 : i64} {
  func.func @_encoder_stack_kernel(%arg0: i32, %arg1: i32, %arg2: memref<8x32xf32, #tpu.memory_space<vmem>>, %arg3: memref<1x32x32xbf16, #tpu.memory_space<vmem>>, %arg4: memref<1x1x32xf32, #tpu.memory_space<vmem>>, %arg5: memref<1x32x32xbf16, #tpu.memory_space<vmem>>, %arg6: memref<1x1x32xf32, #tpu.memory_space<vmem>>, %arg7: memref<1x32x32xbf16, #tpu.memory_space<vmem>>, %arg8: memref<1x1x32xf32, #tpu.memory_space<vmem>>, %arg9: memref<1x32x32xbf16, #tpu.memory_space<vmem>>, %arg10: memref<1x1x32xf32, #tpu.memory_space<vmem>>, %arg11: memref<1x1x32xf32, #tpu.memory_space<vmem>>, %arg12: memref<1x1x32xf32, #tpu.memory_space<vmem>>, %arg13: memref<1x32x128xbf16, #tpu.memory_space<vmem>>, %arg14: memref<1x1x128xf32, #tpu.memory_space<vmem>>, %arg15: memref<1x128x32xbf16, #tpu.memory_space<vmem>>, %arg16: memref<1x1x32xf32, #tpu.memory_space<vmem>>, %arg17: memref<1x1x32xf32, #tpu.memory_space<vmem>>, %arg18: memref<1x1x32xf32, #tpu.memory_space<vmem>>, %arg19: memref<8x32xf32, #tpu.memory_space<vmem>>) attributes {dimension_semantics = [#tpu.dimension_semantics<parallel>, #tpu.dimension_semantics<arbitrary>], iteration_bounds = array<i64: 2, 3>, scalar_prefetch = 0 : i64, scratch_operands = 0 : i64, tpu.core_type = #tpu.core_type<tc>, window_params = [{transform_indices = @transform_0, window_bounds = array<i64: 8, 32>}, {transform_indices = @transform_1, window_bounds = array<i64: 1, 32, 32>}, {transform_indices = @transform_2, window_bounds = array<i64: 1, 1, 32>}, {transform_indices = @transform_3, window_bounds = array<i64: 1, 32, 32>}, {transform_indices = @transform_4, window_bounds = array<i64: 1, 1, 32>}, {transform_indices = @transform_5, window_bounds = array<i64: 1, 32, 32>}, {transform_indices = @transform_6, window_bounds = array<i64: 1, 1, 32>}, {transform_indices = @transform_7, window_bounds = array<i64: 1, 32, 32>}, {transform_indices = @transform_8, window_bounds = array<i64: 1, 1, 32>}, {transform_indices = @transform_9, window_bounds = array<i64: 1, 1, 32>}, {transform_indices = @transform_10, window_bounds = array<i64: 1, 1, 32>}, {transform_indices = @transform_11, window_bounds = array<i64: 1, 32, 128>}, {transform_indices = @transform_12, window_bounds = array<i64: 1, 1, 128>}, {transform_indices = @transform_13, window_bounds = array<i64: 1, 128, 32>}, {transform_indices = @transform_14, window_bounds = array<i64: 1, 1, 32>}, {transform_indices = @transform_15, window_bounds = array<i64: 1, 1, 32>}, {transform_indices = @transform_16, window_bounds = array<i64: 1, 1, 32>}, {transform_indices = @transform_17, window_bounds = array<i64: 8, 32>}]} {
    %c0_i32 = arith.constant 0 : i32
    %0 = arith.cmpi eq, %arg1, %c0_i32 : i32
    %1 = arith.extui %0 : i1 to i32
    %c0_i32_0 = arith.constant 0 : i32
    %2 = arith.cmpi ne, %1, %c0_i32_0 : i32
    scf.if %2 {
      %c0_88 = arith.constant 0 : index
      %c0_89 = arith.constant 0 : index
      %174 = vector.load %arg2[%c0_88, %c0_89] : memref<8x32xf32, #tpu.memory_space<vmem>>, vector<8x32xf32>
      %c0_90 = arith.constant 0 : index
      %c0_91 = arith.constant 0 : index
      %175 = vector.load %arg19[%c0_90, %c0_91] : memref<8x32xf32, #tpu.memory_space<vmem>>, vector<8x32xf32>
      tpu.vector_store %arg19[%c0_90, %c0_91], %174 {strides = array<i32>} : memref<8x32xf32, #tpu.memory_space<vmem>>, vector<8x32xf32>,
    } else {
    }
    %c0 = arith.constant 0 : index
    %c0_1 = arith.constant 0 : index
    %3 = vector.load %arg19[%c0, %c0_1] : memref<8x32xf32, #tpu.memory_space<vmem>>, vector<8x32xf32>
    %c0_2 = arith.constant 0 : index
    %c0_3 = arith.constant 0 : index
    %c0_4 = arith.constant 0 : index
    %4 = vector.load %arg3[%c0_2, %c0_3, %c0_4] : memref<1x32x32xbf16, #tpu.memory_space<vmem>>, vector<1x32x32xbf16>
    %5 = vector.shape_cast %4 : vector<1x32x32xbf16> to vector<32x32xbf16>
    %6 = arith.truncf %3 : vector<8x32xf32> to vector<8x32xbf16>
    %cst = arith.constant dense<0.000000e+00> : vector<8x32xf32>
    %7 = tpu.matmul %6, %5, %cst {dimension_numbers = #tpu.dot_dimension_numbers<[1], [0], [0], [1], [0, 0, 1, 1], [], []>} : vector<8x32xbf16>, vector<32x32xbf16>, vector<8x32xf32> -> vector<8x32xf32>
    %c0_5 = arith.constant 0 : index
    %c0_6 = arith.constant 0 : index
    %c0_7 = arith.constant 0 : index
    %8 = vector.load %arg4[%c0_5, %c0_6, %c0_7] : memref<1x1x32xf32, #tpu.memory_space<vmem>>, vector<1x1x32xf32>
    %9 = vector.shape_cast %8 : vector<1x1x32xf32> to vector<1x32xf32>
    %10 = vector.broadcast %9 : vector<1x32xf32> to vector<8x32xf32>
    %11 = arith.addf %7, %10 : vector<8x32xf32>
    %c0_8 = arith.constant 0 : index
    %c0_9 = arith.constant 0 : index
    %c0_10 = arith.constant 0 : index
    %12 = vector.load %arg5[%c0_8, %c0_9, %c0_10] : memref<1x32x32xbf16, #tpu.memory_space<vmem>>, vector<1x32x32xbf16>
    %13 = vector.shape_cast %12 : vector<1x32x32xbf16> to vector<32x32xbf16>
    %14 = arith.truncf %3 : vector<8x32xf32> to vector<8x32xbf16>
    %cst_11 = arith.constant dense<0.000000e+00> : vector<8x32xf32>
    %15 = tpu.matmul %14, %13, %cst_11 {dimension_numbers = #tpu.dot_dimension_numbers<[1], [0], [0], [1], [0, 0, 1, 1], [], []>} : vector<8x32xbf16>, vector<32x32xbf16>, vector<8x32xf32> -> vector<8x32xf32>
    %c0_12 = arith.constant 0 : index
    %c0_13 = arith.constant 0 : index
    %c0_14 = arith.constant 0 : index
    %16 = vector.load %arg6[%c0_12, %c0_13, %c0_14] : memref<1x1x32xf32, #tpu.memory_space<vmem>>, vector<1x1x32xf32>
    %17 = vector.shape_cast %16 : vector<1x1x32xf32> to vector<1x32xf32>
    %18 = vector.broadcast %17 : vector<1x32xf32> to vector<8x32xf32>
    %19 = arith.addf %15, %18 : vector<8x32xf32>
    %c0_15 = arith.constant 0 : index
    %c0_16 = arith.constant 0 : index
    %c0_17 = arith.constant 0 : index
    %20 = vector.load %arg7[%c0_15, %c0_16, %c0_17] : memref<1x32x32xbf16, #tpu.memory_space<vmem>>, vector<1x32x32xbf16>
    %21 = vector.shape_cast %20 : vector<1x32x32xbf16> to vector<32x32xbf16>
    %22 = arith.truncf %3 : vector<8x32xf32> to vector<8x32xbf16>
    %cst_18 = arith.constant dense<0.000000e+00> : vector<8x32xf32>
    %23 = tpu.matmul %22, %21, %cst_18 {dimension_numbers = #tpu.dot_dimension_numbers<[1], [0], [0], [1], [0, 0, 1, 1], [], []>} : vector<8x32xbf16>, vector<32x32xbf16>, vector<8x32xf32> -> vector<8x32xf32>
    %c0_19 = arith.constant 0 : index
    %c0_20 = arith.constant 0 : index
    %c0_21 = arith.constant 0 : index
    %24 = vector.load %arg8[%c0_19, %c0_20, %c0_21] : memref<1x1x32xf32, #tpu.memory_space<vmem>>, vector<1x1x32xf32>
    %25 = vector.shape_cast %24 : vector<1x1x32xf32> to vector<1x32xf32>
    %26 = vector.broadcast %25 : vector<1x32xf32> to vector<8x32xf32>
    %27 = arith.addf %23, %26 : vector<8x32xf32>
    %28 = vector.extract_strided_slice %11 {offsets = [0, 0], sizes = [8, 8], strides = [1, 1]} : vector<8x32xf32> to vector<8x8xf32>
    %29 = vector.extract_strided_slice %19 {offsets = [0, 0], sizes = [8, 8], strides = [1, 1]} : vector<8x32xf32> to vector<8x8xf32>
    %30 = vector.extract_strided_slice %27 {offsets = [0, 0], sizes = [8, 8], strides = [1, 1]} : vector<8x32xf32> to vector<8x8xf32>
    %cst_22 = arith.constant dense<0.000000e+00> : vector<8x8xf32>
    %31 = tpu.matmul %28, %29, %cst_22 {dimension_numbers = #tpu.dot_dimension_numbers<[1], [1], [0], [0], [0, 0, 1, 0], [], []>} : vector<8x8xf32>, vector<8x8xf32>, vector<8x8xf32> -> vector<8x8xf32>
    %cst_23 = arith.constant 0.353553385 : f32
    %32 = vector.broadcast %cst_23 : f32 to vector<8x8xf32>
    %33 = arith.mulf %31, %32 : vector<8x8xf32>
    %cst_24 = arith.constant dense<0xFF800000> : vector<8xf32>
    %34 = vector.multi_reduction <maximumf>, %33, %cst_24 [1] : vector<8x8xf32> to vector<8xf32>
    %35 = vector.shape_cast %34 : vector<8xf32> to vector<8x1xf32>
    %36 = vector.broadcast %35 : vector<8x1xf32> to vector<8x8xf32>
    %37 = arith.subf %33, %36 : vector<8x8xf32>
    %38 = math.exp %37 : vector<8x8xf32>
    %cst_25 = arith.constant dense<0.000000e+00> : vector<8xf32>
    %39 = vector.multi_reduction <add>, %38, %cst_25 [1] : vector<8x8xf32> to vector<8xf32>
    %40 = vector.shape_cast %39 : vector<8xf32> to vector<8x1xf32>
    %41 = vector.broadcast %40 : vector<8x1xf32> to vector<8x8xf32>
    %42 = arith.divf %38, %41 : vector<8x8xf32>
    %cst_26 = arith.constant dense<0.000000e+00> : vector<8x8xf32>
    %43 = tpu.matmul %42, %30, %cst_26 {dimension_numbers = #tpu.dot_dimension_numbers<[1], [0], [0], [1], [0, 0, 1, 1], [], []>} : vector<8x8xf32>, vector<8x8xf32>, vector<8x8xf32> -> vector<8x8xf32>
    %44 = vector.extract_strided_slice %11 {offsets = [0, 8], sizes = [8, 8], strides = [1, 1]} : vector<8x32xf32> to vector<8x8xf32>
    %45 = vector.extract_strided_slice %19 {offsets = [0, 8], sizes = [8, 8], strides = [1, 1]} : vector<8x32xf32> to vector<8x8xf32>
    %46 = vector.extract_strided_slice %27 {offsets = [0, 8], sizes = [8, 8], strides = [1, 1]} : vector<8x32xf32> to vector<8x8xf32>
    %cst_27 = arith.constant dense<0.000000e+00> : vector<8x8xf32>
    %47 = tpu.matmul %44, %45, %cst_27 {dimension_numbers = #tpu.dot_dimension_numbers<[1], [1], [0], [0], [0, 0, 1, 0], [], []>} : vector<8x8xf32>, vector<8x8xf32>, vector<8x8xf32> -> vector<8x8xf32>
    %cst_28 = arith.constant 0.353553385 : f32
    %48 = vector.broadcast %cst_28 : f32 to vector<8x8xf32>
    %49 = arith.mulf %47, %48 : vector<8x8xf32>
    %cst_29 = arith.constant dense<0xFF800000> : vector<8xf32>
    %50 = vector.multi_reduction <maximumf>, %49, %cst_29 [1] : vector<8x8xf32> to vector<8xf32>
    %51 = vector.shape_cast %50 : vector<8xf32> to vector<8x1xf32>
    %52 = vector.broadcast %51 : vector<8x1xf32> to vector<8x8xf32>
    %53 = arith.subf %49, %52 : vector<8x8xf32>
    %54 = math.exp %53 : vector<8x8xf32>
    %cst_30 = arith.constant dense<0.000000e+00> : vector<8xf32>
    %55 = vector.multi_reduction <add>, %54, %cst_30 [1] : vector<8x8xf32> to vector<8xf32>
    %56 = vector.shape_cast %55 : vector<8xf32> to vector<8x1xf32>
    %57 = vector.broadcast %56 : vector<8x1xf32> to vector<8x8xf32>
    %58 = arith.divf %54, %57 : vector<8x8xf32>
    %cst_31 = arith.constant dense<0.000000e+00> : vector<8x8xf32>
    %59 = tpu.matmul %58, %46, %cst_31 {dimension_numbers = #tpu.dot_dimension_numbers<[1], [0], [0], [1], [0, 0, 1, 1], [], []>} : vector<8x8xf32>, vector<8x8xf32>, vector<8x8xf32> -> vector<8x8xf32>
    %60 = vector.extract_strided_slice %11 {offsets = [0, 16], sizes = [8, 8], strides = [1, 1]} : vector<8x32xf32> to vector<8x8xf32>
    %61 = vector.extract_strided_slice %19 {offsets = [0, 16], sizes = [8, 8], strides = [1, 1]} : vector<8x32xf32> to vector<8x8xf32>
    %62 = vector.extract_strided_slice %27 {offsets = [0, 16], sizes = [8, 8], strides = [1, 1]} : vector<8x32xf32> to vector<8x8xf32>
    %cst_32 = arith.constant dense<0.000000e+00> : vector<8x8xf32>
    %63 = tpu.matmul %60, %61, %cst_32 {dimension_numbers = #tpu.dot_dimension_numbers<[1], [1], [0], [0], [0, 0, 1, 0], [], []>} : vector<8x8xf32>, vector<8x8xf32>, vector<8x8xf32> -> vector<8x8xf32>
    %cst_33 = arith.constant 0.353553385 : f32
    %64 = vector.broadcast %cst_33 : f32 to vector<8x8xf32>
    %65 = arith.mulf %63, %64 : vector<8x8xf32>
    %cst_34 = arith.constant dense<0xFF800000> : vector<8xf32>
    %66 = vector.multi_reduction <maximumf>, %65, %cst_34 [1] : vector<8x8xf32> to vector<8xf32>
    %67 = vector.shape_cast %66 : vector<8xf32> to vector<8x1xf32>
    %68 = vector.broadcast %67 : vector<8x1xf32> to vector<8x8xf32>
    %69 = arith.subf %65, %68 : vector<8x8xf32>
    %70 = math.exp %69 : vector<8x8xf32>
    %cst_35 = arith.constant dense<0.000000e+00> : vector<8xf32>
    %71 = vector.multi_reduction <add>, %70, %cst_35 [1] : vector<8x8xf32> to vector<8xf32>
    %72 = vector.shape_cast %71 : vector<8xf32> to vector<8x1xf32>
    %73 = vector.broadcast %72 : vector<8x1xf32> to vector<8x8xf32>
    %74 = arith.divf %70, %73 : vector<8x8xf32>
    %cst_36 = arith.constant dense<0.000000e+00> : vector<8x8xf32>
    %75 = tpu.matmul %74, %62, %cst_36 {dimension_numbers = #tpu.dot_dimension_numbers<[1], [0], [0], [1], [0, 0, 1, 1], [], []>} : vector<8x8xf32>, vector<8x8xf32>, vector<8x8xf32> -> vector<8x8xf32>
    %76 = vector.extract_strided_slice %11 {offsets = [0, 24], sizes = [8, 8], strides = [1, 1]} : vector<8x32xf32> to vector<8x8xf32>
    %77 = vector.extract_strided_slice %19 {offsets = [0, 24], sizes = [8, 8], strides = [1, 1]} : vector<8x32xf32> to vector<8x8xf32>
    %78 = vector.extract_strided_slice %27 {offsets = [0, 24], sizes = [8, 8], strides = [1, 1]} : vector<8x32xf32> to vector<8x8xf32>
    %cst_37 = arith.constant dense<0.000000e+00> : vector<8x8xf32>
    %79 = tpu.matmul %76, %77, %cst_37 {dimension_numbers = #tpu.dot_dimension_numbers<[1], [1], [0], [0], [0, 0, 1, 0], [], []>} : vector<8x8xf32>, vector<8x8xf32>, vector<8x8xf32> -> vector<8x8xf32>
    %cst_38 = arith.constant 0.353553385 : f32
    %80 = vector.broadcast %cst_38 : f32 to vector<8x8xf32>
    %81 = arith.mulf %79, %80 : vector<8x8xf32>
    %cst_39 = arith.constant dense<0xFF800000> : vector<8xf32>
    %82 = vector.multi_reduction <maximumf>, %81, %cst_39 [1] : vector<8x8xf32> to vector<8xf32>
    %83 = vector.shape_cast %82 : vector<8xf32> to vector<8x1xf32>
    %84 = vector.broadcast %83 : vector<8x1xf32> to vector<8x8xf32>
    %85 = arith.subf %81, %84 : vector<8x8xf32>
    %86 = math.exp %85 : vector<8x8xf32>
    %cst_40 = arith.constant dense<0.000000e+00> : vector<8xf32>
    %87 = vector.multi_reduction <add>, %86, %cst_40 [1] : vector<8x8xf32> to vector<8xf32>
    %88 = vector.shape_cast %87 : vector<8xf32> to vector<8x1xf32>
    %89 = vector.broadcast %88 : vector<8x1xf32> to vector<8x8xf32>
    %90 = arith.divf %86, %89 : vector<8x8xf32>
    %cst_41 = arith.constant dense<0.000000e+00> : vector<8x8xf32>
    %91 = tpu.matmul %90, %78, %cst_41 {dimension_numbers = #tpu.dot_dimension_numbers<[1], [0], [0], [1], [0, 0, 1, 1], [], []>} : vector<8x8xf32>, vector<8x8xf32>, vector<8x8xf32> -> vector<8x8xf32>
    %92 = tpu.concatenate %43, %59, %75, %91 in 1 : vector<8x8xf32>, vector<8x8xf32>, vector<8x8xf32>, vector<8x8xf32> -> vector<8x32xf32>
    %c0_42 = arith.constant 0 : index
    %c0_43 = arith.constant 0 : index
    %c0_44 = arith.constant 0 : index
    %93 = vector.load %arg9[%c0_42, %c0_43, %c0_44] : memref<1x32x32xbf16, #tpu.memory_space<vmem>>, vector<1x32x32xbf16>
    %94 = vector.shape_cast %93 : vector<1x32x32xbf16> to vector<32x32xbf16>
    %95 = arith.truncf %92 : vector<8x32xf32> to vector<8x32xbf16>
    %cst_45 = arith.constant dense<0.000000e+00> : vector<8x32xf32>
    %96 = tpu.matmul %95, %94, %cst_45 {dimension_numbers = #tpu.dot_dimension_numbers<[1], [0], [0], [1], [0, 0, 1, 1], [], []>} : vector<8x32xbf16>, vector<32x32xbf16>, vector<8x32xf32> -> vector<8x32xf32>
    %c0_46 = arith.constant 0 : index
    %c0_47 = arith.constant 0 : index
    %c0_48 = arith.constant 0 : index
    %97 = vector.load %arg10[%c0_46, %c0_47, %c0_48] : memref<1x1x32xf32, #tpu.memory_space<vmem>>, vector<1x1x32xf32>
    %98 = vector.shape_cast %97 : vector<1x1x32xf32> to vector<1x32xf32>
    %99 = vector.broadcast %98 : vector<1x32xf32> to vector<8x32xf32>
    %100 = arith.addf %96, %99 : vector<8x32xf32>
    %101 = arith.addf %3, %100 : vector<8x32xf32>
    %c0_49 = arith.constant 0 : index
    %c0_50 = arith.constant 0 : index
    %c0_51 = arith.constant 0 : index
    %102 = vector.load %arg11[%c0_49, %c0_50, %c0_51] : memref<1x1x32xf32, #tpu.memory_space<vmem>>, vector<1x1x32xf32>
    %103 = vector.shape_cast %102 : vector<1x1x32xf32> to vector<1x32xf32>
    %c0_52 = arith.constant 0 : index
    %c0_53 = arith.constant 0 : index
    %c0_54 = arith.constant 0 : index
    %104 = vector.load %arg12[%c0_52, %c0_53, %c0_54] : memref<1x1x32xf32, #tpu.memory_space<vmem>>, vector<1x1x32xf32>
    %105 = vector.shape_cast %104 : vector<1x1x32xf32> to vector<1x32xf32>
    %cst_55 = arith.constant dense<0.000000e+00> : vector<8xf32>
    %106 = vector.multi_reduction <add>, %101, %cst_55 [1] : vector<8x32xf32> to vector<8xf32>
    %107 = vector.shape_cast %106 : vector<8xf32> to vector<8x1xf32>
    %cst_56 = arith.constant 3.200000e+01 : f32
    %108 = vector.broadcast %cst_56 : f32 to vector<8x1xf32>
    %109 = arith.divf %107, %108 : vector<8x1xf32>
    %110 = vector.broadcast %109 : vector<8x1xf32> to vector<8x32xf32>
    %111 = arith.subf %101, %110 : vector<8x32xf32>
    %112 = arith.mulf %111, %111 : vector<8x32xf32>
    %cst_57 = arith.constant dense<0.000000e+00> : vector<8xf32>
    %113 = vector.multi_reduction <add>, %112, %cst_57 [1] : vector<8x32xf32> to vector<8xf32>
    %114 = vector.shape_cast %113 : vector<8xf32> to vector<8x1xf32>
    %cst_58 = arith.constant 3.200000e+01 : f32
    %115 = vector.broadcast %cst_58 : f32 to vector<8x1xf32>
    %116 = arith.divf %114, %115 : vector<8x1xf32>
    %117 = vector.broadcast %109 : vector<8x1xf32> to vector<8x32xf32>
    %118 = arith.subf %101, %117 : vector<8x32xf32>
    %cst_59 = arith.constant 9.99999974E-6 : f32
    %119 = vector.broadcast %cst_59 : f32 to vector<8x1xf32>
    %120 = arith.addf %116, %119 : vector<8x1xf32>
    %121 = math.rsqrt %120 : vector<8x1xf32>
    %122 = vector.broadcast %121 : vector<8x1xf32> to vector<8x32xf32>
    %123 = arith.mulf %118, %122 : vector<8x32xf32>
    %124 = vector.broadcast %103 : vector<1x32xf32> to vector<8x32xf32>
    %125 = arith.mulf %123, %124 : vector<8x32xf32>
    %126 = vector.broadcast %105 : vector<1x32xf32> to vector<8x32xf32>
    %127 = arith.addf %125, %126 : vector<8x32xf32>
    %c0_60 = arith.constant 0 : index
    %c0_61 = arith.constant 0 : index
    %c0_62 = arith.constant 0 : index
    %128 = vector.load %arg13[%c0_60, %c0_61, %c0_62] : memref<1x32x128xbf16, #tpu.memory_space<vmem>>, vector<1x32x128xbf16>
    %129 = vector.shape_cast %128 : vector<1x32x128xbf16> to vector<32x128xbf16>
    %130 = arith.truncf %127 : vector<8x32xf32> to vector<8x32xbf16>
    %cst_63 = arith.constant dense<0.000000e+00> : vector<8x128xf32>
    %131 = tpu.matmul %130, %129, %cst_63 {dimension_numbers = #tpu.dot_dimension_numbers<[1], [0], [0], [1], [0, 0, 1, 1], [], []>} : vector<8x32xbf16>, vector<32x128xbf16>, vector<8x128xf32> -> vector<8x128xf32>
    %c0_64 = arith.constant 0 : index
    %c0_65 = arith.constant 0 : index
    %c0_66 = arith.constant 0 : index
    %132 = vector.load %arg14[%c0_64, %c0_65, %c0_66] : memref<1x1x128xf32, #tpu.memory_space<vmem>>, vector<1x1x128xf32>
    %133 = vector.shape_cast %132 : vector<1x1x128xf32> to vector<1x128xf32>
    %134 = vector.broadcast %133 : vector<1x128xf32> to vector<8x128xf32>
    %135 = arith.addf %131, %134 : vector<8x128xf32>
    %cst_67 = arith.constant 0.000000e+00 : f32
    %136 = vector.broadcast %cst_67 : f32 to vector<8x128xf32>
    %137 = arith.maximumf %135, %136 : vector<8x128xf32>
    %c0_68 = arith.constant 0 : index
    %c0_69 = arith.constant 0 : index
    %c0_70 = arith.constant 0 : index
    %138 = vector.load %arg15[%c0_68, %c0_69, %c0_70] : memref<1x128x32xbf16, #tpu.memory_space<vmem>>, vector<1x128x32xbf16>
    %139 = vector.shape_cast %138 : vector<1x128x32xbf16> to vector<128x32xbf16>
    %140 = arith.truncf %137 : vector<8x128xf32> to vector<8x128xbf16>
    %cst_71 = arith.constant dense<0.000000e+00> : vector<8x32xf32>
    %141 = tpu.matmul %140, %139, %cst_71 {dimension_numbers = #tpu.dot_dimension_numbers<[1], [0], [0], [1], [0, 0, 1, 1], [], []>} : vector<8x128xbf16>, vector<128x32xbf16>, vector<8x32xf32> -> vector<8x32xf32>
    %c0_72 = arith.constant 0 : index
    %c0_73 = arith.constant 0 : index
    %c0_74 = arith.constant 0 : index
    %142 = vector.load %arg16[%c0_72, %c0_73, %c0_74] : memref<1x1x32xf32, #tpu.memory_space<vmem>>, vector<1x1x32xf32>
    %143 = vector.shape_cast %142 : vector<1x1x32xf32> to vector<1x32xf32>
    %144 = vector.broadcast %143 : vector<1x32xf32> to vector<8x32xf32>
    %145 = arith.addf %141, %144 : vector<8x32xf32>
    %146 = arith.addf %127, %145 : vector<8x32xf32>
    %c0_75 = arith.constant 0 : index
    %c0_76 = arith.constant 0 : index
    %c0_77 = arith.constant 0 : index
    %147 = vector.load %arg17[%c0_75, %c0_76, %c0_77] : memref<1x1x32xf32, #tpu.memory_space<vmem>>, vector<1x1x32xf32>
    %148 = vector.shape_cast %147 : vector<1x1x32xf32> to vector<1x32xf32>
    %c0_78 = arith.constant 0 : index
    %c0_79 = arith.constant 0 : index
    %c0_80 = arith.constant 0 : index
    %149 = vector.load %arg18[%c0_78, %c0_79, %c0_80] : memref<1x1x32xf32, #tpu.memory_space<vmem>>, vector<1x1x32xf32>
    %150 = vector.shape_cast %149 : vector<1x1x32xf32> to vector<1x32xf32>
    %cst_81 = arith.constant dense<0.000000e+00> : vector<8xf32>
    %151 = vector.multi_reduction <add>, %146, %cst_81 [1] : vector<8x32xf32> to vector<8xf32>
    %152 = vector.shape_cast %151 : vector<8xf32> to vector<8x1xf32>
    %cst_82 = arith.constant 3.200000e+01 : f32
    %153 = vector.broadcast %cst_82 : f32 to vector<8x1xf32>
    %154 = arith.divf %152, %153 : vector<8x1xf32>
    %155 = vector.broadcast %154 : vector<8x1xf32> to vector<8x32xf32>
    %156 = arith.subf %146, %155 : vector<8x32xf32>
    %157 = arith.mulf %156, %156 : vector<8x32xf32>
    %cst_83 = arith.constant dense<0.000000e+00> : vector<8xf32>
    %158 = vector.multi_reduction <add>, %157, %cst_83 [1] : vector<8x32xf32> to vector<8xf32>
    %159 = vector.shape_cast %158 : vector<8xf32> to vector<8x1xf32>
    %cst_84 = arith.constant 3.200000e+01 : f32
    %160 = vector.broadcast %cst_84 : f32 to vector<8x1xf32>
    %161 = arith.divf %159, %160 : vector<8x1xf32>
    %162 = vector.broadcast %154 : vector<8x1xf32> to vector<8x32xf32>
    %163 = arith.subf %146, %162 : vector<8x32xf32>
    %cst_85 = arith.constant 9.99999974E-6 : f32
    %164 = vector.broadcast %cst_85 : f32 to vector<8x1xf32>
    %165 = arith.addf %161, %164 : vector<8x1xf32>
    %166 = math.rsqrt %165 : vector<8x1xf32>
    %167 = vector.broadcast %166 : vector<8x1xf32> to vector<8x32xf32>
    %168 = arith.mulf %163, %167 : vector<8x32xf32>
    %169 = vector.broadcast %148 : vector<1x32xf32> to vector<8x32xf32>
    %170 = arith.mulf %168, %169 : vector<8x32xf32>
    %171 = vector.broadcast %150 : vector<1x32xf32> to vector<8x32xf32>
    %172 = arith.addf %170, %171 : vector<8x32xf32>
    %c0_86 = arith.constant 0 : index
    %c0_87 = arith.constant 0 : index
    %173 = vector.load %arg19[%c0_86, %c0_87] : memref<8x32xf32, #tpu.memory_space<vmem>>, vector<8x32xf32>
    tpu.vector_store %arg19[%c0_86, %c0_87], %172 {strides = array<i32>} : memref<8x32xf32, #tpu.memory_space<vmem>>, vector<8x32xf32>,
    return
  }
  func.func @transform_0(%arg0: i32, %arg1: i32) -> (i32, i32) {
    %c0_i32 = arith.constant 0 : i32
    %c0_i32_0 = arith.constant 0 : i32
    return %arg0, %c0_i32 : i32, i32
  }
  func.func @transform_1(%arg0: i32, %arg1: i32) -> (i32, i32, i32) {
    %c0_i32 = arith.constant 0 : i32
    %c0_i32_0 = arith.constant 0 : i32
    %c0_i32_1 = arith.constant 0 : i32
    return %arg1, %c0_i32, %c0_i32_0 : i32, i32, i32
  }
  func.func @transform_2(%arg0: i32, %arg1: i32) -> (i32, i32, i32) {
    %c0_i32 = arith.constant 0 : i32
    %c0_i32_0 = arith.constant 0 : i32
    %c0_i32_1 = arith.constant 0 : i32
    return %arg1, %c0_i32, %c0_i32_0 : i32, i32, i32
  }
  func.func @transform_3(%arg0: i32, %arg1: i32) -> (i32, i32, i32) {
    %c0_i32 = arith.constant 0 : i32
    %c0_i32_0 = arith.constant 0 : i32
    %c0_i32_1 = arith.constant 0 : i32
    return %arg1, %c0_i32, %c0_i32_0 : i32, i32, i32
  }
  func.func @transform_4(%arg0: i32, %arg1: i32) -> (i32, i32, i32) {
    %c0_i32 = arith.constant 0 : i32
    %c0_i32_0 = arith.constant 0 : i32
    %c0_i32_1 = arith.constant 0 : i32
    return %arg1, %c0_i32, %c0_i32_0 : i32, i32, i32
  }
  func.func @transform_5(%arg0: i32, %arg1: i32) -> (i32, i32, i32) {
    %c0_i32 = arith.constant 0 : i32
    %c0_i32_0 = arith.constant 0 : i32
    %c0_i32_1 = arith.constant 0 : i32
    return %arg1, %c0_i32, %c0_i32_0 : i32, i32, i32
  }
  func.func @transform_6(%arg0: i32, %arg1: i32) -> (i32, i32, i32) {
    %c0_i32 = arith.constant 0 : i32
    %c0_i32_0 = arith.constant 0 : i32
    %c0_i32_1 = arith.constant 0 : i32
    return %arg1, %c0_i32, %c0_i32_0 : i32, i32, i32
  }
  func.func @transform_7(%arg0: i32, %arg1: i32) -> (i32, i32, i32) {
    %c0_i32 = arith.constant 0 : i32
    %c0_i32_0 = arith.constant 0 : i32
    %c0_i32_1 = arith.constant 0 : i32
    return %arg1, %c0_i32, %c0_i32_0 : i32, i32, i32
  }
  func.func @transform_8(%arg0: i32, %arg1: i32) -> (i32, i32, i32) {
    %c0_i32 = arith.constant 0 : i32
    %c0_i32_0 = arith.constant 0 : i32
    %c0_i32_1 = arith.constant 0 : i32
    return %arg1, %c0_i32, %c0_i32_0 : i32, i32, i32
  }
  func.func @transform_9(%arg0: i32, %arg1: i32) -> (i32, i32, i32) {
    %c0_i32 = arith.constant 0 : i32
    %c0_i32_0 = arith.constant 0 : i32
    %c0_i32_1 = arith.constant 0 : i32
    return %arg1, %c0_i32, %c0_i32_0 : i32, i32, i32
  }
  func.func @transform_10(%arg0: i32, %arg1: i32) -> (i32, i32, i32) {
    %c0_i32 = arith.constant 0 : i32
    %c0_i32_0 = arith.constant 0 : i32
    %c0_i32_1 = arith.constant 0 : i32
    return %arg1, %c0_i32, %c0_i32_0 : i32, i32, i32
  }
  func.func @transform_11(%arg0: i32, %arg1: i32) -> (i32, i32, i32) {
    %c0_i32 = arith.constant 0 : i32
    %c0_i32_0 = arith.constant 0 : i32
    %c0_i32_1 = arith.constant 0 : i32
    return %arg1, %c0_i32, %c0_i32_0 : i32, i32, i32
  }
  func.func @transform_12(%arg0: i32, %arg1: i32) -> (i32, i32, i32) {
    %c0_i32 = arith.constant 0 : i32
    %c0_i32_0 = arith.constant 0 : i32
    %c0_i32_1 = arith.constant 0 : i32
    return %arg1, %c0_i32, %c0_i32_0 : i32, i32, i32
  }
  func.func @transform_13(%arg0: i32, %arg1: i32) -> (i32, i32, i32) {
    %c0_i32 = arith.constant 0 : i32
    %c0_i32_0 = arith.constant 0 : i32
    %c0_i32_1 = arith.constant 0 : i32
    return %arg1, %c0_i32, %c0_i32_0 : i32, i32, i32
  }
  func.func @transform_14(%arg0: i32, %arg1: i32) -> (i32, i32, i32) {
    %c0_i32 = arith.constant 0 : i32
    %c0_i32_0 = arith.constant 0 : i32
    %c0_i32_1 = arith.constant 0 : i32
    return %arg1, %c0_i32, %c0_i32_0 : i32, i32, i32
  }
  func.func @transform_15(%arg0: i32, %arg1: i32) -> (i32, i32, i32) {
    %c0_i32 = arith.constant 0 : i32
    %c0_i32_0 = arith.constant 0 : i32
    %c0_i32_1 = arith.constant 0 : i32
    return %arg1, %c0_i32, %c0_i32_0 : i32, i32, i32
  }
  func.func @transform_16(%arg0: i32, %arg1: i32) -> (i32, i32, i32) {
    %c0_i32 = arith.constant 0 : i32
    %c0_i32_0 = arith.constant 0 : i32
    %c0_i32_1 = arith.constant 0 : i32
    return %arg1, %c0_i32, %c0_i32_0 : i32, i32, i32
  }
  func.func @transform_17(%arg0: i32, %arg1: i32) -> (i32, i32) {
    %c0_i32 = arith.constant 0 : i32
    %c0_i32_0 = arith.constant 0 : i32
    return %arg0, %c0_i32 : i32, i32
  }
}

module attributes {stable_mosaic.version = 11 : i64} {
  func.func @_decoder_stack_kernel(%arg0: i32, %arg1: i32, %arg2: memref<8x32xf32, #tpu.memory_space<vmem>>, %arg3: memref<8x32xf32, #tpu.memory_space<vmem>>, %arg4: memref<32x128xbf16, #tpu.memory_space<vmem>>, %arg5: memref<1x128xf32, #tpu.memory_space<vmem>>, %arg6: memref<1x32x32xbf16, #tpu.memory_space<vmem>>, %arg7: memref<1x1x32xf32, #tpu.memory_space<vmem>>, %arg8: memref<1x32x32xbf16, #tpu.memory_space<vmem>>, %arg9: memref<1x1x32xf32, #tpu.memory_space<vmem>>, %arg10: memref<1x32x32xbf16, #tpu.memory_space<vmem>>, %arg11: memref<1x1x32xf32, #tpu.memory_space<vmem>>, %arg12: memref<1x32x32xbf16, #tpu.memory_space<vmem>>, %arg13: memref<1x1x32xf32, #tpu.memory_space<vmem>>, %arg14: memref<1x1x32xf32, #tpu.memory_space<vmem>>, %arg15: memref<1x1x32xf32, #tpu.memory_space<vmem>>, %arg16: memref<1x32x32xbf16, #tpu.memory_space<vmem>>, %arg17: memref<1x1x32xf32, #tpu.memory_space<vmem>>, %arg18: memref<1x32x32xbf16, #tpu.memory_space<vmem>>, %arg19: memref<1x1x32xf32, #tpu.memory_space<vmem>>, %arg20: memref<1x32x32xbf16, #tpu.memory_space<vmem>>, %arg21: memref<1x1x32xf32, #tpu.memory_space<vmem>>, %arg22: memref<1x32x32xbf16, #tpu.memory_space<vmem>>, %arg23: memref<1x1x32xf32, #tpu.memory_space<vmem>>, %arg24: memref<1x1x32xf32, #tpu.memory_space<vmem>>, %arg25: memref<1x1x32xf32, #tpu.memory_space<vmem>>, %arg26: memref<1x32x128xbf16, #tpu.memory_space<vmem>>, %arg27: memref<1x1x128xf32, #tpu.memory_space<vmem>>, %arg28: memref<1x128x32xbf16, #tpu.memory_space<vmem>>, %arg29: memref<1x1x32xf32, #tpu.memory_space<vmem>>, %arg30: memref<1x1x32xf32, #tpu.memory_space<vmem>>, %arg31: memref<1x1x32xf32, #tpu.memory_space<vmem>>, %arg32: memref<8x128xf32, #tpu.memory_space<vmem>>, %arg33: memref<8x32xf32, #tpu.memory_space<vmem>>) attributes {dimension_semantics = [#tpu.dimension_semantics<parallel>, #tpu.dimension_semantics<arbitrary>], iteration_bounds = array<i64: 2, 3>, scalar_prefetch = 0 : i64, scratch_operands = 1 : i64, tpu.core_type = #tpu.core_type<tc>, window_params = [{transform_indices = @transform_0, window_bounds = array<i64: 8, 32>}, {transform_indices = @transform_1, window_bounds = array<i64: 8, 32>}, {pipeline_mode = #tpu.pipeline_mode<synchronous>, transform_indices = @transform_2, window_bounds = array<i64: 32, 128>}, {pipeline_mode = #tpu.pipeline_mode<synchronous>, transform_indices = @transform_3, window_bounds = array<i64: 1, 128>}, {transform_indices = @transform_4, window_bounds = array<i64: 1, 32, 32>}, {transform_indices = @transform_5, window_bounds = array<i64: 1, 1, 32>}, {transform_indices = @transform_6, window_bounds = array<i64: 1, 32, 32>}, {transform_indices = @transform_7, window_bounds = array<i64: 1, 1, 32>}, {transform_indices = @transform_8, window_bounds = array<i64: 1, 32, 32>}, {transform_indices = @transform_9, window_bounds = array<i64: 1, 1, 32>}, {transform_indices = @transform_10, window_bounds = array<i64: 1, 32, 32>}, {transform_indices = @transform_11, window_bounds = array<i64: 1, 1, 32>}, {transform_indices = @transform_12, window_bounds = array<i64: 1, 1, 32>}, {transform_indices = @transform_13, window_bounds = array<i64: 1, 1, 32>}, {transform_indices = @transform_14, window_bounds = array<i64: 1, 32, 32>}, {transform_indices = @transform_15, window_bounds = array<i64: 1, 1, 32>}, {transform_indices = @transform_16, window_bounds = array<i64: 1, 32, 32>}, {transform_indices = @transform_17, window_bounds = array<i64: 1, 1, 32>}, {transform_indices = @transform_18, window_bounds = array<i64: 1, 32, 32>}, {transform_indices = @transform_19, window_bounds = array<i64: 1, 1, 32>}, {transform_indices = @transform_20, window_bounds = array<i64: 1, 32, 32>}, {transform_indices = @transform_21, window_bounds = array<i64: 1, 1, 32>}, {transform_indices = @transform_22, window_bounds = array<i64: 1, 1, 32>}, {transform_indices = @transform_23, window_bounds = array<i64: 1, 1, 32>}, {transform_indices = @transform_24, window_bounds = array<i64: 1, 32, 128>}, {transform_indices = @transform_25, window_bounds = array<i64: 1, 1, 128>}, {transform_indices = @transform_26, window_bounds = array<i64: 1, 128, 32>}, {transform_indices = @transform_27, window_bounds = array<i64: 1, 1, 32>}, {transform_indices = @transform_28, window_bounds = array<i64: 1, 1, 32>}, {transform_indices = @transform_29, window_bounds = array<i64: 1, 1, 32>}, {transform_indices = @transform_30, window_bounds = array<i64: 8, 128>}]} {
    %c0_i32 = arith.constant 0 : i32
    %0 = arith.cmpi eq, %arg1, %c0_i32 : i32
    %1 = arith.extui %0 : i1 to i32
    %c0_i32_0 = arith.constant 0 : i32
    %2 = arith.cmpi ne, %1, %c0_i32_0 : i32
    scf.if %2 {
      %c0_150 = arith.constant 0 : index
      %c0_151 = arith.constant 0 : index
      %302 = vector.load %arg2[%c0_150, %c0_151] : memref<8x32xf32, #tpu.memory_space<vmem>>, vector<8x32xf32>
      %c0_152 = arith.constant 0 : index
      %c0_153 = arith.constant 0 : index
      %303 = vector.load %arg33[%c0_152, %c0_153] : memref<8x32xf32, #tpu.memory_space<vmem>>, vector<8x32xf32>
      tpu.vector_store %arg33[%c0_152, %c0_153], %302 {strides = array<i32>} : memref<8x32xf32, #tpu.memory_space<vmem>>, vector<8x32xf32>,
    } else {
    }
    %c0 = arith.constant 0 : index
    %c0_1 = arith.constant 0 : index
    %3 = vector.load %arg33[%c0, %c0_1] : memref<8x32xf32, #tpu.memory_space<vmem>>, vector<8x32xf32>
    %c0_2 = arith.constant 0 : index
    %c0_3 = arith.constant 0 : index
    %4 = vector.load %arg3[%c0_2, %c0_3] : memref<8x32xf32, #tpu.memory_space<vmem>>, vector<8x32xf32>
    %c0_4 = arith.constant 0 : index
    %c0_5 = arith.constant 0 : index
    %c0_6 = arith.constant 0 : index
    %5 = vector.load %arg6[%c0_4, %c0_5, %c0_6] : memref<1x32x32xbf16, #tpu.memory_space<vmem>>, vector<1x32x32xbf16>
    %6 = vector.shape_cast %5 : vector<1x32x32xbf16> to vector<32x32xbf16>
    %7 = arith.truncf %3 : vector<8x32xf32> to vector<8x32xbf16>
    %cst = arith.constant dense<0.000000e+00> : vector<8x32xf32>
    %8 = tpu.matmul %7, %6, %cst {dimension_numbers = #tpu.dot_dimension_numbers<[1], [0], [0], [1], [0, 0, 1, 1], [], []>} : vector<8x32xbf16>, vector<32x32xbf16>, vector<8x32xf32> -> vector<8x32xf32>
    %c0_7 = arith.constant 0 : index
    %c0_8 = arith.constant 0 : index
    %c0_9 = arith.constant 0 : index
    %9 = vector.load %arg7[%c0_7, %c0_8, %c0_9] : memref<1x1x32xf32, #tpu.memory_space<vmem>>, vector<1x1x32xf32>
    %10 = vector.shape_cast %9 : vector<1x1x32xf32> to vector<1x32xf32>
    %11 = vector.broadcast %10 : vector<1x32xf32> to vector<8x32xf32>
    %12 = arith.addf %8, %11 : vector<8x32xf32>
    %c0_10 = arith.constant 0 : index
    %c0_11 = arith.constant 0 : index
    %c0_12 = arith.constant 0 : index
    %13 = vector.load %arg8[%c0_10, %c0_11, %c0_12] : memref<1x32x32xbf16, #tpu.memory_space<vmem>>, vector<1x32x32xbf16>
    %14 = vector.shape_cast %13 : vector<1x32x32xbf16> to vector<32x32xbf16>
    %15 = arith.truncf %3 : vector<8x32xf32> to vector<8x32xbf16>
    %cst_13 = arith.constant dense<0.000000e+00> : vector<8x32xf32>
    %16 = tpu.matmul %15, %14, %cst_13 {dimension_numbers = #tpu.dot_dimension_numbers<[1], [0], [0], [1], [0, 0, 1, 1], [], []>} : vector<8x32xbf16>, vector<32x32xbf16>, vector<8x32xf32> -> vector<8x32xf32>
    %c0_14 = arith.constant 0 : index
    %c0_15 = arith.constant 0 : index
    %c0_16 = arith.constant 0 : index
    %17 = vector.load %arg9[%c0_14, %c0_15, %c0_16] : memref<1x1x32xf32, #tpu.memory_space<vmem>>, vector<1x1x32xf32>
    %18 = vector.shape_cast %17 : vector<1x1x32xf32> to vector<1x32xf32>
    %19 = vector.broadcast %18 : vector<1x32xf32> to vector<8x32xf32>
    %20 = arith.addf %16, %19 : vector<8x32xf32>
    %c0_17 = arith.constant 0 : index
    %c0_18 = arith.constant 0 : index
    %c0_19 = arith.constant 0 : index
    %21 = vector.load %arg10[%c0_17, %c0_18, %c0_19] : memref<1x32x32xbf16, #tpu.memory_space<vmem>>, vector<1x32x32xbf16>
    %22 = vector.shape_cast %21 : vector<1x32x32xbf16> to vector<32x32xbf16>
    %23 = arith.truncf %3 : vector<8x32xf32> to vector<8x32xbf16>
    %cst_20 = arith.constant dense<0.000000e+00> : vector<8x32xf32>
    %24 = tpu.matmul %23, %22, %cst_20 {dimension_numbers = #tpu.dot_dimension_numbers<[1], [0], [0], [1], [0, 0, 1, 1], [], []>} : vector<8x32xbf16>, vector<32x32xbf16>, vector<8x32xf32> -> vector<8x32xf32>
    %c0_21 = arith.constant 0 : index
    %c0_22 = arith.constant 0 : index
    %c0_23 = arith.constant 0 : index
    %25 = vector.load %arg11[%c0_21, %c0_22, %c0_23] : memref<1x1x32xf32, #tpu.memory_space<vmem>>, vector<1x1x32xf32>
    %26 = vector.shape_cast %25 : vector<1x1x32xf32> to vector<1x32xf32>
    %27 = vector.broadcast %26 : vector<1x32xf32> to vector<8x32xf32>
    %28 = arith.addf %24, %27 : vector<8x32xf32>
    %29 = vector.extract_strided_slice %12 {offsets = [0, 0], sizes = [8, 8], strides = [1, 1]} : vector<8x32xf32> to vector<8x8xf32>
    %30 = vector.extract_strided_slice %20 {offsets = [0, 0], sizes = [8, 8], strides = [1, 1]} : vector<8x32xf32> to vector<8x8xf32>
    %31 = vector.extract_strided_slice %28 {offsets = [0, 0], sizes = [8, 8], strides = [1, 1]} : vector<8x32xf32> to vector<8x8xf32>
    %cst_24 = arith.constant dense<0.000000e+00> : vector<8x8xf32>
    %32 = tpu.matmul %29, %30, %cst_24 {dimension_numbers = #tpu.dot_dimension_numbers<[1], [1], [0], [0], [0, 0, 1, 0], [], []>} : vector<8x8xf32>, vector<8x8xf32>, vector<8x8xf32> -> vector<8x8xf32>
    %cst_25 = arith.constant 0.353553385 : f32
    %33 = vector.broadcast %cst_25 : f32 to vector<8x8xf32>
    %34 = arith.mulf %32, %33 : vector<8x8xf32>
    %cst_26 = arith.constant dense<0xFF800000> : vector<8xf32>
    %35 = vector.multi_reduction <maximumf>, %34, %cst_26 [1] : vector<8x8xf32> to vector<8xf32>
    %36 = vector.shape_cast %35 : vector<8xf32> to vector<8x1xf32>
    %37 = vector.broadcast %36 : vector<8x1xf32> to vector<8x8xf32>
    %38 = arith.subf %34, %37 : vector<8x8xf32>
    %39 = math.exp %38 : vector<8x8xf32>
    %cst_27 = arith.constant dense<0.000000e+00> : vector<8xf32>
    %40 = vector.multi_reduction <add>, %39, %cst_27 [1] : vector<8x8xf32> to vector<8xf32>
    %41 = vector.shape_cast %40 : vector<8xf32> to vector<8x1xf32>
    %42 = vector.broadcast %41 : vector<8x1xf32> to vector<8x8xf32>
    %43 = arith.divf %39, %42 : vector<8x8xf32>
    %cst_28 = arith.constant dense<0.000000e+00> : vector<8x8xf32>
    %44 = tpu.matmul %43, %31, %cst_28 {dimension_numbers = #tpu.dot_dimension_numbers<[1], [0], [0], [1], [0, 0, 1, 1], [], []>} : vector<8x8xf32>, vector<8x8xf32>, vector<8x8xf32> -> vector<8x8xf32>
    %45 = vector.extract_strided_slice %12 {offsets = [0, 8], sizes = [8, 8], strides = [1, 1]} : vector<8x32xf32> to vector<8x8xf32>
    %46 = vector.extract_strided_slice %20 {offsets = [0, 8], sizes = [8, 8], strides = [1, 1]} : vector<8x32xf32> to vector<8x8xf32>
    %47 = vector.extract_strided_slice %28 {offsets = [0, 8], sizes = [8, 8], strides = [1, 1]} : vector<8x32xf32> to vector<8x8xf32>
    %cst_29 = arith.constant dense<0.000000e+00> : vector<8x8xf32>
    %48 = tpu.matmul %45, %46, %cst_29 {dimension_numbers = #tpu.dot_dimension_numbers<[1], [1], [0], [0], [0, 0, 1, 0], [], []>} : vector<8x8xf32>, vector<8x8xf32>, vector<8x8xf32> -> vector<8x8xf32>
    %cst_30 = arith.constant 0.353553385 : f32
    %49 = vector.broadcast %cst_30 : f32 to vector<8x8xf32>
    %50 = arith.mulf %48, %49 : vector<8x8xf32>
    %cst_31 = arith.constant dense<0xFF800000> : vector<8xf32>
    %51 = vector.multi_reduction <maximumf>, %50, %cst_31 [1] : vector<8x8xf32> to vector<8xf32>
    %52 = vector.shape_cast %51 : vector<8xf32> to vector<8x1xf32>
    %53 = vector.broadcast %52 : vector<8x1xf32> to vector<8x8xf32>
    %54 = arith.subf %50, %53 : vector<8x8xf32>
    %55 = math.exp %54 : vector<8x8xf32>
    %cst_32 = arith.constant dense<0.000000e+00> : vector<8xf32>
    %56 = vector.multi_reduction <add>, %55, %cst_32 [1] : vector<8x8xf32> to vector<8xf32>
    %57 = vector.shape_cast %56 : vector<8xf32> to vector<8x1xf32>
    %58 = vector.broadcast %57 : vector<8x1xf32> to vector<8x8xf32>
    %59 = arith.divf %55, %58 : vector<8x8xf32>
    %cst_33 = arith.constant dense<0.000000e+00> : vector<8x8xf32>
    %60 = tpu.matmul %59, %47, %cst_33 {dimension_numbers = #tpu.dot_dimension_numbers<[1], [0], [0], [1], [0, 0, 1, 1], [], []>} : vector<8x8xf32>, vector<8x8xf32>, vector<8x8xf32> -> vector<8x8xf32>
    %61 = vector.extract_strided_slice %12 {offsets = [0, 16], sizes = [8, 8], strides = [1, 1]} : vector<8x32xf32> to vector<8x8xf32>
    %62 = vector.extract_strided_slice %20 {offsets = [0, 16], sizes = [8, 8], strides = [1, 1]} : vector<8x32xf32> to vector<8x8xf32>
    %63 = vector.extract_strided_slice %28 {offsets = [0, 16], sizes = [8, 8], strides = [1, 1]} : vector<8x32xf32> to vector<8x8xf32>
    %cst_34 = arith.constant dense<0.000000e+00> : vector<8x8xf32>
    %64 = tpu.matmul %61, %62, %cst_34 {dimension_numbers = #tpu.dot_dimension_numbers<[1], [1], [0], [0], [0, 0, 1, 0], [], []>} : vector<8x8xf32>, vector<8x8xf32>, vector<8x8xf32> -> vector<8x8xf32>
    %cst_35 = arith.constant 0.353553385 : f32
    %65 = vector.broadcast %cst_35 : f32 to vector<8x8xf32>
    %66 = arith.mulf %64, %65 : vector<8x8xf32>
    %cst_36 = arith.constant dense<0xFF800000> : vector<8xf32>
    %67 = vector.multi_reduction <maximumf>, %66, %cst_36 [1] : vector<8x8xf32> to vector<8xf32>
    %68 = vector.shape_cast %67 : vector<8xf32> to vector<8x1xf32>
    %69 = vector.broadcast %68 : vector<8x1xf32> to vector<8x8xf32>
    %70 = arith.subf %66, %69 : vector<8x8xf32>
    %71 = math.exp %70 : vector<8x8xf32>
    %cst_37 = arith.constant dense<0.000000e+00> : vector<8xf32>
    %72 = vector.multi_reduction <add>, %71, %cst_37 [1] : vector<8x8xf32> to vector<8xf32>
    %73 = vector.shape_cast %72 : vector<8xf32> to vector<8x1xf32>
    %74 = vector.broadcast %73 : vector<8x1xf32> to vector<8x8xf32>
    %75 = arith.divf %71, %74 : vector<8x8xf32>
    %cst_38 = arith.constant dense<0.000000e+00> : vector<8x8xf32>
    %76 = tpu.matmul %75, %63, %cst_38 {dimension_numbers = #tpu.dot_dimension_numbers<[1], [0], [0], [1], [0, 0, 1, 1], [], []>} : vector<8x8xf32>, vector<8x8xf32>, vector<8x8xf32> -> vector<8x8xf32>
    %77 = vector.extract_strided_slice %12 {offsets = [0, 24], sizes = [8, 8], strides = [1, 1]} : vector<8x32xf32> to vector<8x8xf32>
    %78 = vector.extract_strided_slice %20 {offsets = [0, 24], sizes = [8, 8], strides = [1, 1]} : vector<8x32xf32> to vector<8x8xf32>
    %79 = vector.extract_strided_slice %28 {offsets = [0, 24], sizes = [8, 8], strides = [1, 1]} : vector<8x32xf32> to vector<8x8xf32>
    %cst_39 = arith.constant dense<0.000000e+00> : vector<8x8xf32>
    %80 = tpu.matmul %77, %78, %cst_39 {dimension_numbers = #tpu.dot_dimension_numbers<[1], [1], [0], [0], [0, 0, 1, 0], [], []>} : vector<8x8xf32>, vector<8x8xf32>, vector<8x8xf32> -> vector<8x8xf32>
    %cst_40 = arith.constant 0.353553385 : f32
    %81 = vector.broadcast %cst_40 : f32 to vector<8x8xf32>
    %82 = arith.mulf %80, %81 : vector<8x8xf32>
    %cst_41 = arith.constant dense<0xFF800000> : vector<8xf32>
    %83 = vector.multi_reduction <maximumf>, %82, %cst_41 [1] : vector<8x8xf32> to vector<8xf32>
    %84 = vector.shape_cast %83 : vector<8xf32> to vector<8x1xf32>
    %85 = vector.broadcast %84 : vector<8x1xf32> to vector<8x8xf32>
    %86 = arith.subf %82, %85 : vector<8x8xf32>
    %87 = math.exp %86 : vector<8x8xf32>
    %cst_42 = arith.constant dense<0.000000e+00> : vector<8xf32>
    %88 = vector.multi_reduction <add>, %87, %cst_42 [1] : vector<8x8xf32> to vector<8xf32>
    %89 = vector.shape_cast %88 : vector<8xf32> to vector<8x1xf32>
    %90 = vector.broadcast %89 : vector<8x1xf32> to vector<8x8xf32>
    %91 = arith.divf %87, %90 : vector<8x8xf32>
    %cst_43 = arith.constant dense<0.000000e+00> : vector<8x8xf32>
    %92 = tpu.matmul %91, %79, %cst_43 {dimension_numbers = #tpu.dot_dimension_numbers<[1], [0], [0], [1], [0, 0, 1, 1], [], []>} : vector<8x8xf32>, vector<8x8xf32>, vector<8x8xf32> -> vector<8x8xf32>
    %93 = tpu.concatenate %44, %60, %76, %92 in 1 : vector<8x8xf32>, vector<8x8xf32>, vector<8x8xf32>, vector<8x8xf32> -> vector<8x32xf32>
    %c0_44 = arith.constant 0 : index
    %c0_45 = arith.constant 0 : index
    %c0_46 = arith.constant 0 : index
    %94 = vector.load %arg12[%c0_44, %c0_45, %c0_46] : memref<1x32x32xbf16, #tpu.memory_space<vmem>>, vector<1x32x32xbf16>
    %95 = vector.shape_cast %94 : vector<1x32x32xbf16> to vector<32x32xbf16>
    %96 = arith.truncf %93 : vector<8x32xf32> to vector<8x32xbf16>
    %cst_47 = arith.constant dense<0.000000e+00> : vector<8x32xf32>
    %97 = tpu.matmul %96, %95, %cst_47 {dimension_numbers = #tpu.dot_dimension_numbers<[1], [0], [0], [1], [0, 0, 1, 1], [], []>} : vector<8x32xbf16>, vector<32x32xbf16>, vector<8x32xf32> -> vector<8x32xf32>
    %c0_48 = arith.constant 0 : index
    %c0_49 = arith.constant 0 : index
    %c0_50 = arith.constant 0 : index
    %98 = vector.load %arg13[%c0_48, %c0_49, %c0_50] : memref<1x1x32xf32, #tpu.memory_space<vmem>>, vector<1x1x32xf32>
    %99 = vector.shape_cast %98 : vector<1x1x32xf32> to vector<1x32xf32>
    %100 = vector.broadcast %99 : vector<1x32xf32> to vector<8x32xf32>
    %101 = arith.addf %97, %100 : vector<8x32xf32>
    %102 = arith.addf %3, %101 : vector<8x32xf32>
    %c0_51 = arith.constant 0 : index
    %c0_52 = arith.constant 0 : index
    %c0_53 = arith.constant 0 : index
    %103 = vector.load %arg14[%c0_51, %c0_52, %c0_53] : memref<1x1x32xf32, #tpu.memory_space<vmem>>, vector<1x1x32xf32>
    %104 = vector.shape_cast %103 : vector<1x1x32xf32> to vector<1x32xf32>
    %c0_54 = arith.constant 0 : index
    %c0_55 = arith.constant 0 : index
    %c0_56 = arith.constant 0 : index
    %105 = vector.load %arg15[%c0_54, %c0_55, %c0_56] : memref<1x1x32xf32, #tpu.memory_space<vmem>>, vector<1x1x32xf32>
    %106 = vector.shape_cast %105 : vector<1x1x32xf32> to vector<1x32xf32>
    %cst_57 = arith.constant dense<0.000000e+00> : vector<8xf32>
    %107 = vector.multi_reduction <add>, %102, %cst_57 [1] : vector<8x32xf32> to vector<8xf32>
    %108 = vector.shape_cast %107 : vector<8xf32> to vector<8x1xf32>
    %cst_58 = arith.constant 3.200000e+01 : f32
    %109 = vector.broadcast %cst_58 : f32 to vector<8x1xf32>
    %110 = arith.divf %108, %109 : vector<8x1xf32>
    %111 = vector.broadcast %110 : vector<8x1xf32> to vector<8x32xf32>
    %112 = arith.subf %102, %111 : vector<8x32xf32>
    %113 = arith.mulf %112, %112 : vector<8x32xf32>
    %cst_59 = arith.constant dense<0.000000e+00> : vector<8xf32>
    %114 = vector.multi_reduction <add>, %113, %cst_59 [1] : vector<8x32xf32> to vector<8xf32>
    %115 = vector.shape_cast %114 : vector<8xf32> to vector<8x1xf32>
    %cst_60 = arith.constant 3.200000e+01 : f32
    %116 = vector.broadcast %cst_60 : f32 to vector<8x1xf32>
    %117 = arith.divf %115, %116 : vector<8x1xf32>
    %118 = vector.broadcast %110 : vector<8x1xf32> to vector<8x32xf32>
    %119 = arith.subf %102, %118 : vector<8x32xf32>
    %cst_61 = arith.constant 9.99999974E-6 : f32
    %120 = vector.broadcast %cst_61 : f32 to vector<8x1xf32>
    %121 = arith.addf %117, %120 : vector<8x1xf32>
    %122 = math.rsqrt %121 : vector<8x1xf32>
    %123 = vector.broadcast %122 : vector<8x1xf32> to vector<8x32xf32>
    %124 = arith.mulf %119, %123 : vector<8x32xf32>
    %125 = vector.broadcast %104 : vector<1x32xf32> to vector<8x32xf32>
    %126 = arith.mulf %124, %125 : vector<8x32xf32>
    %127 = vector.broadcast %106 : vector<1x32xf32> to vector<8x32xf32>
    %128 = arith.addf %126, %127 : vector<8x32xf32>
    %c0_62 = arith.constant 0 : index
    %c0_63 = arith.constant 0 : index
    %c0_64 = arith.constant 0 : index
    %129 = vector.load %arg16[%c0_62, %c0_63, %c0_64] : memref<1x32x32xbf16, #tpu.memory_space<vmem>>, vector<1x32x32xbf16>
    %130 = vector.shape_cast %129 : vector<1x32x32xbf16> to vector<32x32xbf16>
    %131 = arith.truncf %128 : vector<8x32xf32> to vector<8x32xbf16>
    %cst_65 = arith.constant dense<0.000000e+00> : vector<8x32xf32>
    %132 = tpu.matmul %131, %130, %cst_65 {dimension_numbers = #tpu.dot_dimension_numbers<[1], [0], [0], [1], [0, 0, 1, 1], [], []>} : vector<8x32xbf16>, vector<32x32xbf16>, vector<8x32xf32> -> vector<8x32xf32>
    %c0_66 = arith.constant 0 : index
    %c0_67 = arith.constant 0 : index
    %c0_68 = arith.constant 0 : index
    %133 = vector.load %arg17[%c0_66, %c0_67, %c0_68] : memref<1x1x32xf32, #tpu.memory_space<vmem>>, vector<1x1x32xf32>
    %134 = vector.shape_cast %133 : vector<1x1x32xf32> to vector<1x32xf32>
    %135 = vector.broadcast %134 : vector<1x32xf32> to vector<8x32xf32>
    %136 = arith.addf %132, %135 : vector<8x32xf32>
    %c0_69 = arith.constant 0 : index
    %c0_70 = arith.constant 0 : index
    %c0_71 = arith.constant 0 : index
    %137 = vector.load %arg18[%c0_69, %c0_70, %c0_71] : memref<1x32x32xbf16, #tpu.memory_space<vmem>>, vector<1x32x32xbf16>
    %138 = vector.shape_cast %137 : vector<1x32x32xbf16> to vector<32x32xbf16>
    %139 = arith.truncf %4 : vector<8x32xf32> to vector<8x32xbf16>
    %cst_72 = arith.constant dense<0.000000e+00> : vector<8x32xf32>
    %140 = tpu.matmul %139, %138, %cst_72 {dimension_numbers = #tpu.dot_dimension_numbers<[1], [0], [0], [1], [0, 0, 1, 1], [], []>} : vector<8x32xbf16>, vector<32x32xbf16>, vector<8x32xf32> -> vector<8x32xf32>
    %c0_73 = arith.constant 0 : index
    %c0_74 = arith.constant 0 : index
    %c0_75 = arith.constant 0 : index
    %141 = vector.load %arg19[%c0_73, %c0_74, %c0_75] : memref<1x1x32xf32, #tpu.memory_space<vmem>>, vector<1x1x32xf32>
    %142 = vector.shape_cast %141 : vector<1x1x32xf32> to vector<1x32xf32>
    %143 = vector.broadcast %142 : vector<1x32xf32> to vector<8x32xf32>
    %144 = arith.addf %140, %143 : vector<8x32xf32>
    %c0_76 = arith.constant 0 : index
    %c0_77 = arith.constant 0 : index
    %c0_78 = arith.constant 0 : index
    %145 = vector.load %arg20[%c0_76, %c0_77, %c0_78] : memref<1x32x32xbf16, #tpu.memory_space<vmem>>, vector<1x32x32xbf16>
    %146 = vector.shape_cast %145 : vector<1x32x32xbf16> to vector<32x32xbf16>
    %147 = arith.truncf %4 : vector<8x32xf32> to vector<8x32xbf16>
    %cst_79 = arith.constant dense<0.000000e+00> : vector<8x32xf32>
    %148 = tpu.matmul %147, %146, %cst_79 {dimension_numbers = #tpu.dot_dimension_numbers<[1], [0], [0], [1], [0, 0, 1, 1], [], []>} : vector<8x32xbf16>, vector<32x32xbf16>, vector<8x32xf32> -> vector<8x32xf32>
    %c0_80 = arith.constant 0 : index
    %c0_81 = arith.constant 0 : index
    %c0_82 = arith.constant 0 : index
    %149 = vector.load %arg21[%c0_80, %c0_81, %c0_82] : memref<1x1x32xf32, #tpu.memory_space<vmem>>, vector<1x1x32xf32>
    %150 = vector.shape_cast %149 : vector<1x1x32xf32> to vector<1x32xf32>
    %151 = vector.broadcast %150 : vector<1x32xf32> to vector<8x32xf32>
    %152 = arith.addf %148, %151 : vector<8x32xf32>
    %153 = vector.extract_strided_slice %136 {offsets = [0, 0], sizes = [8, 8], strides = [1, 1]} : vector<8x32xf32> to vector<8x8xf32>
    %154 = vector.extract_strided_slice %144 {offsets = [0, 0], sizes = [8, 8], strides = [1, 1]} : vector<8x32xf32> to vector<8x8xf32>
    %155 = vector.extract_strided_slice %152 {offsets = [0, 0], sizes = [8, 8], strides = [1, 1]} : vector<8x32xf32> to vector<8x8xf32>
    %cst_83 = arith.constant dense<0.000000e+00> : vector<8x8xf32>
    %156 = tpu.matmul %153, %154, %cst_83 {dimension_numbers = #tpu.dot_dimension_numbers<[1], [1], [0], [0], [0, 0, 1, 0], [], []>} : vector<8x8xf32>, vector<8x8xf32>, vector<8x8xf32> -> vector<8x8xf32>
    %cst_84 = arith.constant 0.353553385 : f32
    %157 = vector.broadcast %cst_84 : f32 to vector<8x8xf32>
    %158 = arith.mulf %156, %157 : vector<8x8xf32>
    %cst_85 = arith.constant dense<0xFF800000> : vector<8xf32>
    %159 = vector.multi_reduction <maximumf>, %158, %cst_85 [1] : vector<8x8xf32> to vector<8xf32>
    %160 = vector.shape_cast %159 : vector<8xf32> to vector<8x1xf32>
    %161 = vector.broadcast %160 : vector<8x1xf32> to vector<8x8xf32>
    %162 = arith.subf %158, %161 : vector<8x8xf32>
    %163 = math.exp %162 : vector<8x8xf32>
    %cst_86 = arith.constant dense<0.000000e+00> : vector<8xf32>
    %164 = vector.multi_reduction <add>, %163, %cst_86 [1] : vector<8x8xf32> to vector<8xf32>
    %165 = vector.shape_cast %164 : vector<8xf32> to vector<8x1xf32>
    %166 = vector.broadcast %165 : vector<8x1xf32> to vector<8x8xf32>
    %167 = arith.divf %163, %166 : vector<8x8xf32>
    %cst_87 = arith.constant dense<0.000000e+00> : vector<8x8xf32>
    %168 = tpu.matmul %167, %155, %cst_87 {dimension_numbers = #tpu.dot_dimension_numbers<[1], [0], [0], [1], [0, 0, 1, 1], [], []>} : vector<8x8xf32>, vector<8x8xf32>, vector<8x8xf32> -> vector<8x8xf32>
    %169 = vector.extract_strided_slice %136 {offsets = [0, 8], sizes = [8, 8], strides = [1, 1]} : vector<8x32xf32> to vector<8x8xf32>
    %170 = vector.extract_strided_slice %144 {offsets = [0, 8], sizes = [8, 8], strides = [1, 1]} : vector<8x32xf32> to vector<8x8xf32>
    %171 = vector.extract_strided_slice %152 {offsets = [0, 8], sizes = [8, 8], strides = [1, 1]} : vector<8x32xf32> to vector<8x8xf32>
    %cst_88 = arith.constant dense<0.000000e+00> : vector<8x8xf32>
    %172 = tpu.matmul %169, %170, %cst_88 {dimension_numbers = #tpu.dot_dimension_numbers<[1], [1], [0], [0], [0, 0, 1, 0], [], []>} : vector<8x8xf32>, vector<8x8xf32>, vector<8x8xf32> -> vector<8x8xf32>
    %cst_89 = arith.constant 0.353553385 : f32
    %173 = vector.broadcast %cst_89 : f32 to vector<8x8xf32>
    %174 = arith.mulf %172, %173 : vector<8x8xf32>
    %cst_90 = arith.constant dense<0xFF800000> : vector<8xf32>
    %175 = vector.multi_reduction <maximumf>, %174, %cst_90 [1] : vector<8x8xf32> to vector<8xf32>
    %176 = vector.shape_cast %175 : vector<8xf32> to vector<8x1xf32>
    %177 = vector.broadcast %176 : vector<8x1xf32> to vector<8x8xf32>
    %178 = arith.subf %174, %177 : vector<8x8xf32>
    %179 = math.exp %178 : vector<8x8xf32>
    %cst_91 = arith.constant dense<0.000000e+00> : vector<8xf32>
    %180 = vector.multi_reduction <add>, %179, %cst_91 [1] : vector<8x8xf32> to vector<8xf32>
    %181 = vector.shape_cast %180 : vector<8xf32> to vector<8x1xf32>
    %182 = vector.broadcast %181 : vector<8x1xf32> to vector<8x8xf32>
    %183 = arith.divf %179, %182 : vector<8x8xf32>
    %cst_92 = arith.constant dense<0.000000e+00> : vector<8x8xf32>
    %184 = tpu.matmul %183, %171, %cst_92 {dimension_numbers = #tpu.dot_dimension_numbers<[1], [0], [0], [1], [0, 0, 1, 1], [], []>} : vector<8x8xf32>, vector<8x8xf32>, vector<8x8xf32> -> vector<8x8xf32>
    %185 = vector.extract_strided_slice %136 {offsets = [0, 16], sizes = [8, 8], strides = [1, 1]} : vector<8x32xf32> to vector<8x8xf32>
    %186 = vector.extract_strided_slice %144 {offsets = [0, 16], sizes = [8, 8], strides = [1, 1]} : vector<8x32xf32> to vector<8x8xf32>
    %187 = vector.extract_strided_slice %152 {offsets = [0, 16], sizes = [8, 8], strides = [1, 1]} : vector<8x32xf32> to vector<8x8xf32>
    %cst_93 = arith.constant dense<0.000000e+00> : vector<8x8xf32>
    %188 = tpu.matmul %185, %186, %cst_93 {dimension_numbers = #tpu.dot_dimension_numbers<[1], [1], [0], [0], [0, 0, 1, 0], [], []>} : vector<8x8xf32>, vector<8x8xf32>, vector<8x8xf32> -> vector<8x8xf32>
    %cst_94 = arith.constant 0.353553385 : f32
    %189 = vector.broadcast %cst_94 : f32 to vector<8x8xf32>
    %190 = arith.mulf %188, %189 : vector<8x8xf32>
    %cst_95 = arith.constant dense<0xFF800000> : vector<8xf32>
    %191 = vector.multi_reduction <maximumf>, %190, %cst_95 [1] : vector<8x8xf32> to vector<8xf32>
    %192 = vector.shape_cast %191 : vector<8xf32> to vector<8x1xf32>
    %193 = vector.broadcast %192 : vector<8x1xf32> to vector<8x8xf32>
    %194 = arith.subf %190, %193 : vector<8x8xf32>
    %195 = math.exp %194 : vector<8x8xf32>
    %cst_96 = arith.constant dense<0.000000e+00> : vector<8xf32>
    %196 = vector.multi_reduction <add>, %195, %cst_96 [1] : vector<8x8xf32> to vector<8xf32>
    %197 = vector.shape_cast %196 : vector<8xf32> to vector<8x1xf32>
    %198 = vector.broadcast %197 : vector<8x1xf32> to vector<8x8xf32>
    %199 = arith.divf %195, %198 : vector<8x8xf32>
    %cst_97 = arith.constant dense<0.000000e+00> : vector<8x8xf32>
    %200 = tpu.matmul %199, %187, %cst_97 {dimension_numbers = #tpu.dot_dimension_numbers<[1], [0], [0], [1], [0, 0, 1, 1], [], []>} : vector<8x8xf32>, vector<8x8xf32>, vector<8x8xf32> -> vector<8x8xf32>
    %201 = vector.extract_strided_slice %136 {offsets = [0, 24], sizes = [8, 8], strides = [1, 1]} : vector<8x32xf32> to vector<8x8xf32>
    %202 = vector.extract_strided_slice %144 {offsets = [0, 24], sizes = [8, 8], strides = [1, 1]} : vector<8x32xf32> to vector<8x8xf32>
    %203 = vector.extract_strided_slice %152 {offsets = [0, 24], sizes = [8, 8], strides = [1, 1]} : vector<8x32xf32> to vector<8x8xf32>
    %cst_98 = arith.constant dense<0.000000e+00> : vector<8x8xf32>
    %204 = tpu.matmul %201, %202, %cst_98 {dimension_numbers = #tpu.dot_dimension_numbers<[1], [1], [0], [0], [0, 0, 1, 0], [], []>} : vector<8x8xf32>, vector<8x8xf32>, vector<8x8xf32> -> vector<8x8xf32>
    %cst_99 = arith.constant 0.353553385 : f32
    %205 = vector.broadcast %cst_99 : f32 to vector<8x8xf32>
    %206 = arith.mulf %204, %205 : vector<8x8xf32>
    %cst_100 = arith.constant dense<0xFF800000> : vector<8xf32>
    %207 = vector.multi_reduction <maximumf>, %206, %cst_100 [1] : vector<8x8xf32> to vector<8xf32>
    %208 = vector.shape_cast %207 : vector<8xf32> to vector<8x1xf32>
    %209 = vector.broadcast %208 : vector<8x1xf32> to vector<8x8xf32>
    %210 = arith.subf %206, %209 : vector<8x8xf32>
    %211 = math.exp %210 : vector<8x8xf32>
    %cst_101 = arith.constant dense<0.000000e+00> : vector<8xf32>
    %212 = vector.multi_reduction <add>, %211, %cst_101 [1] : vector<8x8xf32> to vector<8xf32>
    %213 = vector.shape_cast %212 : vector<8xf32> to vector<8x1xf32>
    %214 = vector.broadcast %213 : vector<8x1xf32> to vector<8x8xf32>
    %215 = arith.divf %211, %214 : vector<8x8xf32>
    %cst_102 = arith.constant dense<0.000000e+00> : vector<8x8xf32>
    %216 = tpu.matmul %215, %203, %cst_102 {dimension_numbers = #tpu.dot_dimension_numbers<[1], [0], [0], [1], [0, 0, 1, 1], [], []>} : vector<8x8xf32>, vector<8x8xf32>, vector<8x8xf32> -> vector<8x8xf32>
    %217 = tpu.concatenate %168, %184, %200, %216 in 1 : vector<8x8xf32>, vector<8x8xf32>, vector<8x8xf32>, vector<8x8xf32> -> vector<8x32xf32>
    %c0_103 = arith.constant 0 : index
    %c0_104 = arith.constant 0 : index
    %c0_105 = arith.constant 0 : index
    %218 = vector.load %arg22[%c0_103, %c0_104, %c0_105] : memref<1x32x32xbf16, #tpu.memory_space<vmem>>, vector<1x32x32xbf16>
    %219 = vector.shape_cast %218 : vector<1x32x32xbf16> to vector<32x32xbf16>
    %220 = arith.truncf %217 : vector<8x32xf32> to vector<8x32xbf16>
    %cst_106 = arith.constant dense<0.000000e+00> : vector<8x32xf32>
    %221 = tpu.matmul %220, %219, %cst_106 {dimension_numbers = #tpu.dot_dimension_numbers<[1], [0], [0], [1], [0, 0, 1, 1], [], []>} : vector<8x32xbf16>, vector<32x32xbf16>, vector<8x32xf32> -> vector<8x32xf32>
    %c0_107 = arith.constant 0 : index
    %c0_108 = arith.constant 0 : index
    %c0_109 = arith.constant 0 : index
    %222 = vector.load %arg23[%c0_107, %c0_108, %c0_109] : memref<1x1x32xf32, #tpu.memory_space<vmem>>, vector<1x1x32xf32>
    %223 = vector.shape_cast %222 : vector<1x1x32xf32> to vector<1x32xf32>
    %224 = vector.broadcast %223 : vector<1x32xf32> to vector<8x32xf32>
    %225 = arith.addf %221, %224 : vector<8x32xf32>
    %226 = arith.addf %128, %225 : vector<8x32xf32>
    %c0_110 = arith.constant 0 : index
    %c0_111 = arith.constant 0 : index
    %c0_112 = arith.constant 0 : index
    %227 = vector.load %arg24[%c0_110, %c0_111, %c0_112] : memref<1x1x32xf32, #tpu.memory_space<vmem>>, vector<1x1x32xf32>
    %228 = vector.shape_cast %227 : vector<1x1x32xf32> to vector<1x32xf32>
    %c0_113 = arith.constant 0 : index
    %c0_114 = arith.constant 0 : index
    %c0_115 = arith.constant 0 : index
    %229 = vector.load %arg25[%c0_113, %c0_114, %c0_115] : memref<1x1x32xf32, #tpu.memory_space<vmem>>, vector<1x1x32xf32>
    %230 = vector.shape_cast %229 : vector<1x1x32xf32> to vector<1x32xf32>
    %cst_116 = arith.constant dense<0.000000e+00> : vector<8xf32>
    %231 = vector.multi_reduction <add>, %226, %cst_116 [1] : vector<8x32xf32> to vector<8xf32>
    %232 = vector.shape_cast %231 : vector<8xf32> to vector<8x1xf32>
    %cst_117 = arith.constant 3.200000e+01 : f32
    %233 = vector.broadcast %cst_117 : f32 to vector<8x1xf32>
    %234 = arith.divf %232, %233 : vector<8x1xf32>
    %235 = vector.broadcast %234 : vector<8x1xf32> to vector<8x32xf32>
    %236 = arith.subf %226, %235 : vector<8x32xf32>
    %237 = arith.mulf %236, %236 : vector<8x32xf32>
    %cst_118 = arith.constant dense<0.000000e+00> : vector<8xf32>
    %238 = vector.multi_reduction <add>, %237, %cst_118 [1] : vector<8x32xf32> to vector<8xf32>
    %239 = vector.shape_cast %238 : vector<8xf32> to vector<8x1xf32>
    %cst_119 = arith.constant 3.200000e+01 : f32
    %240 = vector.broadcast %cst_119 : f32 to vector<8x1xf32>
    %241 = arith.divf %239, %240 : vector<8x1xf32>
    %242 = vector.broadcast %234 : vector<8x1xf32> to vector<8x32xf32>
    %243 = arith.subf %226, %242 : vector<8x32xf32>
    %cst_120 = arith.constant 9.99999974E-6 : f32
    %244 = vector.broadcast %cst_120 : f32 to vector<8x1xf32>
    %245 = arith.addf %241, %244 : vector<8x1xf32>
    %246 = math.rsqrt %245 : vector<8x1xf32>
    %247 = vector.broadcast %246 : vector<8x1xf32> to vector<8x32xf32>
    %248 = arith.mulf %243, %247 : vector<8x32xf32>
    %249 = vector.broadcast %228 : vector<1x32xf32> to vector<8x32xf32>
    %250 = arith.mulf %248, %249 : vector<8x32xf32>
    %251 = vector.broadcast %230 : vector<1x32xf32> to vector<8x32xf32>
    %252 = arith.addf %250, %251 : vector<8x32xf32>
    %c0_121 = arith.constant 0 : index
    %c0_122 = arith.constant 0 : index
    %c0_123 = arith.constant 0 : index
    %253 = vector.load %arg26[%c0_121, %c0_122, %c0_123] : memref<1x32x128xbf16, #tpu.memory_space<vmem>>, vector<1x32x128xbf16>
    %254 = vector.shape_cast %253 : vector<1x32x128xbf16> to vector<32x128xbf16>
    %255 = arith.truncf %252 : vector<8x32xf32> to vector<8x32xbf16>
    %cst_124 = arith.constant dense<0.000000e+00> : vector<8x128xf32>
    %256 = tpu.matmul %255, %254, %cst_124 {dimension_numbers = #tpu.dot_dimension_numbers<[1], [0], [0], [1], [0, 0, 1, 1], [], []>} : vector<8x32xbf16>, vector<32x128xbf16>, vector<8x128xf32> -> vector<8x128xf32>
    %c0_125 = arith.constant 0 : index
    %c0_126 = arith.constant 0 : index
    %c0_127 = arith.constant 0 : index
    %257 = vector.load %arg27[%c0_125, %c0_126, %c0_127] : memref<1x1x128xf32, #tpu.memory_space<vmem>>, vector<1x1x128xf32>
    %258 = vector.shape_cast %257 : vector<1x1x128xf32> to vector<1x128xf32>
    %259 = vector.broadcast %258 : vector<1x128xf32> to vector<8x128xf32>
    %260 = arith.addf %256, %259 : vector<8x128xf32>
    %cst_128 = arith.constant 0.000000e+00 : f32
    %261 = vector.broadcast %cst_128 : f32 to vector<8x128xf32>
    %262 = arith.maximumf %260, %261 : vector<8x128xf32>
    %c0_129 = arith.constant 0 : index
    %c0_130 = arith.constant 0 : index
    %c0_131 = arith.constant 0 : index
    %263 = vector.load %arg28[%c0_129, %c0_130, %c0_131] : memref<1x128x32xbf16, #tpu.memory_space<vmem>>, vector<1x128x32xbf16>
    %264 = vector.shape_cast %263 : vector<1x128x32xbf16> to vector<128x32xbf16>
    %265 = arith.truncf %262 : vector<8x128xf32> to vector<8x128xbf16>
    %cst_132 = arith.constant dense<0.000000e+00> : vector<8x32xf32>
    %266 = tpu.matmul %265, %264, %cst_132 {dimension_numbers = #tpu.dot_dimension_numbers<[1], [0], [0], [1], [0, 0, 1, 1], [], []>} : vector<8x128xbf16>, vector<128x32xbf16>, vector<8x32xf32> -> vector<8x32xf32>
    %c0_133 = arith.constant 0 : index
    %c0_134 = arith.constant 0 : index
    %c0_135 = arith.constant 0 : index
    %267 = vector.load %arg29[%c0_133, %c0_134, %c0_135] : memref<1x1x32xf32, #tpu.memory_space<vmem>>, vector<1x1x32xf32>
    %268 = vector.shape_cast %267 : vector<1x1x32xf32> to vector<1x32xf32>
    %269 = vector.broadcast %268 : vector<1x32xf32> to vector<8x32xf32>
    %270 = arith.addf %266, %269 : vector<8x32xf32>
    %271 = arith.addf %252, %270 : vector<8x32xf32>
    %c0_136 = arith.constant 0 : index
    %c0_137 = arith.constant 0 : index
    %c0_138 = arith.constant 0 : index
    %272 = vector.load %arg30[%c0_136, %c0_137, %c0_138] : memref<1x1x32xf32, #tpu.memory_space<vmem>>, vector<1x1x32xf32>
    %273 = vector.shape_cast %272 : vector<1x1x32xf32> to vector<1x32xf32>
    %c0_139 = arith.constant 0 : index
    %c0_140 = arith.constant 0 : index
    %c0_141 = arith.constant 0 : index
    %274 = vector.load %arg31[%c0_139, %c0_140, %c0_141] : memref<1x1x32xf32, #tpu.memory_space<vmem>>, vector<1x1x32xf32>
    %275 = vector.shape_cast %274 : vector<1x1x32xf32> to vector<1x32xf32>
    %cst_142 = arith.constant dense<0.000000e+00> : vector<8xf32>
    %276 = vector.multi_reduction <add>, %271, %cst_142 [1] : vector<8x32xf32> to vector<8xf32>
    %277 = vector.shape_cast %276 : vector<8xf32> to vector<8x1xf32>
    %cst_143 = arith.constant 3.200000e+01 : f32
    %278 = vector.broadcast %cst_143 : f32 to vector<8x1xf32>
    %279 = arith.divf %277, %278 : vector<8x1xf32>
    %280 = vector.broadcast %279 : vector<8x1xf32> to vector<8x32xf32>
    %281 = arith.subf %271, %280 : vector<8x32xf32>
    %282 = arith.mulf %281, %281 : vector<8x32xf32>
    %cst_144 = arith.constant dense<0.000000e+00> : vector<8xf32>
    %283 = vector.multi_reduction <add>, %282, %cst_144 [1] : vector<8x32xf32> to vector<8xf32>
    %284 = vector.shape_cast %283 : vector<8xf32> to vector<8x1xf32>
    %cst_145 = arith.constant 3.200000e+01 : f32
    %285 = vector.broadcast %cst_145 : f32 to vector<8x1xf32>
    %286 = arith.divf %284, %285 : vector<8x1xf32>
    %287 = vector.broadcast %279 : vector<8x1xf32> to vector<8x32xf32>
    %288 = arith.subf %271, %287 : vector<8x32xf32>
    %cst_146 = arith.constant 9.99999974E-6 : f32
    %289 = vector.broadcast %cst_146 : f32 to vector<8x1xf32>
    %290 = arith.addf %286, %289 : vector<8x1xf32>
    %291 = math.rsqrt %290 : vector<8x1xf32>
    %292 = vector.broadcast %291 : vector<8x1xf32> to vector<8x32xf32>
    %293 = arith.mulf %288, %292 : vector<8x32xf32>
    %294 = vector.broadcast %273 : vector<1x32xf32> to vector<8x32xf32>
    %295 = arith.mulf %293, %294 : vector<8x32xf32>
    %296 = vector.broadcast %275 : vector<1x32xf32> to vector<8x32xf32>
    %297 = arith.addf %295, %296 : vector<8x32xf32>
    %c0_147 = arith.constant 0 : index
    %c0_148 = arith.constant 0 : index
    %298 = vector.load %arg33[%c0_147, %c0_148] : memref<8x32xf32, #tpu.memory_space<vmem>>, vector<8x32xf32>
    tpu.vector_store %arg33[%c0_147, %c0_148], %297 {strides = array<i32>} : memref<8x32xf32, #tpu.memory_space<vmem>>, vector<8x32xf32>,
    %c2_i32 = arith.constant 2 : i32
    %299 = arith.cmpi eq, %arg1, %c2_i32 : i32
    %300 = arith.extui %299 : i1 to i32
    %c0_i32_149 = arith.constant 0 : i32
    %301 = arith.cmpi ne, %300, %c0_i32_149 : i32
    scf.if %301 {
      %c0_150 = arith.constant 0 : index
      %c0_151 = arith.constant 0 : index
      %302 = vector.load %arg4[%c0_150, %c0_151] : memref<32x128xbf16, #tpu.memory_space<vmem>>, vector<32x128xbf16>
      %303 = arith.truncf %297 : vector<8x32xf32> to vector<8x32xbf16>
      %cst_152 = arith.constant dense<0.000000e+00> : vector<8x128xf32>
      %304 = tpu.matmul %303, %302, %cst_152 {dimension_numbers = #tpu.dot_dimension_numbers<[1], [0], [0], [1], [0, 0, 1, 1], [], []>} : vector<8x32xbf16>, vector<32x128xbf16>, vector<8x128xf32> -> vector<8x128xf32>
      %c0_153 = arith.constant 0 : index
      %c0_154 = arith.constant 0 : index
      %305 = vector.load %arg5[%c0_153, %c0_154] : memref<1x128xf32, #tpu.memory_space<vmem>>, vector<1x128xf32>
      %306 = vector.broadcast %305 : vector<1x128xf32> to vector<8x128xf32>
      %307 = arith.addf %304, %306 : vector<8x128xf32>
      %c0_155 = arith.constant 0 : index
      %c0_156 = arith.constant 0 : index
      %308 = vector.load %arg32[%c0_155, %c0_156] : memref<8x128xf32, #tpu.memory_space<vmem>>, vector<8x128xf32>
      tpu.vector_store %arg32[%c0_155, %c0_156], %307 {strides = array<i32>} : memref<8x128xf32, #tpu.memory_space<vmem>>, vector<8x128xf32>,
    } else {
    }
    return
  }
  func.func @transform_0(%arg0: i32, %arg1: i32) -> (i32, i32) {
    %c0_i32 = arith.constant 0 : i32
    %c0_i32_0 = arith.constant 0 : i32
    return %arg0, %c0_i32 : i32, i32
  }
  func.func @transform_1(%arg0: i32, %arg1: i32) -> (i32, i32) {
    %c0_i32 = arith.constant 0 : i32
    %c0_i32_0 = arith.constant 0 : i32
    return %arg0, %c0_i32 : i32, i32
  }
  func.func @transform_2(%arg0: i32, %arg1: i32) -> (i32, i32) {
    %c0_i32 = arith.constant 0 : i32
    %c0_i32_0 = arith.constant 0 : i32
    %c0_i32_1 = arith.constant 0 : i32
    return %c0_i32, %c0_i32_0 : i32, i32
  }
  func.func @transform_3(%arg0: i32, %arg1: i32) -> (i32, i32) {
    %c0_i32 = arith.constant 0 : i32
    %c0_i32_0 = arith.constant 0 : i32
    %c0_i32_1 = arith.constant 0 : i32
    return %c0_i32, %c0_i32_0 : i32, i32
  }
  func.func @transform_4(%arg0: i32, %arg1: i32) -> (i32, i32, i32) {
    %c0_i32 = arith.constant 0 : i32
    %c0_i32_0 = arith.constant 0 : i32
    %c0_i32_1 = arith.constant 0 : i32
    return %arg1, %c0_i32, %c0_i32_0 : i32, i32, i32
  }
  func.func @transform_5(%arg0: i32, %arg1: i32) -> (i32, i32, i32) {
    %c0_i32 = arith.constant 0 : i32
    %c0_i32_0 = arith.constant 0 : i32
    %c0_i32_1 = arith.constant 0 : i32
    return %arg1, %c0_i32, %c0_i32_0 : i32, i32, i32
  }
  func.func @transform_6(%arg0: i32, %arg1: i32) -> (i32, i32, i32) {
    %c0_i32 = arith.constant 0 : i32
    %c0_i32_0 = arith.constant 0 : i32
    %c0_i32_1 = arith.constant 0 : i32
    return %arg1, %c0_i32, %c0_i32_0 : i32, i32, i32
  }
  func.func @transform_7(%arg0: i32, %arg1: i32) -> (i32, i32, i32) {
    %c0_i32 = arith.constant 0 : i32
    %c0_i32_0 = arith.constant 0 : i32
    %c0_i32_1 = arith.constant 0 : i32
    return %arg1, %c0_i32, %c0_i32_0 : i32, i32, i32
  }
  func.func @transform_8(%arg0: i32, %arg1: i32) -> (i32, i32, i32) {
    %c0_i32 = arith.constant 0 : i32
    %c0_i32_0 = arith.constant 0 : i32
    %c0_i32_1 = arith.constant 0 : i32
    return %arg1, %c0_i32, %c0_i32_0 : i32, i32, i32
  }
  func.func @transform_9(%arg0: i32, %arg1: i32) -> (i32, i32, i32) {
    %c0_i32 = arith.constant 0 : i32
    %c0_i32_0 = arith.constant 0 : i32
    %c0_i32_1 = arith.constant 0 : i32
    return %arg1, %c0_i32, %c0_i32_0 : i32, i32, i32
  }
  func.func @transform_10(%arg0: i32, %arg1: i32) -> (i32, i32, i32) {
    %c0_i32 = arith.constant 0 : i32
    %c0_i32_0 = arith.constant 0 : i32
    %c0_i32_1 = arith.constant 0 : i32
    return %arg1, %c0_i32, %c0_i32_0 : i32, i32, i32
  }
  func.func @transform_11(%arg0: i32, %arg1: i32) -> (i32, i32, i32) {
    %c0_i32 = arith.constant 0 : i32
    %c0_i32_0 = arith.constant 0 : i32
    %c0_i32_1 = arith.constant 0 : i32
    return %arg1, %c0_i32, %c0_i32_0 : i32, i32, i32
  }
  func.func @transform_12(%arg0: i32, %arg1: i32) -> (i32, i32, i32) {
    %c0_i32 = arith.constant 0 : i32
    %c0_i32_0 = arith.constant 0 : i32
    %c0_i32_1 = arith.constant 0 : i32
    return %arg1, %c0_i32, %c0_i32_0 : i32, i32, i32
  }
  func.func @transform_13(%arg0: i32, %arg1: i32) -> (i32, i32, i32) {
    %c0_i32 = arith.constant 0 : i32
    %c0_i32_0 = arith.constant 0 : i32
    %c0_i32_1 = arith.constant 0 : i32
    return %arg1, %c0_i32, %c0_i32_0 : i32, i32, i32
  }
  func.func @transform_14(%arg0: i32, %arg1: i32) -> (i32, i32, i32) {
    %c0_i32 = arith.constant 0 : i32
    %c0_i32_0 = arith.constant 0 : i32
    %c0_i32_1 = arith.constant 0 : i32
    return %arg1, %c0_i32, %c0_i32_0 : i32, i32, i32
  }
  func.func @transform_15(%arg0: i32, %arg1: i32) -> (i32, i32, i32) {
    %c0_i32 = arith.constant 0 : i32
    %c0_i32_0 = arith.constant 0 : i32
    %c0_i32_1 = arith.constant 0 : i32
    return %arg1, %c0_i32, %c0_i32_0 : i32, i32, i32
  }
  func.func @transform_16(%arg0: i32, %arg1: i32) -> (i32, i32, i32) {
    %c0_i32 = arith.constant 0 : i32
    %c0_i32_0 = arith.constant 0 : i32
    %c0_i32_1 = arith.constant 0 : i32
    return %arg1, %c0_i32, %c0_i32_0 : i32, i32, i32
  }
  func.func @transform_17(%arg0: i32, %arg1: i32) -> (i32, i32, i32) {
    %c0_i32 = arith.constant 0 : i32
    %c0_i32_0 = arith.constant 0 : i32
    %c0_i32_1 = arith.constant 0 : i32
    return %arg1, %c0_i32, %c0_i32_0 : i32, i32, i32
  }
  func.func @transform_18(%arg0: i32, %arg1: i32) -> (i32, i32, i32) {
    %c0_i32 = arith.constant 0 : i32
    %c0_i32_0 = arith.constant 0 : i32
    %c0_i32_1 = arith.constant 0 : i32
    return %arg1, %c0_i32, %c0_i32_0 : i32, i32, i32
  }
  func.func @transform_19(%arg0: i32, %arg1: i32) -> (i32, i32, i32) {
    %c0_i32 = arith.constant 0 : i32
    %c0_i32_0 = arith.constant 0 : i32
    %c0_i32_1 = arith.constant 0 : i32
    return %arg1, %c0_i32, %c0_i32_0 : i32, i32, i32
  }
  func.func @transform_20(%arg0: i32, %arg1: i32) -> (i32, i32, i32) {
    %c0_i32 = arith.constant 0 : i32
    %c0_i32_0 = arith.constant 0 : i32
    %c0_i32_1 = arith.constant 0 : i32
    return %arg1, %c0_i32, %c0_i32_0 : i32, i32, i32
  }
  func.func @transform_21(%arg0: i32, %arg1: i32) -> (i32, i32, i32) {
    %c0_i32 = arith.constant 0 : i32
    %c0_i32_0 = arith.constant 0 : i32
    %c0_i32_1 = arith.constant 0 : i32
    return %arg1, %c0_i32, %c0_i32_0 : i32, i32, i32
  }
  func.func @transform_22(%arg0: i32, %arg1: i32) -> (i32, i32, i32) {
    %c0_i32 = arith.constant 0 : i32
    %c0_i32_0 = arith.constant 0 : i32
    %c0_i32_1 = arith.constant 0 : i32
    return %arg1, %c0_i32, %c0_i32_0 : i32, i32, i32
  }
  func.func @transform_23(%arg0: i32, %arg1: i32) -> (i32, i32, i32) {
    %c0_i32 = arith.constant 0 : i32
    %c0_i32_0 = arith.constant 0 : i32
    %c0_i32_1 = arith.constant 0 : i32
    return %arg1, %c0_i32, %c0_i32_0 : i32, i32, i32
  }
  func.func @transform_24(%arg0: i32, %arg1: i32) -> (i32, i32, i32) {
    %c0_i32 = arith.constant 0 : i32
    %c0_i32_0 = arith.constant 0 : i32
    %c0_i32_1 = arith.constant 0 : i32
    return %arg1, %c0_i32, %c0_i32_0 : i32, i32, i32
  }
  func.func @transform_25(%arg0: i32, %arg1: i32) -> (i32, i32, i32) {
    %c0_i32 = arith.constant 0 : i32
    %c0_i32_0 = arith.constant 0 : i32
    %c0_i32_1 = arith.constant 0 : i32
    return %arg1, %c0_i32, %c0_i32_0 : i32, i32, i32
  }
  func.func @transform_26(%arg0: i32, %arg1: i32) -> (i32, i32, i32) {
    %c0_i32 = arith.constant 0 : i32
    %c0_i32_0 = arith.constant 0 : i32
    %c0_i32_1 = arith.constant 0 : i32
    return %arg1, %c0_i32, %c0_i32_0 : i32, i32, i32
  }
  func.func @transform_27(%arg0: i32, %arg1: i32) -> (i32, i32, i32) {
    %c0_i32 = arith.constant 0 : i32
    %c0_i32_0 = arith.constant 0 : i32
    %c0_i32_1 = arith.constant 0 : i32
    return %arg1, %c0_i32, %c0_i32_0 : i32, i32, i32
  }
  func.func @transform_28(%arg0: i32, %arg1: i32) -> (i32, i32, i32) {
    %c0_i32 = arith.constant 0 : i32
    %c0_i32_0 = arith.constant 0 : i32
    %c0_i32_1 = arith.constant 0 : i32
    return %arg1, %c0_i32, %c0_i32_0 : i32, i32, i32
  }
  func.func @transform_29(%arg0: i32, %arg1: i32) -> (i32, i32, i32) {
    %c0_i32 = arith.constant 0 : i32
    %c0_i32_0 = arith.constant 0 : i32
    %c0_i32_1 = arith.constant 0 : i32
    return %arg1, %c0_i32, %c0_i32_0 : i32, i32, i32
  }
  func.func @transform_30(%arg0: i32, %arg1: i32) -> (i32, i32) {
    %c0_i32 = arith.constant 0 : i32
    %c0_i32_0 = arith.constant 0 : i32
    return %arg0, %c0_i32 : i32, i32
  }
}

</mosaic_0001>

<bundles_post_ra>
// kernel: transformer_forward.2
= control target key start
LH: loop header
LB: loop body
LE: loop exit
PB: predicated region body
PF: predicated region fallthrough
CT: control target
= control target key end

     0   :  { %s2669_s24 = smov 0   ;;  %s2671_s25 = smov 0   ;;  %s2976_s0 = inlined_call_operand.vmem [shape: f32[16,32], index: 0, kind: input, shape index: {}]   ;;  %s2977_s1 = inlined_call_operand.vmem [shape: bf16[3,32,32], index: 1, kind: input, shape index: {}]   ;;  %s2978_s2 = inlined_call_operand.vmem [shape: f32[3,1,32], index: 2, kind: input, shape index: {}]   ;;  %s2979_s3 = inlined_call_operand.vmem [shape: bf16[3,32,32], index: 3, kind: input, shape index: {}]   ;;  %s2980_s4 = inlined_call_operand.vmem [shape: f32[3,1,32], index: 4, kind: input, shape index: {}]   ;;  %s2981_s5 = inlined_call_operand.vmem [shape: bf16[3,32,32], index: 5, kind: input, shape index: {}]   ;;  %s2982_s6 = inlined_call_operand.vmem [shape: f32[3,1,32], index: 6, kind: input, shape index: {}]   ;;  %s2983_s7 = inlined_call_operand.vmem [shape: bf16[3,32,32], index: 7, kind: input, shape index: {}]   ;;  %s2984_s8 = inlined_call_operand.vmem [shape: f32[3,1,32], index: 8, kind: input, shape index: {}]   ;;  %s2985_s9 = inlined_call_operand.vmem [shape: f32[3,1,32], index: 9, kind: input, shape index: {}]   ;;  %s2986_s10 = inlined_call_operand.vmem [shape: f32[3,1,32], index: 10, kind: input, shape index: {}]   ;;  %s2987_s11 = inlined_call_operand.vmem [shape: bf16[3,32,128], index: 11, kind: input, shape index: {}]   ;;  %s2988_s12 = inlined_call_operand.vmem [shape: f32[3,1,128], index: 12, kind: input, shape index: {}]   ;;  %s2989_s13 = inlined_call_operand.vmem [shape: bf16[3,128,32], index: 13, kind: input, shape index: {}]   ;;  %s2990_s14 = inlined_call_operand.vmem [shape: f32[3,1,32], index: 14, kind: input, shape index: {}]   ;;  %s2991_s15 = inlined_call_operand.vmem [shape: f32[3,1,32], index: 15, kind: input, shape index: {}]   ;;  %s2992_s16 = inlined_call_operand.vmem [shape: f32[3,1,32], index: 16, kind: input, shape index: {}]   ;;  %s2993_s17 = inlined_call_operand.vmem [shape: f32[16,32], index: 17, kind: output, shape index: {}]  }
   0x1   :  { %2998 = sst [smem:[#allocation8_spill]] %s2976_s0  ;;  %s2673_s26 = smov 0  }
   0x2   :  { %2999 = sst [smem:[#allocation9_spill]] %s2977_s1  ;;  %s2675_s27 = smov 0  }
   0x3   :  { %3000 = sst [smem:[#allocation10_spill]] %s2978_s2  ;;  %s2677_s28 = smov 0  }
   0x4   :  { %3001 = sst [smem:[#allocation11_spill]] %s2979_s3 }
   0x5   :  { %3002 = sst [smem:[#allocation12_spill]] %s2980_s4 }
   0x6   :  { %3003 = sst [smem:[#allocation13_spill]] %s2981_s5 }
   0x7   :  { %3004 = sst [smem:[#allocation14_spill]] %s2983_s7 }
   0x8   :  { %3005 = sst [smem:[#allocation15_spill]] %s2985_s9 }
   0x9   :  { %3006 = sst [smem:[#allocation16_spill]] %s2986_s10 }
   0xa   :  { %3007 = sst [smem:[#allocation17_spill]] %s2987_s11 }
   0xb   :  { %3008 = sst [smem:[#allocation18_spill]] %s2988_s12 }
   0xc   :  { %3009 = sst [smem:[#allocation19_spill]] %s2989_s13 }
   0xd   :  { %3010 = sst [smem:[#allocation20_spill]] %s2991_s15 }
   0xe   :  { %3011 = sst [smem:[#allocation21_spill]] %s2992_s16 }
   0xf   :  { %3012 = sst [smem:[#allocation22_spill]] %s2993_s17 }
  0x10 LB: > { %3013 = sst [smem:[#allocation2_spill]] %s2553_s24  ;;  %s36_s29 = sadd.s32 1, %s2561_s26  ;;  %s2569_s28 = sphi %s2677_s28, %s27_s28   ;;  %s2565_s27 = sphi %s2675_s27, %s3053_s27   ;;  %s2561_s26 = sphi %s2673_s26, %s3052_s26   ;;  %s2557_s25 = sphi %s2671_s25, %s3051_s25   ;;  %s2553_s24 = sphi %s2669_s24, %s3050_s24  }
  0x11   : > { %3014 = sst [smem:[#allocation3_spill]] %s2561_s26  ;;  %s39_s0 = sadd.s32 1, %s2565_s27 }
  0x12   : > { %3015 = sst [smem:[#allocation4_spill]] %s2565_s27  ;;  %p37_p0 = scmp.ge.s32.totalorder %s36_s29, 3 }
  0x13   : > { %3016 = sst [smem:[#allocation5_spill]] %s2569_s28  ;;  %p2236_p1 = scmp.ge.s32.totalorder %s2569_s28, 1 }
  0x14   : > { %p638_p2 = scmp.lt.s32.totalorder %s2569_s28, 7  ;;  %s3055_s29 = smov (%p37_p0, %s36_s29), 0 }
  0x15   : > { %3017 = sst [smem:[#allocation6_spill]] %s3055_s29  ;;  %s3057_s0 = smov (!%p37_p0, %s39_s0), %s2565_s27 }
  0x16   : > { %p639_p3 = pnand %p2236_p1, %p638_p2  ;;  %p41_p4 = scmp.ge.s32.totalorder %s3057_s0, 2 }
  0x17   : > { %p748_p5 = scmp.lt.s32.totalorder (!%p639_p3), %s2557_s25, 1  ;;  %p752_p6 = scmp.lt.s32.totalorder (!%p639_p3), %s2553_s24, 2 }
  0x18   : > { %s3059_s0 = smov (%p41_p4, %s3057_s0), 0  ;;  %642 = sbr.rel (%p639_p3) target bundleno = 2864 (0xb30), region = 88 }
  0x19   : > { %3018 = sst [smem:[#allocation7_spill]] %s3059_s0 }
  0x1a   : > { %s3019_s20 = sld [smem:[#allocation8_spill]] (!%p639_p3) }
  0x1b   : > { %s3020_s29 = sld [smem:[#allocation9_spill]] (!%p639_p3) }
  0x1c   : > { %s3022_s3 = sld [smem:[#allocation11_spill]] (!%p639_p3) }
  0x1d   : > { %s3061_s25 = smov (!%p748_p5, %s2557_s25), 1  ;;  %s3024_s5 = sld [smem:[#allocation13_spill]] }
  0x1e   : > { %s2703_s30 = scalar_select %p752_p6, %s2553_s24, 2 }
  0x1f   : > { %s2237_s18 = sshll.u32 %s3061_s25, 3  ;;  %s3025_s7 = sld [smem:[#allocation14_spill]] }
  0x20   : > { %s751_s21 = scalar_lea.vmem %s3019_s20, %s2237_s18  ;;  %s2299_s22 = sshll.u32 %s2703_s30, 4 }
  0x21   : > { %s756_s27 = scalar_lea.vmem %s3020_s29, %s2299_s22  ;;  %s3028_s11 = sld [smem:[#allocation17_spill]] }
  0x22   : > { %s2719_s25 = scalar_lea.vmem %s3022_s3, %s2299_s22  ;;  %s805_s3 = scalar_lea.vmem %s2990_s14, %s2703_s30 }
  0x23   : > { %s2728_s0 = scalar_lea.vmem %s3024_s5, %s2299_s22  ;;  %s3030_s1 = sld [smem:[#allocation19_spill]] }
  0x24   : > { %s3031_s5 = sld [smem:[#allocation20_spill]] }
  0x25   : > { %s2737_s2 = scalar_lea.vmem %s3025_s7, %s2299_s22  ;;  %s2304_s7 = sshll.u32 %s2703_s30, 6 }
  0x26   : > { %s3033_s26 = sld [smem:[#allocation22_spill]] }
  0x27   : > { %s2754_s23 = scalar_lea.vmem %s3028_s11, %s2299_s22  ;;  %s3032_s11 = sld [smem:[#allocation21_spill]] }
  0x28   : > { %s3034_s16 = sld [smem:[#allocation2_spill]] }
  0x29   : > { %s2768_s9 = scalar_lea.vmem %s3030_s1, %s2304_s7 }
  0x2a   : > { %s808_s4 = scalar_lea.vmem %s3031_s5, %s2703_s30 }
  0x2c   : > { %s2781_s12 = scalar_lea.vmem %s3033_s26, %s2237_s18 }
  0x2d   : > { %s811_s10 = scalar_lea.vmem %s3032_s11, %s2703_s30 }
  0x2e   : > { %p2251_p7 = scmp.ne.s32.totalorder %s3034_s16, 0 }
  0x30   : > { %820 = sbr.rel (%p2251_p7) target bundleno = 55 (0x37), region = 92 }
  0x35   : > { %v821_v0 = vld [vmem:[%s751_s21] sm:$0xff]  ;;  %vm822_vm0 = vcmask 261120  }
  0x36   : > { %823 = vst.msk [vmem:[%s2781_s12] sm:$0xff] %vm822_vm0, %v821_v0 }
  0x37 PF: > { %v2493_v1 = vld [vmem:[%s756_s27 + $0x8] sm:$0xff]   ;;  %v2571_v2 = vmov 0.0   ;;  %v2494_v3 = vld [vmem:[%s756_s27] sm:$0xff]   ;;  %vm2572_vm1 = vmmov 0   ;;  %vm849_vm2 = vcmask 261120   ;;  %s3035_s11 = sld [smem:[#allocation12_spill]]  ;;  %s3039_s13 = scalar_lea.vmem %s2982_s6, %s2703_s30 }
  0x38   : > { %2345 = vmatprep.subr.bf16.mxu1 %v2571_v2  ;;  %2374 = vmatprep.subr.mxu0 %v2571_v2  ;;  %v2495_v6 = vld [vmem:[%s2719_s25 + $0x8] sm:$0xff]   ;;  %v2496_v7 = vld [vmem:[%s2719_s25] sm:$0xff]   ;;  %vm1019_vm3 = vcmask 64512   ;;  %s3037_s25 = sld [smem:[#allocation10_spill]]  ;;  %s2574_s26 = smov 112   ;;  %vm1693_vm4 = vcmask 130048  }
  0x39   : > { %2346 = vmatpush3.bf16.msra.mxu1 %v2493_v1  ;;  %2349 = vmatprep.mubr.msk.bf16.mxu1 %vm2572_vm1, %v2571_v2  ;;  %v2497_v8 = vld [vmem:[%s2728_s0 + $0x8] sm:$0xff]   ;;  %v2498_v9 = vld [vmem:[%s2728_s0] sm:$0xff]   ;;  %s2573_s0 = smov 120   ;;  %s2575_s17 = smov 104   ;;  %vm1695_vm5 = vcmask 195584  }
  0x3a   : > { %2347 = vmatprep.subr.bf16.mxu1 %v2571_v2  ;;  %2376 = vmatprep.mubr.msk.f32.mxu0 %vm2572_vm1, %v2571_v2  ;;  %v2260_v22 = vld [vmem:[%s3039_s13] ss:$0 sm:$0xff]  ;;  %s2576_s20 = smov 8   ;;  %s2577_s22 = smov 16  }
  0x3b   : > { %s2578_s29 = smov 24   ;;  %s3040_s28 = scalar_lea.vmem %s2984_s8, %s2703_s30 }
  0x3c   : > { %s3041_s5 = sld [smem:[#allocation15_spill]] }
  0x3d   : > { %v2790_v4 = vld [vmem:[%s2781_s12] sm:$0xff]  ;;  %2348 = vmatpush3.bf16.msra.mxu1 %v2494_v3  ;;  %s3036_s27 = scalar_lea.vmem %s3035_s11, %s2703_s30  ;;  %s3043_s18 = sld [smem:[#allocation16_spill]] }
  0x3e   : > { %v829_v5 = vpack.c.bf16 %v2790_v4, %v2790_v4  ;;  %2353 = vmatprep.subr.bf16.mxu1 %v2571_v2  ;;  %v2256_v14 = vld [vmem:[%s3036_s27] ss:$0 sm:$0xff]  ;;  %s3038_s1 = scalar_lea.vmem %s3037_s25, %s2703_s30 }
  0x3f   : > { %v2252_v16 = vld [vmem:[%s3038_s1] ss:$0 sm:$0xff] }
  0x40   : > { %2350 = vmatmul.mubr.msk.bf16.vlgmr.msra.gmra.mxu1 %vm849_vm2, %v829_v5 }
  0x41   : > { %2354 = vmatpush3.bf16.msra.mxu1 %v2495_v6  ;;  %2357 = vmatprep.mubr.msk.bf16.mxu1 %vm2572_vm1, %v2571_v2 }
  0x42   : > { %2355 = vmatprep.subr.bf16.mxu1 %v2571_v2  ;;  %s3042_s7 = scalar_lea.vmem %s3041_s5, %s2703_s30 }
  0x43   : > { %s3044_s21 = scalar_lea.vmem %s3043_s18, %s2703_s30 }
  0x45   : > { %2356 = vmatpush3.bf16.msra.mxu1 %v2496_v7 }
  0x46   : > { %2361 = vmatprep.subr.bf16.mxu1 %v2571_v2 }
  0x48   : > { %2358 = vmatmul.mubr.msk.bf16.vlgmr.msra.gmra.mxu1 %vm849_vm2, %v829_v5 }
  0x49   : > { %2362 = vmatpush3.bf16.msra.mxu1 %v2497_v8  ;;  %2365 = vmatprep.mubr.msk.bf16.mxu1 %vm2572_vm1, %v2571_v2 }
  0x4a   : > { %2363 = vmatprep.subr.bf16.mxu1 %v2571_v2 }
  0x4d   : > { %2364 = vmatpush3.bf16.msra.mxu1 %v2498_v9 }
  0x4e   : > { %2369 = vmatprep.subr.mxu1 %v2571_v2 }
  0x50   : > { %2366 = vmatmul.mubr.msk.bf16.vlgmr.msra.gmra.mxu1 %vm849_vm2, %v829_v5 }
  0x51   : > { %2371 = vmatprep.mubr.msk.f32.mxu1 %vm2572_vm1, %v2571_v2 }
 0x100   : > { %v887_v10 = vpop.f32.mrf.mxu1 }
 0x101   : > { %v888_v19 = vadd.f32 %v2252_v16, %v887_v10 }
 0x102   : > { %v2351_v11 = vpop.f32.mrf.mxu1 }
 0x104   : > { %v890_v12 = vpop.f32.mrf.mxu1 }
 0x106   : > { %v2352_v13 = vpop.f32.mrf.mxu1 }
 0x108   : > { %v950_v15 = vpop.f32.mrf.mxu1 }
 0x109   : > { %v951_v17 = vadd.f32 %v2256_v14, %v950_v15 }
 0x10a   : > { %v2359_v18 = vpop.f32.mrf.mxu1 }
 0x10b   : > { %1183 = vrot.lane.b32.xlu1 %v951_v17, %s2573_s0  ;;  %2370 = vmatpush3.xpose.msk.msra.mxu1 %vm1019_vm3, %v951_v17 }
 0x10c   : > { %v953_v20 = vpop.f32.mrf.mxu1  ;;  %2384 = vmatprep.subr.mxu1 %v2571_v2 }
 0x10e   : > { %v2360_v21 = vpop.f32.mrf.mxu1  ;;  %2372 = vmatmul.mubr.msk.f32.vlgmr.msra.gmra.mxu1 %vm1019_vm3, %v888_v19 }
 0x10f   : > { %1181 = vrot.lane.b32.xlu1 %v888_v19, %s2573_s0  ;;  %2386 = vmatprep.mubr.msk.f32.mxu1 %vm2572_vm1, %v2571_v2 }
 0x110   : > { %v1013_v23 = vpop.f32.mrf.mxu1 }
 0x111   : > { %v2840_v24 = vadd.f32 %v2260_v22, %v1013_v23 }
 0x112   : > { %v2367_v25 = vpop.f32.mrf.mxu1 }
 0x113   : > { %1348 = vrot.lane.b32.xlu1 %v888_v19, %s2574_s26  ;;  %2375 = vmatpush3.msra.mxu0 %v2840_v24  ;;  %v2499_v25 = vld [vmem:[%s2737_s2 + $0x8] sm:$0xff]  }
 0x114   : > { %v1016_v26 = vpop.f32.mrf.mxu1  ;;  %2379 = vmatprep.subr.mxu0 %v2571_v2 }
 0x116   : > { %v2368_v27 = vpop.f32.mrf.mxu1 }
 0x117   : > { %1516 = vrot.lane.b32.xlu1 %v951_v17, %s2575_s17 }
 0x11b   : > { %1514 = vrot.lane.b32.xlu1 %v888_v19, %s2575_s17 }
 0x17d   : > { %v1184_v38 = vpop.permute.xlu1 %1183 }
 0x181   : > { %v1182_v39 = vpop.permute.xlu1 %1181 }
 0x185   : > { %v1349_v42 = vpop.permute.xlu1 %1348 }
 0x189   : > { %v1517_v44 = vpop.permute.xlu1 %1516 }
 0x18d   : > { %v1515_v45 = vpop.permute.xlu1 %1514 }
 0x1ce   : > { %v1092_v28 = vpop.f32.mrf.mxu1 }
 0x1cf   : > { %v1096_v29 = vmul.f32 0.35355338, %v1092_v28 }
 0x1d0   : > { %v2373_v30 = vpop.f32.mrf.mxu1 }
 0x1d1   : > { %v1097_v31 = vsel %vm1019_vm3, %v1096_v29, -inf  ;;  %v2500_v30 = vld [vmem:[%s2737_s2] sm:$0xff]  }
 0x1d2   : > { %1098 = vmax.xlane.f32.xlu0 %v1097_v31 }
 0x25b   : > { %v1099_v32 = vpop.xlane.xlu0 %1098 }
 0x25c   : > { %v1100_v33 = vsub.f32 %v1096_v29, %v1099_v32 }
 0x25e   : > { %v1101_v34 = vmul.f32 1.442695, %v1100_v33 }
 0x260   : > { %2511 = vpow2.f32 %v1101_v34 }
 0x26d   : > { %v2512_v35 = vpop.eup %2511 }
 0x26e   : > { %v1103_v36 = vsel %vm1019_vm3, %v2512_v35, 0.0 }
 0x26f   : > { %1104 = vadd.xlane.f32.xlu0 %v1103_v36 }
 0x285   : > { %1350 = vrot.lane.b32.xlu0 %v951_v17, %s2574_s26 }
 0x2f8   : > { %v1105_v37 = vpop.xlane.xlu0 %1104 }
 0x2f9   : > { %2513 = vrcp.f32 %v1105_v37 }
 0x2fc   : > { %v1351_v43 = vpop.permute.xlu0 %1350 }
 0x306   : > { %v2514_v40 = vpop.eup %2513 }
 0x307   : > { %v1107_v41 = vmul.f32 %v2514_v40, %v2512_v35  ;;  %v2276_v40 = vld [vmem:[%s3040_s28] ss:$0 sm:$0xff] }
 0x309   : > { %2377 = vmatmul.mubr.msk.f32.vlgmr.msra.gmra.mxu0 %vm1019_vm3, %v1107_v41 }
 0x30a   : > { %2380 = vmatpush3.xpose.msk.msra.mxu0 %vm1019_vm3, %v1184_v38  ;;  %2381 = vmatprep.mubr.msk.f32.mxu0 %vm2572_vm1, %v2571_v2 }
 0x30b   : > { %2389 = vmatprep.subr.mxu0 %v2571_v2 }
 0x30d   : > { %2382 = vmatmul.mubr.msk.f32.vlgmr.msra.gmra.mxu0 %vm1019_vm3, %v1182_v39 }
 0x30e   : > { %2390 = vmatpush3.xpose.msk.msra.mxu0 %vm1019_vm3, %v1351_v43  ;;  %2391 = vmatprep.mubr.msk.f32.mxu0 %vm2572_vm1, %v2571_v2 }
 0x30f   : > { %2399 = vmatprep.subr.mxu0 %v2571_v2 }
 0x311   : > { %2392 = vmatmul.mubr.msk.f32.vlgmr.msra.gmra.mxu0 %vm1019_vm3, %v1349_v42 }
 0x312   : > { %2400 = vmatpush3.xpose.msk.msra.mxu0 %vm1019_vm3, %v1517_v44  ;;  %2401 = vmatprep.mubr.msk.f32.mxu0 %vm2572_vm1, %v2571_v2 }
 0x313   : > { %2409 = vmatprep.subr.bf16.mxu0 %v2571_v2 }
 0x315   : > { %2402 = vmatmul.mubr.msk.f32.vlgmr.msra.gmra.mxu0 %vm1019_vm3, %v1515_v45 }
 0x316   : > { %2413 = vmatprep.mubr.msk.bf16.mxu0 %vm2572_vm1, %v2571_v2  ;;  %2410 = vmatpush3.bf16.msra.mxu0 %v2499_v25 }
 0x317   : > { %2411 = vmatprep.subr.bf16.mxu0 %v2571_v2 }
 0x31a   : > { %2412 = vmatpush3.bf16.msra.mxu0 %v2500_v30 }
 0x31b   : > { %2425 = vmatprep.subr.bf16.mxu0 %v2571_v2 }
 0x3c9   : > { %v2865_v46 = vpop.f32.mrf.mxu0 }
 0x3cb   : > { %v2378_v47 = vpop.f32.mrf.mxu0 }
 0x3cd   : > { %v1255_v48 = vpop.f32.mrf.mxu0 }
 0x3ce   : > { %v1259_v49 = vmul.f32 0.35355338, %v1255_v48 }
 0x3cf   : > { %v2383_v50 = vpop.f32.mrf.mxu0 }
 0x3d0   : > { %v1260_v51 = vsel %vm1019_vm3, %v1259_v49, -inf }
 0x3d1   : > { %1261 = vmax.xlane.f32.xlu1 %v1260_v51  ;;  %v1422_v52 = vpop.f32.mrf.mxu0 }
 0x3d2   : > { %v1426_v53 = vmul.f32 0.35355338, %v1422_v52 }
 0x3d3   : > { %v2393_v54 = vpop.f32.mrf.mxu0 }
 0x3d4   : > { %v1427_v55 = vsel %vm1019_vm3, %v1426_v53, -inf  ;;  %v2503_v54 = vld [vmem:[%s2768_s9 + $0x38] sm:$0xff]  }
 0x3d5   : > { %1428 = vmax.xlane.f32.xlu0 %v1427_v55  ;;  %v1588_v56 = vpop.f32.mrf.mxu0  ;;  %v2504_v55 = vld [vmem:[%s2768_s9 + $0x30] sm:$0xff]  }
 0x3d6   : > { %v1592_v57 = vmul.f32 0.35355338, %v1588_v56  ;;  %v2505_v56 = vld [vmem:[%s2768_s9 + $0x28] sm:$0xff]  }
 0x3d7   : > { %v2403_v58 = vpop.f32.mrf.mxu0 }
 0x3d8   : > { %v1593_v59 = vsel %vm1019_vm3, %v1592_v57, -inf  ;;  %v2507_v58 = vld [vmem:[%s2768_s9 + $0x18] sm:$0xff]  }
 0x3d9   : > { %1594 = vmax.xlane.f32.xlu1 %v1593_v59  ;;  %v2508_v59 = vld [vmem:[%s2768_s9 + $0x10] sm:$0xff]  }
 0x45a   : > { %v1262_v60 = vpop.xlane.xlu1 %1261 }
 0x45b   : > { %v1263_v61 = vsub.f32 %v1259_v49, %v1262_v60 }
 0x45d   : > { %v1264_v62 = vmul.f32 1.442695, %v1263_v61 }
 0x45e   : > { %v1429_v63 = vpop.xlane.xlu0 %1428 }
 0x45f   : > { %2515 = vpow2.f32 %v1264_v62  ;;  %v1430_v0 = vsub.f32 %v1426_v53, %v1429_v63  ;;  %v2501_v53 = vld [vmem:[%s2754_s23 + $0x8] sm:$0xff]  }
 0x461   : > { %v1431_v1 = vmul.f32 1.442695, %v1430_v0  ;;  %v2280_v0 = vld [vmem:[%s3042_s7] ss:$0 sm:$0xff] }
 0x462   : > { %v1595_v8 = vpop.xlane.xlu1 %1594 }
 0x463   : > { %2517 = vpow2.f32 %v1431_v1  ;;  %v1596_v9 = vsub.f32 %v1592_v57, %v1595_v8  ;;  %v2506_v57 = vld [vmem:[%s2768_s9 + $0x20] sm:$0xff]   ;;  %v2509_v8 = vld [vmem:[%s2768_s9 + $0x8] sm:$0xff]  }
 0x465   : > { %v1597_v10 = vmul.f32 1.442695, %v1596_v9  ;;  %v2510_v9 = vld [vmem:[%s2768_s9] sm:$0xff]  }
 0x467   : > { %2519 = vpow2.f32 %v1597_v10 }
 0x46c   : > { %v2516_v3 = vpop.eup %2515 }
 0x46d   : > { %v1266_v5 = vsel %vm1019_vm3, %v2516_v3, 0.0 }
 0x46e   : > { %1267 = vadd.xlane.f32.xlu1 %v1266_v5 }
 0x470   : > { %v2518_v6 = vpop.eup %2517 }
 0x471   : > { %v1433_v7 = vsel %vm1019_vm3, %v2518_v6, 0.0 }
 0x472   : > { %1434 = vadd.xlane.f32.xlu0 %v1433_v7 }
 0x474   : > { %v2520_v11 = vpop.eup %2519 }
 0x475   : > { %v1599_v12 = vsel %vm1019_vm3, %v2520_v11, 0.0 }
 0x47f   : > { %1438 = vrot.lane.b32.xlu1 %v2840_v24, %s2574_s26 }
 0x488   : > { %1272 = vrot.lane.b32.xlu0 %v2840_v24, %s2573_s0  ;;  %s3045_s0 = sld [smem:[#allocation18_spill]] }
 0x48e   : > { %s3046_s26 = scalar_lea.vmem %s3045_s0, %s2703_s30 }
 0x48f   : > { %v2282_v10 = vld [vmem:[%s3046_s26] ss:$0 sm:$0xff] }
 0x4a3   : > { %1600 = vadd.xlane.f32.xlu1 %v1599_v12 }
 0x4b4   : > { %1604 = vrot.lane.b32.xlu1 %v2840_v24, %s2575_s17 }
 0x4f7   : > { %v1268_v13 = vpop.xlane.xlu1 %1267 }
 0x4f8   : > { %2521 = vrcp.f32 %v1268_v13 }
 0x4fb   : > { %v1435_v14 = vpop.xlane.xlu0 %1434  ;;  %v1439_v18 = vpop.permute.xlu1 %1438 }
 0x4fc   : > { %2523 = vrcp.f32 %v1435_v14 }
 0x4ff   : > { %v1273_v15 = vpop.permute.xlu0 %1272 }
 0x500   : > { %2385 = vmatpush3.msra.mxu1 %v1273_v15 }
 0x501   : > { %2394 = vmatprep.subr.mxu1 %v2571_v2 }
 0x505   : > { %v2522_v16 = vpop.eup %2521 }
 0x506   : > { %v1270_v17 = vmul.f32 %v2522_v16, %v2516_v3  ;;  %v2281_v3 = vld [vmem:[%s3044_s21] ss:$0 sm:$0xff] }
 0x508   : > { %2387 = vmatmul.mubr.msk.f32.vlgmr.msra.gmra.mxu1 %vm1019_vm3, %v1270_v17 }
 0x509   : > { %v2524_v19 = vpop.eup %2523  ;;  %2395 = vmatpush3.msra.mxu1 %v1439_v18  ;;  %2396 = vmatprep.mubr.msk.f32.mxu1 %vm2572_vm1, %v2571_v2 }
 0x50a   : > { %v1437_v20 = vmul.f32 %v2524_v19, %v2518_v6  ;;  %2404 = vmatprep.subr.mxu1 %v2571_v2 }
 0x50c   : > { %2397 = vmatmul.mubr.msk.f32.vlgmr.msra.gmra.mxu1 %vm1019_vm3, %v1437_v20 }
 0x50d   : > { %2406 = vmatprep.mubr.msk.f32.mxu1 %vm2572_vm1, %v2571_v2 }
 0x52c   : > { %v1601_v21 = vpop.xlane.xlu1 %1600 }
 0x52d   : > { %2525 = vrcp.f32 %v1601_v21 }
 0x530   : > { %v1605_v22 = vpop.permute.xlu1 %1604 }
 0x531   : > { %2405 = vmatpush3.msra.mxu1 %v1605_v22 }
 0x532   : > { %2417 = vmatprep.subr.bf16.mxu1 %v2571_v2 }
 0x53a   : > { %v2526_v23 = vpop.eup %2525 }
 0x53b   : > { %v1603_v24 = vmul.f32 %v2526_v23, %v2520_v11 }
 0x53d   : > { %2407 = vmatmul.mubr.msk.f32.vlgmr.msra.gmra.mxu1 %vm1019_vm3, %v1603_v24 }
 0x53e   : > { %2421 = vmatprep.mubr.msk.bf16.mxu1 %vm2572_vm1, %v2571_v2  ;;  %2418 = vmatpush3.bf16.msra.mxu1 %v2501_v53 }
 0x53f   : > { %2419 = vmatprep.subr.bf16.mxu1 %v2571_v2 }
 0x5c8   : > { %v1344_v26 = vpop.f32.mrf.mxu1 }
 0x5c9   : > { %1681 = vrot.lane.b32.xlu0 %v1344_v26, %s2576_s20 }
 0x5ca   : > { %v2388_v27 = vpop.f32.mrf.mxu1 }
 0x5cc   : > { %v1510_v28 = vpop.f32.mrf.mxu1 }
 0x5cd   : > { %1685 = vrot.lane.b32.xlu1 %v1510_v28, %s2577_s22 }
 0x5ce   : > { %v2398_v29 = vpop.f32.mrf.mxu1 }
 0x5fd   : > { %v1676_v31 = vpop.f32.mrf.mxu1 }
 0x5fe   : > { %1689 = vrot.lane.b32.xlu0 %v1676_v31, %s2578_s29 }
 0x5ff   : > { %v2408_v32 = vpop.f32.mrf.mxu1 }
 0x63b   : > { %v1682_v33 = vpop.permute.xlu0 %1681 }
 0x63c   : > { %v1692_v35 = vsel %vm1019_vm3, %v2865_v46, %v1682_v33 }
 0x63f   : > { %v1686_v34 = vpop.permute.xlu1 %1685 }
 0x640   : > { %v1694_v36 = vsel %vm1693_vm4, %v1692_v35, %v1686_v34  ;;  %v2295_v34 = vld [vmem:[%s808_s4] ss:$0 sm:$0xff] }
 0x670   : > { %v1690_v37 = vpop.permute.xlu0 %1689 }
 0x671   : > { %v1696_v38 = vsel %vm1695_vm5, %v1694_v36, %v1690_v37  ;;  %v2296_v36 = vld [vmem:[%s811_s10] ss:$0 sm:$0xff] }
 0x672   : > { %v1701_v39 = vpack.c.bf16 %v1696_v38, %v1696_v38 }
 0x674   : > { %2414 = vmatmul.mubr.msk.bf16.vlgmr.msra.gmra.mxu0 %vm849_vm2, %v1701_v39 }
 0x675   : > { %2441 = vmatprep.mubr.msk.bf16.mxu0 %vm2572_vm1, %v2571_v2  ;;  %2426 = vmatpush3.bf16.msra.mxu0 %v2503_v54 }
 0x676   : > { %2427 = vmatprep.subr.bf16.mxu0 %v2571_v2 }
 0x679   : > { %2428 = vmatpush3.bf16.msra.mxu0 %v2504_v55 }
 0x67a   : > { %2429 = vmatprep.subr.bf16.mxu0 %v2571_v2 }
 0x67d   : > { %2430 = vmatpush3.bf16.msra.mxu0 %v2505_v56 }
 0x67e   : > { %2431 = vmatprep.subr.bf16.mxu0 %v2571_v2 }
 0x681   : > { %2432 = vmatpush3.bf16.msra.mxu0 %v2506_v57 }
 0x682   : > { %2433 = vmatprep.subr.bf16.mxu0 %v2571_v2 }
 0x685   : > { %2434 = vmatpush3.bf16.msra.mxu0 %v2507_v58 }
 0x686   : > { %2435 = vmatprep.subr.bf16.mxu0 %v2571_v2 }
 0x689   : > { %2436 = vmatpush3.bf16.msra.mxu0 %v2508_v59 }
 0x68a   : > { %2437 = vmatprep.subr.bf16.mxu0 %v2571_v2 }
 0x68d   : > { %2438 = vmatpush3.bf16.msra.mxu0 %v2509_v8 }
 0x68e   : > { %2439 = vmatprep.subr.bf16.mxu0 %v2571_v2  ;;  %v2286_v2 = vld [vmem:[%s805_s3] ss:$0 sm:$0xff] }
 0x691   : > { %2440 = vmatpush3.bf16.msra.mxu0 %v2510_v9 }
 0x734   : > { %v1758_v41 = vpop.f32.mrf.mxu0 }
 0x735   : > { %v1759_v42 = vadd.f32 %v2276_v40, %v1758_v41 }
 0x736   : > { %v2415_v43 = vpop.f32.mrf.mxu0 }
 0x737   : > { %v1764_v44 = vadd.f32 %v1759_v42, %v2790_v4  ;;  %v2502_v4 = vld [vmem:[%s2754_s23] sm:$0xff]  }
 0x738   : > { %v1761_v45 = vpop.f32.mrf.mxu0  ;;  %2420 = vmatpush3.bf16.msra.mxu1 %v2502_v4 }
 0x739   : > { %v1767_v46 = vsel %vm849_vm2, %v1764_v44, 0.0 }
 0x73a   : > { %1768 = vadd.xlane.f32.xlu1 %v1767_v46  ;;  %v2416_v47 = vpop.f32.mrf.mxu0 }
 0x7c3   : > { %v1769_v48 = vpop.xlane.xlu1 %1768 }
 0x7c4   : > { %v1771_v49 = vmul.f32 0.03125, %v1769_v48 }
 0x7c6   : > { %v1772_v50 = vsub.f32 %v1764_v44, %v1771_v49 }
 0x7c8   : > { %v1773_v51 = vmul.f32 %v1772_v50, %v1772_v50 }
 0x7ca   : > { %v1774_v52 = vsel %vm849_vm2, %v1773_v51, 0.0 }
 0x7cb   : > { %1775 = vadd.xlane.f32.xlu0 %v1774_v52 }
 0x854   : > { %v1776_v60 = vpop.xlane.xlu0 %1775 }
 0x855   : > { %v1777_v61 = vmul.f32 0.03125, %v1776_v60 }
 0x857   : > { %v1778_v62 = vadd.f32 1e-05, %v1777_v61 }
 0x859   : > { %2527 = vrsqrt.f32 %v1778_v62 }
 0x866   : > { %v2528_v63 = vpop.eup %2527 }
 0x867   : > { %v1780_v1 = vmul.f32 %v2528_v63, %v1772_v50 }
 0x869   : > { %v1787_v5 = vmul.f32 %v2280_v0, %v1780_v1 }
 0x86b   : > { %v1794_v6 = vadd.f32 %v2281_v3, %v1787_v5 }
 0x86d   : > { %v1799_v7 = vpack.c.bf16 %v1794_v6, %v1794_v6 }
 0x86f   : > { %2422 = vmatmul.mubr.msk.bf16.vlgmr.msra.gmra.mxu1 %vm849_vm2, %v1799_v7 }
 0x92f   : > { %v1856_v11 = vpop.f32.mrf.mxu1 }
 0x930   : > { %v1857_v12 = vadd.f32 %v2282_v10, %v1856_v11 }
 0x931   : > { %v2423_v13 = vpop.f32.mrf.mxu1 }
 0x932   : > { %v1862_v14 = vmax.f32 %v1857_v12, 0.0 }
 0x933   : > { %v1859_v15 = vpop.f32.mrf.mxu1 }
 0x934   : > { %v1879_v16 = vpack.c.bf16 %v1862_v14, %v1862_v14 }
 0x935   : > { %v2424_v17 = vpop.f32.mrf.mxu1 }
 0x936   : > { %2442 = vmatmul.mubr.bf16.vlgmr.msra.gmra.mxu0 %v1879_v16 }
 0x9f6   : > { %v1969_v18 = vpop.f32.mrf.mxu0 }
 0x9f7   : > { %v1970_v19 = vadd.f32 %v2286_v2, %v1969_v18 }
 0x9f8   : > { %v2443_v20 = vpop.f32.mrf.mxu0 }
 0x9f9   : > { %v1975_v21 = vadd.f32 %v1970_v19, %v1794_v6 }
 0x9fa   : > { %v1972_v22 = vpop.f32.mrf.mxu0 }
 0x9fb   : > { %v1978_v23 = vsel %vm849_vm2, %v1975_v21, 0.0 }
 0x9fc   : > { %1979 = vadd.xlane.f32.xlu0 %v1978_v23  ;;  %v2444_v24 = vpop.f32.mrf.mxu0 }
 0xa85   : > { %v1980_v25 = vpop.xlane.xlu0 %1979 }
 0xa86   : > { %v1981_v26 = vmul.f32 0.03125, %v1980_v25 }
 0xa88   : > { %v1982_v27 = vsub.f32 %v1975_v21, %v1981_v26 }
 0xa8a   : > { %v1983_v28 = vmul.f32 %v1982_v27, %v1982_v27 }
 0xa8c   : > { %v1984_v29 = vsel %vm849_vm2, %v1983_v28, 0.0 }
 0xa8d   : > { %1985 = vadd.xlane.f32.xlu1 %v1984_v29 }
 0xb16   : > { %v1986_v30 = vpop.xlane.xlu1 %1985 }
 0xb17   : > { %v1987_v31 = vmul.f32 0.03125, %v1986_v30 }
 0xb19   : > { %v1988_v32 = vadd.f32 1e-05, %v1987_v31 }
 0xb1b   : > { %2529 = vrsqrt.f32 %v1988_v32 }
 0xb28   : > { %v2530_v33 = vpop.eup %2529 }
 0xb29   : > { %v1990_v35 = vmul.f32 %v2530_v33, %v1982_v27 }
 0xb2b   : > { %v1997_v37 = vmul.f32 %v2295_v34, %v1990_v35 }
 0xb2d   : > { %v2004_v38 = vadd.f32 %v2296_v36, %v1997_v37 }
 0xb2f   : > { %2005 = vst.msk [vmem:[%s2781_s12] sm:$0xff] %vm849_vm2, %v2004_v38 }
 0xb30 PF: > { %s3049_s29 = sld [smem:[#allocation5_spill]] }
 0xb31   : > { %s3050_s24 = sld [smem:[#allocation3_spill]] }
 0xb32   : > { %s3051_s25 = sld [smem:[#allocation4_spill]] }
 0xb33   : > { %s3052_s26 = sld [smem:[#allocation6_spill]] }
 0xb34   : > { %s3053_s27 = sld [smem:[#allocation7_spill]] }
 0xb36   : > { %s27_s28 = sadd.s32 1, %s3049_s29  }
 0xb37   : > { %p24_p8 = scmp.ge.s32.totalorder %s27_s28, 8  }
 0xb39   :  { %26 = sbr.rel (!%p24_p8) target bundleno = 16 (0x10), region = 170 }

// kernel: transformer_forward.3
= control target key start
LH: loop header
LB: loop body
LE: loop exit
PB: predicated region body
PF: predicated region fallthrough
CT: control target
= control target key end

     0   :  { %s4855_s6 = smov 1   ;;  %s4856_s10 = smov 2   ;;  %s5637_s0 = inlined_call_operand.smem [shape: u32[31], index: -1, kind: input, shape index: {}] }
   0x1   :  { %s4907_s5 = sld [smem:[%s5637_s0]]   ;;  %s4857_s14 = smov 3  }
   0x2   :  { %s4912_s9 = sld [smem:[%s5637_s0 + %s4855_s6]]   ;;  %s4858_s18 = smov 4  }
   0x3   :  { %s4917_s13 = sld [smem:[%s5637_s0 + %s4856_s10]]   ;;  %s4859_s22 = smov 5  }
   0x4   :  { %s4922_s17 = sld [smem:[%s5637_s0 + %s4857_s14]]   ;;  %s4860_s26 = smov 6  }
   0x5   :  { %s4927_s21 = sld [smem:[%s5637_s0 + %s4858_s18]]   ;;  %s4861_s30 = smov 7  }
   0x6   :  { %s4932_s25 = sld [smem:[%s5637_s0 + %s4859_s22]]   ;;  %s4862_s4 = smov 8  }
   0x7   :  { %5663 = sst [smem:[#allocation13_spill]] %s4907_s5  ;;  %s4863_s10 = smov 9  }
   0x8   :  { %5664 = sst [smem:[#allocation14_spill]] %s4912_s9  ;;  %s4864_s15 = smov 10  }
   0x9   :  { %5665 = sst [smem:[#allocation15_spill]] %s4917_s13  ;;  %s4865_s20 = smov 11  }
   0xa   :  { %5666 = sst [smem:[#allocation16_spill]] %s4922_s17  ;;  %s4867_s1 = smov 13  }
   0xb   :  { %5667 = sst [smem:[#allocation17_spill]] %s4927_s21  ;;  %s4868_s7 = smov 14  }
   0xc   :  { %5668 = sst [smem:[#allocation18_spill]] %s4932_s25  ;;  %s4870_s22 = smov 16  }
   0xd   :  { %s4937_s29 = sld [smem:[%s5637_s0 + %s4860_s26]]   ;;  %s4866_s26 = smov 12  }
   0xe   :  { %s4942_s3 = sld [smem:[%s5637_s0 + %s4861_s30]]   ;;  %s4871_s28 = smov 17  }
   0xf   :  { %s4947_s8 = sld [smem:[%s5637_s0 + %s4862_s4]]  }
  0x10   :  { %s4952_s14 = sld [smem:[%s5637_s0 + %s4863_s10]]  }
  0x11   :  { %s4957_s19 = sld [smem:[%s5637_s0 + %s4864_s15]]   ;;  %s4869_s15 = smov 15  }
  0x12   :  { %s4962_s24 = sld [smem:[%s5637_s0 + %s4865_s20]]  }
  0x13   :  { %5669 = sst [smem:[#allocation19_spill]] %s4937_s29 }
  0x14   :  { %5670 = sst [smem:[#allocation20_spill]] %s4942_s3 }
  0x15   :  { %5671 = sst [smem:[#allocation21_spill]] %s4947_s8 }
  0x16   :  { %5672 = sst [smem:[#allocation22_spill]] %s4952_s14 }
  0x17   :  { %5673 = sst [smem:[#allocation23_spill]] %s4957_s19 }
  0x18   :  { %5674 = sst [smem:[#allocation24_spill]] %s4962_s24 }
  0x19   :  { %s4967_s30 = sld [smem:[%s5637_s0 + %s4866_s26]]  }
  0x1a   :  { %s4972_s6 = sld [smem:[%s5637_s0 + %s4867_s1]]  }
  0x1b   :  { %s4977_s12 = sld [smem:[%s5637_s0 + %s4868_s7]]   ;;  %s4872_s7 = smov 18  }
  0x1c   :  { %s4982_s20 = sld [smem:[%s5637_s0 + %s4869_s15]]   ;;  %s4873_s15 = smov 19  }
  0x1d   :  { %s4987_s27 = sld [smem:[%s5637_s0 + %s4870_s22]]   ;;  %s4874_s22 = smov 20  }
  0x1e   :  { %s4992_s4 = sld [smem:[%s5637_s0 + %s4871_s28]]   ;;  %s4875_s28 = smov 21  }
  0x1f   :  { %5675 = sst [smem:[#allocation25_spill]] %s4967_s30 }
  0x20   :  { %5676 = sst [smem:[#allocation26_spill]] %s4972_s6 }
  0x21   :  { %5677 = sst [smem:[#allocation27_spill]] %s4977_s12 }
  0x22   :  { %5678 = sst [smem:[#allocation28_spill]] %s4982_s20 }
  0x23   :  { %5679 = sst [smem:[#allocation29_spill]] %s4987_s27 }
  0x24   :  { %5680 = sst [smem:[#allocation30_spill]] %s4992_s4 }
  0x25   :  { %s4997_s13 = sld [smem:[%s5637_s0 + %s4872_s7]]   ;;  %s4876_s7 = smov 22  }
  0x26   :  { %s5002_s20 = sld [smem:[%s5637_s0 + %s4873_s15]]   ;;  %s4877_s15 = smov 23  }
  0x27   :  { %s5007_s27 = sld [smem:[%s5637_s0 + %s4874_s22]]   ;;  %s4878_s22 = smov 24  }
  0x28   :  { %s5012_s4 = sld [smem:[%s5637_s0 + %s4875_s28]]   ;;  %s4879_s28 = smov 25  }
  0x2b   :  { %5681 = sst [smem:[#allocation31_spill]] %s4997_s13 }
  0x2c   :  { %5682 = sst [smem:[#allocation32_spill]] %s5002_s20 }
  0x2d   :  { %5683 = sst [smem:[#allocation33_spill]] %s5007_s27 }
  0x2e   :  { %5684 = sst [smem:[#allocation34_spill]] %s5012_s4 }
  0x2f   :  { %s5017_s13 = sld [smem:[%s5637_s0 + %s4876_s7]]   ;;  %s4880_s7 = smov 26  }
  0x30   :  { %s5022_s20 = sld [smem:[%s5637_s0 + %s4877_s15]]   ;;  %s4881_s15 = smov 27  }
  0x31   :  { %s5027_s27 = sld [smem:[%s5637_s0 + %s4878_s22]]   ;;  %s4882_s22 = smov 28  }
  0x32   :  { %s5032_s4 = sld [smem:[%s5637_s0 + %s4879_s28]]   ;;  %s4883_s28 = smov 29  }
  0x35   :  { %5685 = sst [smem:[#allocation35_spill]] %s5017_s13 }
  0x36   :  { %5686 = sst [smem:[#allocation36_spill]] %s5022_s20 }
  0x37   :  { %5687 = sst [smem:[#allocation37_spill]] %s5027_s27 }
  0x38   :  { %5688 = sst [smem:[#allocation38_spill]] %s5032_s4 }
  0x39   :  { %s5037_s13 = sld [smem:[%s5637_s0 + %s4880_s7]]   ;;  %s4884_s7 = smov 30  }
  0x3a   :  { %s5042_s20 = sld [smem:[%s5637_s0 + %s4881_s15]]  }
  0x3b   :  { %s5047_s27 = sld [smem:[%s5637_s0 + %s4882_s22]]  }
  0x3c   :  { %s5052_s4 = sld [smem:[%s5637_s0 + %s4883_s28]]  }
  0x3f   :  { %5689 = sst [smem:[#allocation39_spill]] %s5037_s13 }
  0x40   :  { %5690 = sst [smem:[#allocation40_spill]] %s5042_s20 }
  0x41   :  { %5691 = sst [smem:[#allocation41_spill]] %s5047_s27 }
  0x42   :  { %5692 = sst [smem:[#allocation42_spill]] %s5052_s4 }
  0x43   :  { %s5057_s13 = sld [smem:[%s5637_s0 + %s4884_s7]]  }
  0x49   :  { %5693 = sst [smem:[#allocation43_spill]] %s5057_s13 }
  0x4a   :  { %66 = vsyncpa [#allocation4], 0 }
  0x4b   :  { %67 = vsyncpa [#allocation6], 0 }
  0x4c   :  { %69 = vsyncpa [#allocation6 + $0x1], 0 }
  0x4d   :  { %70 = vsyncpa [#allocation9], 0 }
  0x4e   :  { %72 = vsyncpa [#allocation9 + $0x1], 0  ;;  %s5059_s15 = smov 0   ;;  %s5061_s16 = smov 0  }
  0x4f   :  { %s5063_s18 = smov 0   ;;  %s5065_s22 = smov 0  }
  0x50   :  { %s5067_s23 = smov 0   ;;  %s5069_s26 = smov 0  }
  0x51   :  { %s5071_s28 = smov 0   ;;  %s5073_s0 = smov 0  }
  0x52 LB: > { %s5694_s27 = sld [smem:[#allocation41_spill]]  ;;  %s87_s1 = sadd.s32 1, %s4845_s26  ;;  %s4833_s18 = sphi %s5063_s18, %s5794_s18   ;;  %s4829_s16 = sphi %s5061_s16, %s5793_s16   ;;  %s4825_s15 = sphi %s5059_s15, %s5792_s15   ;;  %s4853_s0 = sphi %s5073_s0, %s78_s0   ;;  %s4849_s28 = sphi %s5071_s28, %s5798_s28   ;;  %s4845_s26 = sphi %s5069_s26, %s5797_s26   ;;  %s4841_s23 = sphi %s5067_s23, %s5796_s23   ;;  %s4837_s22 = sphi %s5065_s22, %s5795_s22  }
  0x53   : > { %s5695_s4 = sld [smem:[#allocation42_spill]]  ;;  %s90_s2 = sadd.s32 1, %s4849_s28 }
  0x54   : > { %s5696_s20 = sld [smem:[#allocation40_spill]]  ;;  %p88_p0 = scmp.ge.s32.totalorder %s87_s1, 3 }
  0x55   : > { %5697 = sst [smem:[#allocation44_spill]] %s4829_s16  ;;  %s789_s7 = sadd.s32 1, %s4833_s18 }
  0x56   : > { %5698 = sst [smem:[#allocation45_spill]] %s4833_s18  ;;  %p796_p1 = scmp.ne.s32.totalorder %s4833_s18, %s4829_s16 }
  0x57   : > { %5699 = sst [smem:[#allocation46_spill]] %s4837_s22  ;;  %p797_p2 = scmp.eq.s32.totalorder %s4853_s0, 0 }
  0x58   : > { %5700 = sst [smem:[#allocation47_spill]] %s4845_s26  ;;  %s5800_s1 = smov (%p88_p0, %s87_s1), 0 }
  0x59   : > { %5701 = sst [smem:[#allocation48_spill]] %s4849_s28  ;;  %s5802_s2 = smov (!%p88_p0, %s90_s2), %s4849_s28 }
  0x5a   : > { %5702 = sst [smem:[#allocation49_spill]] %s4853_s0  ;;  %s786_s10 = ssub.s32 %s4845_s26, %s5800_s1 }
  0x5b   : > { %5703 = sst [smem:[#allocation50_spill]] %s5800_s1  ;;  %p5110_p3 = por %p797_p2, %p796_p1 }
  0x5c   : > { %p92_p4 = scmp.ge.s32.totalorder %s5802_s2, 2  ;;  %p787_p5 = scmp.eq.s32.totalorder %s786_s10, 0 }
  0x5d   : > { %p4496_p6 = scmp.lt.s32.totalorder %s4853_s0, 6  ;;  %s1090_s12 = sand.u32 1, %s4853_s0  }
  0x5e   : > { %s5804_s2 = smov (%p92_p4, %s5802_s2), 0  ;;  %s5122_s6 = sand.u32 1, %s4833_s18  }
  0x5f   : > { %5705 = sst [smem:[#allocation51_spill]] %s5804_s2  ;;  %s5125_s28 = sshll.u32 %s4845_s26, 4 }
  0x60   : > { %s5118_s13 = scalar_select %p787_p5, %s4833_s18, %s789_s7  }
  0x61   : > { %s1093_s1 = scalar_lea.vmem [#allocation5], %s5122_s6  ;;  %s5130_s24 = scalar_lea.hbm %s5696_s20, %s5125_s28 }
  0x62   : > { %5706 = sst [smem:[#allocation52_spill]] %s5118_s13  ;;  %s1100_s30 = sshll.u32 %s1093_s1, 4  ;;  %s1101_s30 = int_to_ptr.vmem [resolvable:$true] %s1100_s30 }
  0x63   : > { %p5134_p7 = pnand %p4496_p6, %p5110_p3  ;;  %s5138_s10 = scalar_lea.sflag [#allocation6], %s1090_s12 }
  0x64   : > { %s4669_s2 = scalar_lea.hbm %s5130_s24, 16  ;;  %s4674_s1 = scalar_lea.hbm %s5696_s20, 48 }
  0x65   : > { %p4670_p8 = scmp.ne.s32.totalorder %s5130_s24, %s4669_s2  ;;  %p5144_p9 = pneg %p5134_p7 }
  0x66   : > { %p4675_p12 = scmp.lt.s32.totalorder %s5130_s24, %s5696_s20  ;;  %p4676_p13 = scmp.lt.s32.totalorder %s4674_s1, %s4669_s2 }
  0x67   : > { %p4672_p10 = pnand %p5144_p9, %p4670_p8 }
  0x68   : > { %p4677_p0 = por %p4676_p13, %p4675_p12 }
  0x69   : > { %p4673_p11 = pneg %p4672_p10 }
  0x6b   : > { %p4678_p1 = pnand %p4677_p0, %p4673_p11 }
  0x6d   : > { %4681 = shalt.err (!%p4678_p1)
}
  0x6e   : > { %s4682_s11 = scalar_lea.vmem %s1101_s30, 16  ;;  %s4885_s12 = smov [#allocation5]  }
  0x6f   : > { %p4683_p2 = scmp.ne.s32.totalorder %s1101_s30, %s4682_s11  ;;  %s4687_s13 = sshll.u32 %s4885_s12, 4  ;;  %s4688_s13 = int_to_ptr.vmem [resolvable:$false] %s4687_s13 }
  0x70   : > { %s4689_s18 = scalar_lea.vmem %s4688_s13, 32  ;;  %p4690_p5 = scmp.lt.s32.totalorder %s1101_s30, %s4688_s13 }
  0x71   : > { %p4685_p3 = pnand %p4683_p2, %p5144_p9  ;;  %p4691_p6 = scmp.lt.s32.totalorder %s4689_s18, %s4682_s11 }
  0x73   : > { %p4686_p4 = pneg %p4685_p3  ;;  %p4692_p8 = por %p4691_p6, %p4690_p5 }
  0x75   : > { %p4693_p10 = pnand %p4692_p8, %p4686_p4 }
  0x77   : > { %4696 = shalt.err (!%p4693_p10)
}
  0x78   : > { %4488 = dma.hbm_to_vmem [thread:$0]  (!%p5134_p7), %s5130_s24, 16, %s1101_s30, %s5138_s10  }
  0x79   : > { %s5643_s2 = sadd.s32 4294967295, %s4853_s0   ;;  %p802_p11 = scmp.ne.s32.totalorder %s4829_s16, %s4825_s15 }
  0x7a   : > { %p5164_p12 = scmp.eq.s32.totalorder %s5643_s2, 0  ;;  %p4096_p13 = scmp.ge.s32.totalorder %s4853_s0, 1 }
  0x7b   : > { %p891_p0 = scmp.lt.s32.totalorder %s4853_s0, 7  ;;  %s4886_s30 = smov [#allocation3]  }
  0x7c   : > { %s5709_s13 = scalar_select %p5164_p12, 1, 0 }
  0x7d   : > { %p5172_p1 = por %p5164_p12, %p802_p11  ;;  %p5176_p2 = pnand %p4096_p13, %p891_p0 }
  0x7e   : > { %s907_s15 = sshll.u32 %s4886_s30, 4  ;;  %s5186_s1 = scalar_lea.hbm %s5694_s27, %s5125_s28  ;;  %s5180_s15 = int_to_ptr.vmem [resolvable:$true] %s907_s15 }
  0x7f   : > { %s5710_s18 = scalar_select %p5172_p1, 1, 0 }
  0x80   : > { %s5711_s24 = scalar_select %p5176_p2, 1, 0 }
  0x81   : > { %p4481_p3 = pneg %p5176_p2  ;;  %s1110_s11 = scalar_lea.vmem [#allocation7], %s5122_s6 }
  0x82   : > { %s1117_s12 = sshll.u32 %s1110_s11, 4  ;;  %s4697_s20 = scalar_lea.hbm %s5186_s1, 16  ;;  %s1118_s12 = int_to_ptr.vmem [resolvable:$true] %s1117_s12 }
  0x83   : > { %p5191_p4 = pnand %p4481_p3, %p5164_p12  ;;  %p4698_p5 = scmp.ne.s32.totalorder %s5186_s1, %s4697_s20 }
  0x84   : > { %s4702_s30 = scalar_lea.hbm %s5694_s27, 48  ;;  %p4703_p10 = scmp.lt.s32.totalorder %s5186_s1, %s5694_s27 }
  0x85   : > { %s5712_s2 = scalar_select %p5191_p4, 1, 0 }
  0x86   : > { %p4700_p6 = pnand %p4698_p5, %p5144_p9  ;;  %p4704_p11 = scmp.lt.s32.totalorder %s4702_s30, %s4697_s20 }
  0x88   : > { %p4701_p8 = pneg %p4700_p6  ;;  %p4705_p13 = por %p4704_p11, %p4703_p10 }
  0x8a   : > { %p4706_p0 = pnand %p4705_p13, %p4701_p8 }
  0x8c   : > { %4709 = shalt.err (!%p4706_p0)
}
  0x8d   : > { %s4710_s19 = scalar_lea.vmem %s1118_s12, 16  ;;  %s4887_s11 = smov [#allocation7]  }
  0x8e   : > { %p4711_p1 = scmp.ne.s32.totalorder %s1118_s12, %s4710_s19  ;;  %s4715_s14 = sshll.u32 %s4887_s11, 4  ;;  %s4716_s14 = int_to_ptr.vmem [resolvable:$false] %s4715_s14 }
  0x8f   : > { %s4717_s8 = scalar_lea.vmem %s4716_s14, 32  ;;  %p4718_p2 = scmp.lt.s32.totalorder %s1118_s12, %s4716_s14 }
  0x90   : > { %p4713_p3 = pnand %p4711_p1, %p5144_p9  ;;  %p4719_p4 = scmp.lt.s32.totalorder %s4717_s8, %s4710_s19 }
  0x92   : > { %p4714_p12 = pneg %p4713_p3  ;;  %p4720_p5 = por %p4719_p4, %p4718_p2 }
  0x94   : > { %p4721_p6 = pnand %p4720_p5, %p4714_p12 }
  0x96   : > { %4724 = shalt.err (!%p4721_p6)
}
  0x97   : > { %4491 = dma.hbm_to_vmem [thread:$0]  (!%p5134_p7), %s5186_s1, 16, %s1118_s12, %s5138_s10  }
  0x98   : > { %p5713_p1 = scmp.ne.s32.totalorder %s5712_s2, 0  ;;  %s4736_s20 = scalar_lea.vmem %s5180_s15, 16 }
  0x99   : > { %p4737_p10 = scmp.ne.s32.totalorder %s5180_s15, %s4736_s20  ;;  %s4743_s8 = scalar_lea.vmem %s5180_s15, 32 }
  0x9a   : > { %p4727_p8 = pneg %p5713_p1  ;;  %p4744_p12 = scmp.lt.s32.totalorder %s5180_s15, %s5180_s15 }
  0x9b   : > { %p4745_p2 = scmp.lt.s32.totalorder %s4743_s8, %s4736_s20 }
  0x9c   : > { %p4739_p11 = pnand %p4737_p10, %p4727_p8 }
  0x9d   : > { %p4746_p4 = por %p4745_p2, %p4744_p12 }
  0x9e   : > { %p4740_p13 = pneg %p4739_p11 }
  0xa0   : > { %p4747_p0 = pnand %p4746_p4, %p4740_p13 }
  0xa2   : > { %4750 = shalt.err (!%p4747_p0)
}
  0xa3   : > { %s5714_s17 = sld [smem:[#allocation16_spill]]  ;;  %s5221_s14 = scalar_lea.hbm %s5695_s4, %s5125_s28 }
  0xa4   : > { %s1127_s19 = scalar_lea.vmem [#allocation8], %s5122_s6  ;;  %s1125_s1 = scalar_lea.sflag [#allocation9], %s5122_s6 }
  0xa5   : > { %s1134_s10 = sshll.u32 %s1127_s19, 4  ;;  %s4751_s2 = scalar_lea.hbm %s5221_s14, 16  ;;  %s1135_s10 = int_to_ptr.vmem [resolvable:$true] %s1134_s10 }
  0xa6   : > { %p4752_p3 = scmp.ne.s32.totalorder %s5221_s14, %s4751_s2  ;;  %s4756_s12 = scalar_lea.hbm %s5695_s4, 48 }
  0xa7   : > { %p4757_p8 = scmp.lt.s32.totalorder %s5221_s14, %s5695_s4  ;;  %p4758_p10 = scmp.lt.s32.totalorder %s4756_s12, %s4751_s2 }
  0xa8   : > { %p4754_p5 = pnand %p4752_p3, %p5144_p9 }
  0xa9   : > { %4484 = dma.hbm_to_vmem [thread:$0]  (!%p5713_p1), %s5714_s17, 16, %s5180_s15, [#allocation4]  }
  0xaa   : > { %p4755_p6 = pneg %p4754_p5  ;;  %p4759_p11 = por %p4758_p10, %p4757_p8 }
  0xac   : > { %p4760_p13 = pnand %p4759_p11, %p4755_p6 }
  0xae   : > { %4763 = shalt.err (!%p4760_p13)
}
  0xaf   : > { %s4764_s28 = scalar_lea.vmem %s1135_s10, 16  ;;  %s4888_s15 = smov [#allocation8]  }
  0xb0   : > { %p4765_p1 = scmp.ne.s32.totalorder %s1135_s10, %s4764_s28  ;;  %s4769_s30 = sshll.u32 %s4888_s15, 4  ;;  %s4770_s30 = int_to_ptr.vmem [resolvable:$false] %s4769_s30 }
  0xb1   : > { %s4771_s6 = scalar_lea.vmem %s4770_s30, 32  ;;  %p4772_p4 = scmp.lt.s32.totalorder %s1135_s10, %s4770_s30 }
  0xb2   : > { %p4767_p12 = pnand %p4765_p1, %p5144_p9  ;;  %p4773_p0 = scmp.lt.s32.totalorder %s4771_s6, %s4764_s28 }
  0xb4   : > { %p4768_p2 = pneg %p4767_p12  ;;  %p4774_p3 = por %p4773_p0, %p4772_p4 }
  0xb6   : > { %p4775_p5 = pnand %p4774_p3, %p4768_p2 }
  0xb8   : > { %4778 = shalt.err (!%p4775_p5)
}
  0xb9   : > { %4494 = dma.hbm_to_vmem [thread:$0]  (!%p5134_p7), %s5221_s14, 16, %s1135_s10, %s1125_s1  }
  0xba   : > { %p5715_p6 = scmp.ne.s32.totalorder %s5711_s24, 0 }
  0xbc   : > { %1143 = sbr.rel (%p5715_p6) target bundleno = 4954 (0x135a), region = 140 }
  0xc1   : > { %p5716_p8 = scmp.ne.s32.totalorder %s5709_s13, 0 }
  0xc3   : > { %4812 = dma.done.wait (%p5716_p8), [#allocation4], 16  }
  0xc4   : > { %4814 = vsyncadd (%p5716_p8), [#allocation4], 4294967280  ;;  %s5717_s26 = sadd.s32 4294967295, %s4853_s0   ;;  %s5246_s20 = sand.u32 1, %s4829_s16  }
  0xc5   : > { %s1149_s11 = sand.u32 1, %s5717_s26   ;;  %5718 = sst [smem:[#allocation53_spill]] %s5246_s20 }
  0xc6   : > { %s1150_s7 = scalar_lea.sflag [#allocation6], %s1149_s11  ;;  %p5719_p7 = scmp.ne.s32.totalorder %s5710_s18, 0 }
  0xc8   : > { %4816 = dma.done.wait (%p5719_p7), %s1150_s7, 32  }
  0xc9   : > { %4818 = vsyncadd (%p5719_p7), %s1150_s7, 4294967264  ;;  %s1166_s24 = scalar_lea.sflag [#allocation9], %s5246_s20 }
  0xca   : > { %4820 = dma.done.wait (%p5719_p7), %s1166_s24, 16  }
  0xcb   : > { %4822 = vsyncadd (%p5719_p7), %s1166_s24, 4294967280  ;;  %s5720_s5 = sld [smem:[#allocation13_spill]]  ;;  %p1348_p9 = scmp.lt.s32.totalorder %s4841_s23, 1 }
  0xcc   : > { %s5723_s21 = sld [smem:[#allocation17_spill]]  ;;  %p1356_p10 = scmp.lt.s32.totalorder %s4837_s22, 2 }
  0xcd   : > { %s5724_s29 = sld [smem:[#allocation19_spill]]  ;;  %s5806_s23 = smov (!%p1348_p9, %s4841_s23), 1 }
  0xce   : > { %s5726_s19 = sld [smem:[#allocation21_spill]]  ;;  %s5266_s6 = sshll.u32 %s5806_s23, 3 }
  0xcf   : > { %s5728_s1 = sld [smem:[#allocation23_spill]] }
  0xd0   : > { %s5732_s18 = sld [smem:[#allocation27_spill]] }
  0xd1   : > { %s5264_s15 = scalar_select %p1356_p10, %s4837_s22, 2 }
  0xd2   : > { %5734 = sst [smem:[#allocation54_spill]] %s5266_s6  ;;  %s1351_s11 = scalar_lea.vmem %s5720_s5, %s5266_s6 }
  0xd3   : > { %s5735_s26 = sld [smem:[#allocation29_spill]]  ;;  %s4210_s13 = sshll.u32 %s5264_s15, 4 }
  0xd4   : > { %s5736_s7 = sld [smem:[#allocation30_spill]]  ;;  %s5276_s27 = scalar_lea.vmem %s5723_s21, %s4210_s13 }
  0xd5   : > { %s5737_s14 = sld [smem:[#allocation31_spill]]  ;;  %s5279_s0 = scalar_lea.vmem %s5724_s29, %s4210_s13 }
  0xd6   : > { %s5738_s8 = sld [smem:[#allocation32_spill]]  ;;  %s5284_s22 = scalar_lea.vmem %s5726_s19, %s4210_s13 }
  0xd7   : > { %s5739_s17 = sld [smem:[#allocation33_spill]]  ;;  %s5289_s4 = scalar_lea.vmem %s5728_s1, %s4210_s13 }
  0xd8   : > { %5740 = sst [smem:[#allocation55_spill]] %s5276_s27  ;;  %s5298_s20 = scalar_lea.vmem %s5732_s18, %s4210_s13 }
  0xd9   : > { %s5741_s16 = sld [smem:[#allocation34_spill]]  ;;  %s4219_s28 = sshll.u32 %s5264_s15, 6 }
  0xda   : > { %5742 = sst [smem:[#allocation56_spill]] %s5279_s0  ;;  %s1409_s9 = scalar_lea.vmem %s5736_s7, %s5264_s15 }
  0xdb   : > { %s5743_s23 = sld [smem:[#allocation35_spill]]  ;;  %s5308_s10 = scalar_lea.vmem %s5737_s14, %s4210_s13 }
  0xdc   : > { %s5744_s5 = sld [smem:[#allocation36_spill]]  ;;  %s1417_s1 = scalar_lea.vmem %s5738_s8, %s5264_s15 }
  0xdd   : > { %5745 = sst [smem:[#allocation57_spill]] %s5284_s22  ;;  %s5303_s22 = scalar_lea.vmem %s5735_s26, %s4210_s13 }
  0xde   : > { %s5746_s24 = sld [smem:[#allocation37_spill]] }
  0xdf   : > { %s5747_s6 = sld [smem:[#allocation38_spill]]  ;;  %s1425_s2 = scalar_lea.vmem %s5741_s16, %s5264_s15 }
  0xe0   : > { %5748 = sst [smem:[#allocation58_spill]] %s5289_s4  ;;  %s5313_s4 = scalar_lea.vmem %s5739_s17, %s4210_s13 }
  0xe1   : > { %s5749_s25 = sld [smem:[#allocation39_spill]]  ;;  %s1428_s21 = scalar_lea.vmem %s5743_s23, %s5264_s15 }
  0xe2   : > { %s5750_s29 = sld [smem:[#allocation54_spill]]  ;;  %s1431_s12 = scalar_lea.vmem %s5744_s5, %s5264_s15 }
  0xe3   : > { %s5751_s0 = sld [smem:[#allocation43_spill]] }
  0xe4   : > { %5752 = sst [smem:[#allocation59_spill]] %s5298_s20  ;;  %s5322_s27 = scalar_lea.vmem %s5746_s24, %s4210_s13 }
  0xe5   : > { %s1439_s3 = scalar_lea.vmem %s5747_s6, %s5264_s15  ;;  %s5753_s19 = sld [smem:[#allocation46_spill]] }
  0xe7   : > { %s5328_s18 = scalar_lea.vmem %s5749_s25, %s4219_s28 }
  0xe9   : > { %s1448_s20 = scalar_lea.vmem %s5751_s0, %s5750_s29 }
  0xeb   : > { %p4127_p11 = scmp.ne.s32.totalorder %s5753_s19, 0 }
  0xed   : > { %1453 = sbr.rel (%p4127_p11) target bundleno = 244 (0xf4), region = 160 }
  0xf2   : > { %v1454_v0 = vld [vmem:[%s1351_s11] sm:$0xff]  ;;  %vm1455_vm0 = vcmask 261120  }
  0xf3   : > { %1456 = vst.msk [vmem:[#allocation2] sm:$0xff] %vm1455_vm0, %v1454_v0 }
  0xf4 PF: > { %s5754_s8 = sld [smem:[#allocation55_spill]]  ;;  %v4889_v2 = vmov 0.0   ;;  %vm4890_vm1 = vmmov 0   ;;  %vm1483_vm2 = vcmask 261120   ;;  %vm1653_vm3 = vcmask 64512   ;;  %s4891_s14 = smov 120  }
  0xf5   : > { %s5755_s17 = sld [smem:[#allocation56_spill]]  ;;  %4291 = vmatprep.subr.bf16.mxu1 %v4889_v2  ;;  %4320 = vmatprep.subr.mxu0 %v4889_v2  ;;  %s4892_s30 = smov 112   ;;  %vm2327_vm4 = vcmask 130048   ;;  %vm2329_vm5 = vcmask 195584  }
  0xf6   : > { %s5756_s5 = sld [smem:[#allocation57_spill]]  ;;  %4295 = vmatprep.mubr.msk.bf16.mxu1 %vm4890_vm1, %v4889_v2  ;;  %4322 = vmatprep.mubr.msk.f32.mxu0 %vm4890_vm1, %v4889_v2  ;;  %s4893_s6 = smov 104  }
  0xf7   : > { %s5757_s25 = sld [smem:[#allocation20_spill]]  ;;  %s4894_s7 = smov 8  }
  0xf8   : > { %s5758_s29 = sld [smem:[#allocation18_spill]]  ;;  %s4895_s24 = smov 16  }
  0xf9   : > { %s5761_s13 = sld [smem:[#allocation22_spill]]  ;;  %s4896_s19 = smov 24  }
  0xfa   : > { %v4603_v1 = vld [vmem:[%s5754_s8 + $0x8] sm:$0xff]   ;;  %v4604_v3 = vld [vmem:[%s5754_s8] sm:$0xff]   ;;  %s5763_s11 = sld [smem:[#allocation58_spill]] }
  0xfb   : > { %4292 = vmatpush3.bf16.msra.mxu1 %v4603_v1  ;;  %v5339_v4 = vld [vmem:[#allocation2] sm:$0xff]  ;;  %v4605_v6 = vld [vmem:[%s5755_s17 + $0x8] sm:$0xff]   ;;  %s5764_s23 = sld [smem:[#allocation24_spill]] }
  0xfc   : > { %4293 = vmatprep.subr.bf16.mxu1 %v4889_v2  ;;  %v1463_v5 = vpack.c.bf16 %v5339_v4, %v5339_v4  ;;  %v4606_v7 = vld [vmem:[%s5755_s17] sm:$0xff]   ;;  %v4607_v8 = vld [vmem:[%s5756_s5 + $0x8] sm:$0xff]   ;;  %s5766_s8 = sld [smem:[#allocation14_spill]] }
  0xfd   : > { %v4608_v9 = vld [vmem:[%s5756_s5] sm:$0xff]   ;;  %s5759_s16 = scalar_lea.vmem %s5757_s25, %s5264_s15  ;;  %s5767_s17 = sld [smem:[#allocation54_spill]] }
  0xfe   : > { %v4132_v14 = vld [vmem:[%s5759_s16] ss:$0 sm:$0xff]  ;;  %s5760_s0 = scalar_lea.vmem %s5758_s29, %s5264_s15  ;;  %s5768_s5 = sld [smem:[#allocation59_spill]] }
  0xff   : > { %4294 = vmatpush3.bf16.msra.mxu1 %v4604_v3  ;;  %v4128_v16 = vld [vmem:[%s5760_s0] ss:$0 sm:$0xff]  ;;  %s5762_s26 = scalar_lea.vmem %s5761_s13, %s5264_s15  ;;  %s5770_s29 = sld [smem:[#allocation25_spill]] }
 0x100   : > { %4299 = vmatprep.subr.bf16.mxu1 %v4889_v2  ;;  %v4136_v22 = vld [vmem:[%s5762_s26] ss:$0 sm:$0xff]  ;;  %s5771_s16 = sld [smem:[#allocation26_spill]] }
 0x101   : > { %s5765_s28 = scalar_lea.vmem %s5764_s23, %s5264_s15  ;;  %s5775_s26 = sld [smem:[#allocation28_spill]] }
 0x102   : > { %4296 = vmatmul.mubr.msk.bf16.vlgmr.msra.gmra.mxu1 %vm1483_vm2, %v1463_v5 }
 0x103   : > { %4300 = vmatpush3.bf16.msra.mxu1 %v4605_v6  ;;  %4303 = vmatprep.mubr.msk.bf16.mxu1 %vm4890_vm1, %v4889_v2  ;;  %s5769_s25 = scalar_lea.vmem %s5766_s8, %s5767_s17 }
 0x104   : > { %4301 = vmatprep.subr.bf16.mxu1 %v4889_v2 }
 0x105   : > { %s5773_s0 = scalar_lea.vmem %s5770_s29, %s5264_s15 }
 0x106   : > { %s5774_s13 = scalar_lea.vmem %s5771_s16, %s5264_s15 }
 0x107   : > { %4302 = vmatpush3.bf16.msra.mxu1 %v4606_v7 }
 0x108   : > { %4307 = vmatprep.subr.bf16.mxu1 %v4889_v2 }
 0x10a   : > { %4304 = vmatmul.mubr.msk.bf16.vlgmr.msra.gmra.mxu1 %vm1483_vm2, %v1463_v5 }
 0x10b   : > { %4308 = vmatpush3.bf16.msra.mxu1 %v4607_v8  ;;  %4311 = vmatprep.mubr.msk.bf16.mxu1 %vm4890_vm1, %v4889_v2 }
 0x10c   : > { %4309 = vmatprep.subr.bf16.mxu1 %v4889_v2 }
 0x10f   : > { %4310 = vmatpush3.bf16.msra.mxu1 %v4608_v9 }
 0x110   : > { %4315 = vmatprep.subr.mxu1 %v4889_v2 }
 0x112   : > { %4312 = vmatmul.mubr.msk.bf16.vlgmr.msra.gmra.mxu1 %vm1483_vm2, %v1463_v5 }
 0x113   : > { %4317 = vmatprep.mubr.msk.f32.mxu1 %vm4890_vm1, %v4889_v2 }
 0x1c2   : > { %v1521_v10 = vpop.f32.mrf.mxu1 }
 0x1c3   : > { %v1522_v19 = vadd.f32 %v4128_v16, %v1521_v10 }
 0x1c4   : > { %v4297_v11 = vpop.f32.mrf.mxu1 }
 0x1c6   : > { %v1524_v12 = vpop.f32.mrf.mxu1 }
 0x1c8   : > { %v4298_v13 = vpop.f32.mrf.mxu1 }
 0x1ca   : > { %v1584_v15 = vpop.f32.mrf.mxu1 }
 0x1cb   : > { %v1585_v17 = vadd.f32 %v4132_v14, %v1584_v15 }
 0x1cc   : > { %v4305_v18 = vpop.f32.mrf.mxu1 }
 0x1cd   : > { %1817 = vrot.lane.b32.xlu1 %v1585_v17, %s4891_s14  ;;  %4316 = vmatpush3.xpose.msk.msra.mxu1 %vm1653_vm3, %v1585_v17 }
 0x1ce   : > { %v1587_v20 = vpop.f32.mrf.mxu1  ;;  %4330 = vmatprep.subr.mxu1 %v4889_v2 }
 0x1d0   : > { %v4306_v21 = vpop.f32.mrf.mxu1  ;;  %4318 = vmatmul.mubr.msk.f32.vlgmr.msra.gmra.mxu1 %vm1653_vm3, %v1522_v19 }
 0x1d1   : > { %1815 = vrot.lane.b32.xlu1 %v1522_v19, %s4891_s14  ;;  %4332 = vmatprep.mubr.msk.f32.mxu1 %vm4890_vm1, %v4889_v2 }
 0x1d2   : > { %v1647_v23 = vpop.f32.mrf.mxu1 }
 0x1d3   : > { %v5383_v24 = vadd.f32 %v4136_v22, %v1647_v23 }
 0x1d4   : > { %v4313_v25 = vpop.f32.mrf.mxu1 }
 0x1d5   : > { %1982 = vrot.lane.b32.xlu1 %v1522_v19, %s4892_s30  ;;  %4321 = vmatpush3.msra.mxu0 %v5383_v24  ;;  %v4609_v25 = vld [vmem:[%s5763_s11 + $0x8] sm:$0xff]  }
 0x1d6   : > { %v1650_v26 = vpop.f32.mrf.mxu1  ;;  %4325 = vmatprep.subr.mxu0 %v4889_v2 }
 0x1d8   : > { %v4314_v27 = vpop.f32.mrf.mxu1 }
 0x1d9   : > { %2150 = vrot.lane.b32.xlu1 %v1585_v17, %s4893_s6 }
 0x1dd   : > { %2148 = vrot.lane.b32.xlu1 %v1522_v19, %s4893_s6 }
 0x23f   : > { %v1818_v38 = vpop.permute.xlu1 %1817 }
 0x243   : > { %v1816_v39 = vpop.permute.xlu1 %1815 }
 0x247   : > { %v1983_v42 = vpop.permute.xlu1 %1982 }
 0x24b   : > { %v2151_v44 = vpop.permute.xlu1 %2150 }
 0x24f   : > { %v2149_v45 = vpop.permute.xlu1 %2148 }
 0x290   : > { %v1726_v28 = vpop.f32.mrf.mxu1 }
 0x291   : > { %v1730_v29 = vmul.f32 0.35355338, %v1726_v28 }
 0x292   : > { %v4319_v30 = vpop.f32.mrf.mxu1 }
 0x293   : > { %v1731_v31 = vsel %vm1653_vm3, %v1730_v29, -inf  ;;  %v4610_v30 = vld [vmem:[%s5763_s11] sm:$0xff]   ;;  %s5776_s11 = scalar_lea.vmem %s5775_s26, %s5264_s15 }
 0x294   : > { %1732 = vmax.xlane.f32.xlu0 %v1731_v31 }
 0x31d   : > { %v1733_v32 = vpop.xlane.xlu0 %1732 }
 0x31e   : > { %v1734_v33 = vsub.f32 %v1730_v29, %v1733_v32 }
 0x320   : > { %v1735_v34 = vmul.f32 1.442695, %v1734_v33 }
 0x322   : > { %4629 = vpow2.f32 %v1735_v34 }
 0x32f   : > { %v4630_v35 = vpop.eup %4629 }
 0x330   : > { %v1737_v36 = vsel %vm1653_vm3, %v4630_v35, 0.0 }
 0x331   : > { %1738 = vadd.xlane.f32.xlu0 %v1737_v36 }
 0x347   : > { %1984 = vrot.lane.b32.xlu0 %v1585_v17, %s4892_s30 }
 0x3ba   : > { %v1739_v37 = vpop.xlane.xlu0 %1738 }
 0x3bb   : > { %4631 = vrcp.f32 %v1739_v37 }
 0x3be   : > { %v1985_v43 = vpop.permute.xlu0 %1984 }
 0x3c8   : > { %v4632_v40 = vpop.eup %4631 }
 0x3c9   : > { %v1741_v41 = vmul.f32 %v4632_v40, %v4630_v35  ;;  %v4152_v40 = vld [vmem:[%s5765_s28] ss:$0 sm:$0xff] }
 0x3cb   : > { %4323 = vmatmul.mubr.msk.f32.vlgmr.msra.gmra.mxu0 %vm1653_vm3, %v1741_v41 }
 0x3cc   : > { %4326 = vmatpush3.xpose.msk.msra.mxu0 %vm1653_vm3, %v1818_v38  ;;  %4327 = vmatprep.mubr.msk.f32.mxu0 %vm4890_vm1, %v4889_v2 }
 0x3cd   : > { %4335 = vmatprep.subr.mxu0 %v4889_v2 }
 0x3cf   : > { %4328 = vmatmul.mubr.msk.f32.vlgmr.msra.gmra.mxu0 %vm1653_vm3, %v1816_v39 }
 0x3d0   : > { %4336 = vmatpush3.xpose.msk.msra.mxu0 %vm1653_vm3, %v1985_v43  ;;  %4337 = vmatprep.mubr.msk.f32.mxu0 %vm4890_vm1, %v4889_v2 }
 0x3d1   : > { %4345 = vmatprep.subr.mxu0 %v4889_v2 }
 0x3d3   : > { %4338 = vmatmul.mubr.msk.f32.vlgmr.msra.gmra.mxu0 %vm1653_vm3, %v1983_v42 }
 0x3d4   : > { %4346 = vmatpush3.xpose.msk.msra.mxu0 %vm1653_vm3, %v2151_v44  ;;  %4347 = vmatprep.mubr.msk.f32.mxu0 %vm4890_vm1, %v4889_v2 }
 0x3d5   : > { %4355 = vmatprep.subr.bf16.mxu0 %v4889_v2 }
 0x3d7   : > { %4348 = vmatmul.mubr.msk.f32.vlgmr.msra.gmra.mxu0 %vm1653_vm3, %v2149_v45 }
 0x3d8   : > { %4359 = vmatprep.mubr.msk.bf16.mxu0 %vm4890_vm1, %v4889_v2  ;;  %4356 = vmatpush3.bf16.msra.mxu0 %v4609_v25 }
 0x3d9   : > { %4357 = vmatprep.subr.bf16.mxu0 %v4889_v2 }
 0x3dc   : > { %4358 = vmatpush3.bf16.msra.mxu0 %v4610_v30 }
 0x3dd   : > { %4371 = vmatprep.subr.bf16.mxu0 %v4889_v2 }
 0x48b   : > { %v5408_v46 = vpop.f32.mrf.mxu0 }
 0x48d   : > { %v4324_v47 = vpop.f32.mrf.mxu0 }
 0x48f   : > { %v1889_v48 = vpop.f32.mrf.mxu0 }
 0x490   : > { %v1893_v49 = vmul.f32 0.35355338, %v1889_v48 }
 0x491   : > { %v4329_v50 = vpop.f32.mrf.mxu0 }
 0x492   : > { %v1894_v51 = vsel %vm1653_vm3, %v1893_v49, -inf }
 0x493   : > { %1895 = vmax.xlane.f32.xlu1 %v1894_v51  ;;  %v2056_v52 = vpop.f32.mrf.mxu0 }
 0x494   : > { %v2060_v53 = vmul.f32 0.35355338, %v2056_v52 }
 0x495   : > { %v4339_v54 = vpop.f32.mrf.mxu0 }
 0x496   : > { %v2061_v55 = vsel %vm1653_vm3, %v2060_v53, -inf  ;;  %v1458_v54 = vld [vmem:[%s5769_s25] sm:$0xff] }
 0x497   : > { %2062 = vmax.xlane.f32.xlu0 %v2061_v55  ;;  %v2222_v56 = vpop.f32.mrf.mxu0  ;;  %v2500_v55 = vpack.c.bf16 %v1458_v54, %v1458_v54 }
 0x498   : > { %v2226_v57 = vmul.f32 0.35355338, %v2222_v56  ;;  %v4613_v56 = vld [vmem:[%s5768_s5 + $0x8] sm:$0xff]  }
 0x499   : > { %v4349_v58 = vpop.f32.mrf.mxu0 }
 0x49a   : > { %v2227_v59 = vsel %vm1653_vm3, %v2226_v57, -inf }
 0x49b   : > { %2228 = vmax.xlane.f32.xlu1 %v2227_v59 }
 0x51c   : > { %v1896_v60 = vpop.xlane.xlu1 %1895 }
 0x51d   : > { %v1897_v61 = vsub.f32 %v1893_v49, %v1896_v60 }
 0x51f   : > { %v1898_v62 = vmul.f32 1.442695, %v1897_v61 }
 0x520   : > { %v2063_v63 = vpop.xlane.xlu0 %2062 }
 0x521   : > { %4633 = vpow2.f32 %v1898_v62  ;;  %v2064_v0 = vsub.f32 %v2060_v53, %v2063_v63  ;;  %v4611_v53 = vld [vmem:[%s5303_s22 + $0x8] sm:$0xff]   ;;  %v4156_v62 = vld [vmem:[%s5773_s0] ss:$0 sm:$0xff] }
 0x523   : > { %v2065_v1 = vmul.f32 1.442695, %v2064_v0  ;;  %v4157_v0 = vld [vmem:[%s5774_s13] ss:$0 sm:$0xff] }
 0x524   : > { %v2229_v8 = vpop.xlane.xlu1 %2228 }
 0x525   : > { %4635 = vpow2.f32 %v2065_v1  ;;  %v2230_v9 = vsub.f32 %v2226_v57, %v2229_v8  ;;  %v4614_v57 = vld [vmem:[%s5768_s5] sm:$0xff]  }
 0x527   : > { %v2231_v10 = vmul.f32 1.442695, %v2230_v9 }
 0x529   : > { %4637 = vpow2.f32 %v2231_v10 }
 0x52e   : > { %v4634_v3 = vpop.eup %4633 }
 0x52f   : > { %v1900_v5 = vsel %vm1653_vm3, %v4634_v3, 0.0 }
 0x530   : > { %1901 = vadd.xlane.f32.xlu1 %v1900_v5 }
 0x532   : > { %v4636_v6 = vpop.eup %4635 }
 0x533   : > { %v2067_v7 = vsel %vm1653_vm3, %v4636_v6, 0.0 }
 0x534   : > { %2068 = vadd.xlane.f32.xlu0 %v2067_v7 }
 0x536   : > { %v4638_v11 = vpop.eup %4637 }
 0x537   : > { %v2233_v12 = vsel %vm1653_vm3, %v4638_v11, 0.0 }
 0x541   : > { %2072 = vrot.lane.b32.xlu1 %v5383_v24, %s4892_s30 }
 0x54a   : > { %1906 = vrot.lane.b32.xlu0 %v5383_v24, %s4891_s14 }
 0x565   : > { %2234 = vadd.xlane.f32.xlu1 %v2233_v12  ;;  %v4158_v12 = vld [vmem:[%s5776_s11] ss:$0 sm:$0xff] }
 0x576   : > { %2238 = vrot.lane.b32.xlu1 %v5383_v24, %s4893_s6 }
 0x5b9   : > { %v1902_v13 = vpop.xlane.xlu1 %1901 }
 0x5ba   : > { %4639 = vrcp.f32 %v1902_v13 }
 0x5bd   : > { %v2069_v14 = vpop.xlane.xlu0 %2068  ;;  %v2073_v18 = vpop.permute.xlu1 %2072 }
 0x5be   : > { %4641 = vrcp.f32 %v2069_v14 }
 0x5c1   : > { %v1907_v15 = vpop.permute.xlu0 %1906 }
 0x5c2   : > { %4331 = vmatpush3.msra.mxu1 %v1907_v15 }
 0x5c3   : > { %4340 = vmatprep.subr.mxu1 %v4889_v2 }
 0x5c7   : > { %v4640_v16 = vpop.eup %4639 }
 0x5c8   : > { %v1904_v17 = vmul.f32 %v4640_v16, %v4634_v3 }
 0x5ca   : > { %4333 = vmatmul.mubr.msk.f32.vlgmr.msra.gmra.mxu1 %vm1653_vm3, %v1904_v17 }
 0x5cb   : > { %v4642_v19 = vpop.eup %4641  ;;  %4341 = vmatpush3.msra.mxu1 %v2073_v18  ;;  %4342 = vmatprep.mubr.msk.f32.mxu1 %vm4890_vm1, %v4889_v2 }
 0x5cc   : > { %v2071_v20 = vmul.f32 %v4642_v19, %v4636_v6  ;;  %4350 = vmatprep.subr.mxu1 %v4889_v2  ;;  %v4162_v6 = vld [vmem:[%s1409_s9] ss:$0 sm:$0xff]  ;;  %v4615_v19 = vld [vmem:[%s5308_s10 + $0x8] sm:$0xff]  }
 0x5ce   : > { %4343 = vmatmul.mubr.msk.f32.vlgmr.msra.gmra.mxu1 %vm1653_vm3, %v2071_v20  ;;  %v4616_v20 = vld [vmem:[%s5308_s10] sm:$0xff]  }
 0x5cf   : > { %4352 = vmatprep.mubr.msk.f32.mxu1 %vm4890_vm1, %v4889_v2 }
 0x5ee   : > { %v2235_v21 = vpop.xlane.xlu1 %2234 }
 0x5ef   : > { %4643 = vrcp.f32 %v2235_v21 }
 0x5f2   : > { %v2239_v22 = vpop.permute.xlu1 %2238 }
 0x5f3   : > { %4351 = vmatpush3.msra.mxu1 %v2239_v22 }
 0x5f4   : > { %4363 = vmatprep.subr.bf16.mxu1 %v4889_v2 }
 0x5fc   : > { %v4644_v23 = vpop.eup %4643 }
 0x5fd   : > { %v2237_v24 = vmul.f32 %v4644_v23, %v4638_v11 }
 0x5ff   : > { %4353 = vmatmul.mubr.msk.f32.vlgmr.msra.gmra.mxu1 %vm1653_vm3, %v2237_v24 }
 0x600   : > { %4367 = vmatprep.mubr.msk.bf16.mxu1 %vm4890_vm1, %v4889_v2  ;;  %4364 = vmatpush3.bf16.msra.mxu1 %v4613_v56 }
 0x601   : > { %4365 = vmatprep.subr.bf16.mxu1 %v4889_v2 }
 0x604   : > { %4366 = vmatpush3.bf16.msra.mxu1 %v4614_v57 }
 0x605   : > { %4379 = vmatprep.subr.bf16.mxu1 %v4889_v2 }
 0x68a   : > { %v1978_v26 = vpop.f32.mrf.mxu1 }
 0x68b   : > { %2315 = vrot.lane.b32.xlu0 %v1978_v26, %s4894_s7 }
 0x68c   : > { %v4334_v27 = vpop.f32.mrf.mxu1 }
 0x68e   : > { %v2144_v28 = vpop.f32.mrf.mxu1 }
 0x68f   : > { %2319 = vrot.lane.b32.xlu1 %v2144_v28, %s4895_s24 }
 0x690   : > { %v4344_v29 = vpop.f32.mrf.mxu1 }
 0x6bf   : > { %v2310_v31 = vpop.f32.mrf.mxu1 }
 0x6c0   : > { %2323 = vrot.lane.b32.xlu0 %v2310_v31, %s4896_s19 }
 0x6c1   : > { %v4354_v32 = vpop.f32.mrf.mxu1 }
 0x6fd   : > { %v2316_v33 = vpop.permute.xlu0 %2315 }
 0x6fe   : > { %v2326_v35 = vsel %vm1653_vm3, %v5408_v46, %v2316_v33 }
 0x701   : > { %v2320_v34 = vpop.permute.xlu1 %2319 }
 0x702   : > { %v2328_v36 = vsel %vm2327_vm4, %v2326_v35, %v2320_v34 }
 0x732   : > { %v2324_v37 = vpop.permute.xlu0 %2323 }
 0x733   : > { %v2330_v38 = vsel %vm2329_vm5, %v2328_v36, %v2324_v37 }
 0x734   : > { %v2335_v39 = vpack.c.bf16 %v2330_v38, %v2330_v38 }
 0x736   : > { %4360 = vmatmul.mubr.msk.bf16.vlgmr.msra.gmra.mxu0 %vm1483_vm2, %v2335_v39 }
 0x737   : > { %4375 = vmatprep.mubr.msk.bf16.mxu0 %vm4890_vm1, %v4889_v2  ;;  %4372 = vmatpush3.bf16.msra.mxu0 %v4611_v53 }
 0x738   : > { %4373 = vmatprep.subr.bf16.mxu0 %v4889_v2 }
 0x7f6   : > { %v2392_v41 = vpop.f32.mrf.mxu0 }
 0x7f7   : > { %v2393_v42 = vadd.f32 %v4152_v40, %v2392_v41 }
 0x7f8   : > { %v4361_v43 = vpop.f32.mrf.mxu0 }
 0x7f9   : > { %v2398_v44 = vadd.f32 %v2393_v42, %v5339_v4  ;;  %v4612_v4 = vld [vmem:[%s5303_s22] sm:$0xff]  }
 0x7fa   : > { %v2395_v45 = vpop.f32.mrf.mxu0  ;;  %4374 = vmatpush3.bf16.msra.mxu0 %v4612_v4 }
 0x7fb   : > { %v2401_v46 = vsel %vm1483_vm2, %v2398_v44, 0.0  ;;  %4387 = vmatprep.subr.mxu0 %v4889_v2  ;;  %v4166_v45 = vld [vmem:[%s1417_s1] ss:$0 sm:$0xff] }
 0x7fc   : > { %2402 = vadd.xlane.f32.xlu1 %v2401_v46  ;;  %v4362_v47 = vpop.f32.mrf.mxu0 }
 0x7fd   : > { %4376 = vmatmul.mubr.msk.bf16.vlgmr.msra.gmra.mxu0 %vm1483_vm2, %v2500_v55 }
 0x7fe   : > { %4389 = vmatprep.mubr.msk.f32.mxu0 %vm4890_vm1, %v4889_v2 }
 0x885   : > { %v2403_v48 = vpop.xlane.xlu1 %2402 }
 0x886   : > { %v2405_v49 = vmul.f32 0.03125, %v2403_v48 }
 0x888   : > { %v2406_v50 = vsub.f32 %v2398_v44, %v2405_v49 }
 0x88a   : > { %v2407_v51 = vmul.f32 %v2406_v50, %v2406_v50 }
 0x88c   : > { %v2408_v52 = vsel %vm1483_vm2, %v2407_v51, 0.0 }
 0x88d   : > { %2409 = vadd.xlane.f32.xlu0 %v2408_v52 }
 0x8bd   : > { %v2557_v7 = vpop.f32.mrf.mxu0 }
 0x8be   : > { %v2558_v8 = vadd.f32 %v4162_v6, %v2557_v7 }
 0x8bf   : > { %v4377_v9 = vpop.f32.mrf.mxu0 }
 0x8c0   : > { %2789 = vrot.lane.b32.xlu0 %v2558_v8, %s4891_s14  ;;  %4388 = vmatpush3.xpose.msk.msra.mxu0 %vm1653_vm3, %v2558_v8 }
 0x8c1   : > { %v2560_v10 = vpop.f32.mrf.mxu0  ;;  %4397 = vmatprep.subr.mxu0 %v4889_v2 }
 0x8c3   : > { %v4378_v11 = vpop.f32.mrf.mxu0 }
 0x916   : > { %v2410_v58 = vpop.xlane.xlu0 %2409 }
 0x917   : > { %v2411_v59 = vmul.f32 0.03125, %v2410_v58 }
 0x919   : > { %v2412_v60 = vadd.f32 1e-05, %v2411_v59 }
 0x91b   : > { %4645 = vrsqrt.f32 %v2412_v60 }
 0x928   : > { %v4646_v61 = vpop.eup %4645 }
 0x929   : > { %v2414_v63 = vmul.f32 %v4646_v61, %v2406_v50 }
 0x92b   : > { %v2421_v1 = vmul.f32 %v4156_v62, %v2414_v63 }
 0x92d   : > { %v5474_v3 = vadd.f32 %v4157_v0, %v2421_v1 }
 0x92f   : > { %v2433_v5 = vpack.c.bf16 %v5474_v3, %v5474_v3 }
 0x931   : > { %4368 = vmatmul.mubr.msk.bf16.vlgmr.msra.gmra.mxu1 %vm1483_vm2, %v2433_v5 }
 0x932   : > { %4383 = vmatprep.mubr.msk.bf16.mxu1 %vm4890_vm1, %v4889_v2  ;;  %v2790_v16 = vpop.permute.xlu0 %2789  ;;  %4380 = vmatpush3.bf16.msra.mxu1 %v4615_v19 }
 0x933   : > { %4381 = vmatprep.subr.bf16.mxu1 %v4889_v2 }
 0x936   : > { %4382 = vmatpush3.bf16.msra.mxu1 %v4616_v20 }
 0x937   : > { %4392 = vmatprep.subr.mxu1 %v4889_v2 }
 0x939   : > { %4384 = vmatmul.mubr.msk.bf16.vlgmr.msra.gmra.mxu1 %vm1483_vm2, %v2500_v55 }
 0x93a   : > { %4394 = vmatprep.mubr.msk.f32.mxu1 %vm4890_vm1, %v4889_v2 }
 0x9f1   : > { %v2490_v13 = vpop.f32.mrf.mxu1 }
 0x9f2   : > { %v2491_v14 = vadd.f32 %v4158_v12, %v2490_v13 }
 0x9f3   : > { %v4369_v15 = vpop.f32.mrf.mxu1 }
 0x9f4   : > { %2954 = vrot.lane.b32.xlu0 %v2491_v14, %s4892_s30  ;;  %2787 = vrot.lane.b32.xlu1 %v2491_v14, %s4891_s14 }
 0x9f5   : > { %4390 = vmatmul.mubr.msk.f32.vlgmr.msra.gmra.mxu0 %vm1653_vm3, %v2491_v14  ;;  %v2493_v17 = vpop.f32.mrf.mxu1 }
 0x9f6   : > { %4398 = vmatpush3.xpose.msk.msra.mxu0 %vm1653_vm3, %v2790_v16  ;;  %4399 = vmatprep.mubr.msk.f32.mxu0 %vm4890_vm1, %v4889_v2 }
 0x9f7   : > { %v4370_v18 = vpop.f32.mrf.mxu1  ;;  %4407 = vmatprep.subr.mxu0 %v4889_v2 }
 0x9f8   : > { %3120 = vrot.lane.b32.xlu0 %v2491_v14, %s4893_s6  ;;  %2956 = vrot.lane.b32.xlu1 %v2558_v8, %s4892_s30 }
 0x9f9   : > { %v2620_v46 = vpop.f32.mrf.mxu1 }
 0x9fa   : > { %v2621_v47 = vadd.f32 %v4166_v45, %v2620_v46 }
 0x9fb   : > { %v4385_v48 = vpop.f32.mrf.mxu1 }
 0x9fc   : > { %3122 = vrot.lane.b32.xlu1 %v2558_v8, %s4893_s6  ;;  %4393 = vmatpush3.msra.mxu1 %v2621_v47 }
 0x9fd   : > { %v2623_v49 = vpop.f32.mrf.mxu1  ;;  %4402 = vmatprep.subr.mxu1 %v4889_v2 }
 0x9ff   : > { %v4386_v52 = vpop.f32.mrf.mxu1 }
 0xa00   : > { %v4621_v52 = vld [vmem:[%s5328_s18 + $0x38] sm:$0xff]  }
 0xa66   : > { %v2788_v21 = vpop.permute.xlu1 %2787  ;;  %v2955_v23 = vpop.permute.xlu0 %2954 }
 0xa67   : > { %4400 = vmatmul.mubr.msk.f32.vlgmr.msra.gmra.mxu0 %vm1653_vm3, %v2788_v21 }
 0xa68   : > { %4409 = vmatprep.mubr.msk.f32.mxu0 %vm4890_vm1, %v4889_v2 }
 0xa6a   : > { %v2957_v22 = vpop.permute.xlu1 %2956  ;;  %v3121_v25 = vpop.permute.xlu0 %3120 }
 0xa6b   : > { %4408 = vmatpush3.xpose.msk.msra.mxu0 %vm1653_vm3, %v2957_v22 }
 0xa6c   : > { %4417 = vmatprep.subr.mxu0 %v4889_v2 }
 0xa6e   : > { %v3123_v24 = vpop.permute.xlu1 %3122  ;;  %4410 = vmatmul.mubr.msk.f32.vlgmr.msra.gmra.mxu0 %vm1653_vm3, %v2955_v23  ;;  %v4617_v23 = vld [vmem:[%s5313_s4 + $0x8] sm:$0xff]  }
 0xa6f   : > { %4418 = vmatpush3.xpose.msk.msra.mxu0 %vm1653_vm3, %v3123_v24  ;;  %4419 = vmatprep.mubr.msk.f32.mxu0 %vm4890_vm1, %v4889_v2 }
 0xa70   : > { %4427 = vmatprep.subr.bf16.mxu0 %v4889_v2 }
 0xa72   : > { %4420 = vmatmul.mubr.msk.f32.vlgmr.msra.gmra.mxu0 %vm1653_vm3, %v3121_v25 }
 0xa73   : > { %4431 = vmatprep.mubr.msk.bf16.mxu0 %vm4890_vm1, %v4889_v2  ;;  %4428 = vmatpush3.bf16.msra.mxu0 %v4617_v23 }
 0xa74   : > { %4429 = vmatprep.subr.bf16.mxu0 %v4889_v2 }
 0xab5   : > { %v2698_v26 = vpop.f32.mrf.mxu0 }
 0xab6   : > { %v2702_v27 = vmul.f32 0.35355338, %v2698_v26 }
 0xab7   : > { %v4391_v28 = vpop.f32.mrf.mxu0 }
 0xab8   : > { %v2703_v29 = vsel %vm1653_vm3, %v2702_v27, -inf  ;;  %v4618_v28 = vld [vmem:[%s5313_s4] sm:$0xff]  }
 0xab9   : > { %2704 = vmax.xlane.f32.xlu1 %v2703_v29  ;;  %4430 = vmatpush3.bf16.msra.mxu0 %v4618_v28 }
 0xaba   : > { %4443 = vmatprep.subr.bf16.mxu0 %v4889_v2 }
 0xb27   : > { %v2861_v30 = vpop.f32.mrf.mxu0 }
 0xb28   : > { %v2865_v31 = vmul.f32 0.35355338, %v2861_v30 }
 0xb29   : > { %v4401_v32 = vpop.f32.mrf.mxu0 }
 0xb2a   : > { %v2866_v33 = vsel %vm1653_vm3, %v2865_v31, -inf }
 0xb2b   : > { %2867 = vmax.xlane.f32.xlu0 %v2866_v33 }
 0xb2e   : > { %v3028_v34 = vpop.f32.mrf.mxu0 }
 0xb2f   : > { %v3032_v35 = vmul.f32 0.35355338, %v3028_v34 }
 0xb30   : > { %v4411_v36 = vpop.f32.mrf.mxu0 }
 0xb31   : > { %v3033_v37 = vsel %vm1653_vm3, %v3032_v35, -inf }
 0xb32   : > { %3034 = vmax.xlane.f32.xlu0 %v3033_v37  ;;  %v3194_v38 = vpop.f32.mrf.mxu0 }
 0xb33   : > { %v3198_v39 = vmul.f32 0.35355338, %v3194_v38  ;;  %v4182_v38 = vld [vmem:[%s1425_s2] ss:$0 sm:$0xff]  ;;  %s5782_s2 = sld [smem:[#allocation53_spill]] }
 0xb34   : > { %v4421_v40 = vpop.f32.mrf.mxu0 }
 0xb35   : > { %v3199_v41 = vsel %vm1653_vm3, %v3198_v39, -inf }
 0xb36   : > { %3200 = vmax.xlane.f32.xlu1 %v3199_v41 }
 0xb39   : > { %s5785_s15 = scalar_lea.vmem [#allocation8], %s5782_s2 }
 0xb42   : > { %v2705_v42 = vpop.xlane.xlu1 %2704 }
 0xb43   : > { %v2706_v43 = vsub.f32 %v2702_v27, %v2705_v42 }
 0xb45   : > { %v2707_v44 = vmul.f32 1.442695, %v2706_v43 }
 0xb47   : > { %4647 = vpow2.f32 %v2707_v44 }
 0xb54   : > { %v4648_v50 = vpop.eup %4647 }
 0xb55   : > { %v2709_v51 = vsel %vm1653_vm3, %v4648_v50, 0.0 }
 0xb56   : > { %2710 = vadd.xlane.f32.xlu0 %v2709_v51  ;;  %v4619_v51 = vld [vmem:[%s5322_s27 + $0x8] sm:$0xff]  }
 0xbb4   : > { %v2868_v53 = vpop.xlane.xlu0 %2867 }
 0xbb5   : > { %v2869_v4 = vsub.f32 %v2865_v31, %v2868_v53  ;;  %v4622_v53 = vld [vmem:[%s5328_s18 + $0x30] sm:$0xff]  }
 0xbb7   : > { %v2870_v54 = vmul.f32 1.442695, %v2869_v4  ;;  %v4623_v4 = vld [vmem:[%s5328_s18 + $0x28] sm:$0xff]  }
 0xbb9   : > { %4649 = vpow2.f32 %v2870_v54  ;;  %v4624_v54 = vld [vmem:[%s5328_s18 + $0x20] sm:$0xff]  }
 0xbbb   : > { %v3035_v55 = vpop.xlane.xlu0 %3034 }
 0xbbc   : > { %v3036_v56 = vsub.f32 %v3032_v35, %v3035_v55  ;;  %v4625_v55 = vld [vmem:[%s5328_s18 + $0x18] sm:$0xff]  }
 0xbbe   : > { %v3037_v57 = vmul.f32 1.442695, %v3036_v56  ;;  %v4626_v56 = vld [vmem:[%s5328_s18 + $0x10] sm:$0xff]  }
 0xbbf   : > { %v3201_v63 = vpop.xlane.xlu1 %3200 }
 0xbc0   : > { %4651 = vpow2.f32 %v3037_v57  ;;  %v3202_v0 = vsub.f32 %v3198_v39, %v3201_v63  ;;  %v4187_v63 = vld [vmem:[%s1431_s12] ss:$0 sm:$0xff]  ;;  %s5786_s12 = sld [smem:[#allocation46_spill]] }
 0xbc2   : > { %v3203_v1 = vmul.f32 1.442695, %v3202_v0 }
 0xbc6   : > { %v4650_v58 = vpop.eup %4649  ;;  %p4203_p13 = scmp.ne.s32.totalorder %s5786_s12, 2 }
 0xbc7   : > { %v2872_v59 = vsel %vm1653_vm3, %v4650_v58, 0.0 }
 0xbc8   : > { %2873 = vadd.xlane.f32.xlu1 %v2872_v59 }
 0xbcd   : > { %v4652_v60 = vpop.eup %4651 }
 0xbce   : > { %v3039_v61 = vsel %vm1653_vm3, %v4652_v60, 0.0 }
 0xbcf   : > { %3040 = vadd.xlane.f32.xlu0 %v3039_v61  ;;  %v4186_v61 = vld [vmem:[%s1428_s21] ss:$0 sm:$0xff]  ;;  %s5783_s21 = scalar_lea.vmem [#allocation5], %s5782_s2 }
 0xbd9   : > { %3044 = vrot.lane.b32.xlu1 %v2621_v47, %s4892_s30 }
 0xbdf   : > { %v2711_v62 = vpop.xlane.xlu0 %2710 }
 0xbe0   : > { %4653 = vrcp.f32 %v2711_v62 }
 0xbe1   : > { %4655 = vpow2.f32 %v3203_v1 }
 0xbe5   : > { %2878 = vrot.lane.b32.xlu0 %v2621_v47, %s4891_s14 }
 0xbed   : > { %v4654_v5 = vpop.eup %4653 }
 0xbee   : > { %v2713_v6 = vmul.f32 %v4654_v5, %v4648_v50  ;;  %v4656_v7 = vpop.eup %4655 }
 0xbef   : > { %v3205_v8 = vsel %vm1653_vm3, %v4656_v7, 0.0 }
 0xbf0   : > { %4395 = vmatmul.mubr.msk.f32.vlgmr.msra.gmra.mxu1 %vm1653_vm3, %v2713_v6  ;;  %v4627_v6 = vld [vmem:[%s5328_s18 + $0x8] sm:$0xff]  }
 0xbf1   : > { %4404 = vmatprep.mubr.msk.f32.mxu1 %vm4890_vm1, %v4889_v2 }
 0xbfd   : > { %3206 = vadd.xlane.f32.xlu1 %v3205_v8  ;;  %v4188_v8 = vld [vmem:[%s1439_s3] ss:$0 sm:$0xff]  ;;  %s5784_s3 = scalar_lea.vmem [#allocation7], %s5782_s2 }
 0xc0e   : > { %3210 = vrot.lane.b32.xlu1 %v2621_v47, %s4893_s6 }
 0xc51   : > { %v2874_v9 = vpop.xlane.xlu1 %2873 }
 0xc52   : > { %4657 = vrcp.f32 %v2874_v9 }
 0xc55   : > { %v3045_v14 = vpop.permute.xlu1 %3044 }
 0xc58   : > { %v3041_v10 = vpop.xlane.xlu0 %3040 }
 0xc59   : > { %4659 = vrcp.f32 %v3041_v10 }
 0xc5c   : > { %v2879_v11 = vpop.permute.xlu0 %2878 }
 0xc5d   : > { %4403 = vmatpush3.msra.mxu1 %v2879_v11 }
 0xc5e   : > { %4412 = vmatprep.subr.mxu1 %v4889_v2 }
 0xc5f   : > { %v4658_v12 = vpop.eup %4657 }
 0xc60   : > { %v2876_v13 = vmul.f32 %v4658_v12, %v4650_v58 }
 0xc62   : > { %4405 = vmatmul.mubr.msk.f32.vlgmr.msra.gmra.mxu1 %vm1653_vm3, %v2876_v13 }
 0xc63   : > { %4413 = vmatpush3.msra.mxu1 %v3045_v14  ;;  %4414 = vmatprep.mubr.msk.f32.mxu1 %vm4890_vm1, %v4889_v2 }
 0xc64   : > { %4422 = vmatprep.subr.mxu1 %v4889_v2 }
 0xc66   : > { %v4660_v15 = vpop.eup %4659 }
 0xc67   : > { %v3043_v16 = vmul.f32 %v4660_v15, %v4652_v60 }
 0xc69   : > { %4415 = vmatmul.mubr.msk.f32.vlgmr.msra.gmra.mxu1 %vm1653_vm3, %v3043_v16  ;;  %v4192_v16 = vld [vmem:[%s5783_s21] ss:$0 sm:$0xff] }
 0xc6a   : > { %4424 = vmatprep.mubr.msk.f32.mxu1 %vm4890_vm1, %v4889_v2 }
 0xc86   : > { %v3207_v17 = vpop.xlane.xlu1 %3206 }
 0xc87   : > { %4661 = vrcp.f32 %v3207_v17 }
 0xc8a   : > { %v3211_v18 = vpop.permute.xlu1 %3210 }
 0xc8b   : > { %4423 = vmatpush3.msra.mxu1 %v3211_v18 }
 0xc8c   : > { %4435 = vmatprep.subr.bf16.mxu1 %v4889_v2 }
 0xc94   : > { %v4662_v19 = vpop.eup %4661 }
 0xc95   : > { %v3209_v20 = vmul.f32 %v4662_v19, %v4656_v7  ;;  %v4628_v7 = vld [vmem:[%s5328_s18] sm:$0xff]   ;;  %s5787_s18 = sld [smem:[#allocation15_spill]] (!%p4203_p13) }
 0xc97   : > { %4425 = vmatmul.mubr.msk.f32.vlgmr.msra.gmra.mxu1 %vm1653_vm3, %v3209_v20 }
 0xc98   : > { %4439 = vmatprep.mubr.msk.bf16.mxu1 %vm4890_vm1, %v4889_v2  ;;  %4436 = vmatpush3.bf16.msra.mxu1 %v4619_v51 }
 0xc99   : > { %4437 = vmatprep.subr.bf16.mxu1 %v4889_v2 }
 0xc9b   : > { %s5788_s14 = smov (!%p4203_p13), %s5787_s18 }
 0xcb0   : > { %v2783_v21 = vpop.f32.mrf.mxu1 }
 0xcb2   : > { %v4396_v22 = vpop.f32.mrf.mxu1 }
 0xd22   : > { %v2950_v24 = vpop.f32.mrf.mxu1 }
 0xd23   : > { %3287 = vrot.lane.b32.xlu0 %v2950_v24, %s4894_s7 }
 0xd24   : > { %v4406_v25 = vpop.f32.mrf.mxu1 }
 0xd29   : > { %v3116_v26 = vpop.f32.mrf.mxu1 }
 0xd2a   : > { %3291 = vrot.lane.b32.xlu1 %v3116_v26, %s4895_s24 }
 0xd2b   : > { %v4416_v27 = vpop.f32.mrf.mxu1 }
 0xd57   : > { %v3282_v29 = vpop.f32.mrf.mxu1 }
 0xd58   : > { %3295 = vrot.lane.b32.xlu0 %v3282_v29, %s4896_s19 }
 0xd59   : > { %v4426_v30 = vpop.f32.mrf.mxu1 }
 0xd95   : > { %v3288_v31 = vpop.permute.xlu0 %3287 }
 0xd96   : > { %v3298_v33 = vsel %vm1653_vm3, %v2783_v21, %v3288_v31 }
 0xd9c   : > { %v3292_v32 = vpop.permute.xlu1 %3291 }
 0xd9d   : > { %v3299_v34 = vsel %vm2327_vm4, %v3298_v33, %v3292_v32  ;;  %v4201_v32 = vld [vmem:[%s5784_s3] ss:$0 sm:$0xff] }
 0xdca   : > { %v3296_v35 = vpop.permute.xlu0 %3295 }
 0xdcb   : > { %v3300_v36 = vsel %vm2329_vm5, %v3299_v34, %v3296_v35  ;;  %v4202_v34 = vld [vmem:[%s5785_s15] ss:$0 sm:$0xff] }
 0xdcc   : > { %v3305_v37 = vpack.c.bf16 %v3300_v36, %v3300_v36 }
 0xdce   : > { %4432 = vmatmul.mubr.msk.bf16.vlgmr.msra.gmra.mxu0 %vm1483_vm2, %v3305_v37 }
 0xdcf   : > { %4459 = vmatprep.mubr.msk.bf16.mxu0 %vm4890_vm1, %v4889_v2  ;;  %4444 = vmatpush3.bf16.msra.mxu0 %v4621_v52 }
 0xdd0   : > { %4445 = vmatprep.subr.bf16.mxu0 %v4889_v2 }
 0xdd3   : > { %4446 = vmatpush3.bf16.msra.mxu0 %v4622_v53 }
 0xdd4   : > { %4447 = vmatprep.subr.bf16.mxu0 %v4889_v2 }
 0xdd7   : > { %4448 = vmatpush3.bf16.msra.mxu0 %v4623_v4 }
 0xdd8   : > { %4449 = vmatprep.subr.bf16.mxu0 %v4889_v2 }
 0xddb   : > { %4450 = vmatpush3.bf16.msra.mxu0 %v4624_v54 }
 0xddc   : > { %4451 = vmatprep.subr.bf16.mxu0 %v4889_v2 }
 0xddf   : > { %4452 = vmatpush3.bf16.msra.mxu0 %v4625_v55 }
 0xde0   : > { %4453 = vmatprep.subr.bf16.mxu0 %v4889_v2 }
 0xde3   : > { %4454 = vmatpush3.bf16.msra.mxu0 %v4626_v56 }
 0xde4   : > { %4455 = vmatprep.subr.bf16.mxu0 %v4889_v2 }
 0xde7   : > { %4456 = vmatpush3.bf16.msra.mxu0 %v4627_v6 }
 0xde8   : > { %4457 = vmatprep.subr.bf16.mxu0 %v4889_v2 }
 0xdeb   : > { %4458 = vmatpush3.bf16.msra.mxu0 %v4628_v7 }
 0xe8e   : > { %v3362_v39 = vpop.f32.mrf.mxu0 }
 0xe8f   : > { %v3363_v40 = vadd.f32 %v4182_v38, %v3362_v39 }
 0xe90   : > { %v4433_v41 = vpop.f32.mrf.mxu0 }
 0xe91   : > { %v3368_v42 = vadd.f32 %v3363_v40, %v5474_v3  ;;  %v4620_v3 = vld [vmem:[%s5322_s27] sm:$0xff]  }
 0xe92   : > { %v3365_v43 = vpop.f32.mrf.mxu0  ;;  %4438 = vmatpush3.bf16.msra.mxu1 %v4620_v3 }
 0xe93   : > { %v3371_v44 = vsel %vm1483_vm2, %v3368_v42, 0.0 }
 0xe94   : > { %3372 = vadd.xlane.f32.xlu1 %v3371_v44  ;;  %v4434_v45 = vpop.f32.mrf.mxu0 }
 0xf1d   : > { %v3373_v46 = vpop.xlane.xlu1 %3372 }
 0xf1e   : > { %v3374_v47 = vmul.f32 0.03125, %v3373_v46 }
 0xf20   : > { %v3375_v48 = vsub.f32 %v3368_v42, %v3374_v47 }
 0xf22   : > { %v3376_v49 = vmul.f32 %v3375_v48, %v3375_v48 }
 0xf24   : > { %v3377_v50 = vsel %vm1483_vm2, %v3376_v49, 0.0 }
 0xf25   : > { %3378 = vadd.xlane.f32.xlu0 %v3377_v50 }
 0xfae   : > { %v3379_v57 = vpop.xlane.xlu0 %3378 }
 0xfaf   : > { %v3380_v58 = vmul.f32 0.03125, %v3379_v57 }
 0xfb1   : > { %v3381_v59 = vadd.f32 1e-05, %v3380_v58 }
 0xfb3   : > { %4663 = vrsqrt.f32 %v3381_v59 }
 0xfc0   : > { %v4664_v60 = vpop.eup %4663 }
 0xfc1   : > { %v3383_v62 = vmul.f32 %v4664_v60, %v3375_v48 }
 0xfc3   : > { %v3390_v0 = vmul.f32 %v4186_v61, %v3383_v62 }
 0xfc5   : > { %v3397_v1 = vadd.f32 %v4187_v63, %v3390_v0 }
 0xfc7   : > { %v3402_v5 = vpack.c.bf16 %v3397_v1, %v3397_v1 }
 0xfc9   : > { %4440 = vmatmul.mubr.msk.bf16.vlgmr.msra.gmra.mxu1 %vm1483_vm2, %v3402_v5 }
0x1089   : > { %v3459_v9 = vpop.f32.mrf.mxu1 }
0x108a   : > { %v3460_v10 = vadd.f32 %v4188_v8, %v3459_v9 }
0x108b   : > { %v4441_v11 = vpop.f32.mrf.mxu1 }
0x108c   : > { %v3465_v12 = vmax.f32 %v3460_v10, 0.0 }
0x108d   : > { %v3462_v13 = vpop.f32.mrf.mxu1 }
0x108e   : > { %v3482_v14 = vpack.c.bf16 %v3465_v12, %v3465_v12 }
0x108f   : > { %v4442_v15 = vpop.f32.mrf.mxu1 }
0x1090   : > { %4460 = vmatmul.mubr.bf16.vlgmr.msra.gmra.mxu0 %v3482_v14 }
0x1150   : > { %v3572_v17 = vpop.f32.mrf.mxu0 }
0x1151   : > { %v3573_v18 = vadd.f32 %v4192_v16, %v3572_v17 }
0x1152   : > { %v4461_v19 = vpop.f32.mrf.mxu0 }
0x1153   : > { %v3578_v20 = vadd.f32 %v3573_v18, %v3397_v1 }
0x1154   : > { %v3575_v2 = vpop.f32.mrf.mxu0 }
0x1155   : > { %v3581_v21 = vsel %vm1483_vm2, %v3578_v20, 0.0 }
0x1156   : > { %3582 = vadd.xlane.f32.xlu0 %v3581_v21  ;;  %v4462_v22 = vpop.f32.mrf.mxu0 }
0x11df   : > { %v3583_v23 = vpop.xlane.xlu0 %3582 }
0x11e0   : > { %v3584_v24 = vmul.f32 0.03125, %v3583_v23 }
0x11e2   : > { %v3585_v25 = vsub.f32 %v3578_v20, %v3584_v24 }
0x11e4   : > { %v3586_v26 = vmul.f32 %v3585_v25, %v3585_v25 }
0x11e6   : > { %v3587_v27 = vsel %vm1483_vm2, %v3586_v26, 0.0 }
0x11e7   : > { %3588 = vadd.xlane.f32.xlu1 %v3587_v27 }
0x1270   : > { %v3589_v28 = vpop.xlane.xlu1 %3588 }
0x1271   : > { %v3590_v29 = vmul.f32 0.03125, %v3589_v28 }
0x1273   : > { %v3591_v30 = vadd.f32 1e-05, %v3590_v29 }
0x1275   : > { %4665 = vrsqrt.f32 %v3591_v30 }
0x1282   : > { %v4666_v31 = vpop.eup %4665 }
0x1283   : > { %v3593_v33 = vmul.f32 %v4666_v31, %v3585_v25 }
0x1285   : > { %v3600_v35 = vmul.f32 %v4201_v32, %v3593_v33  ;;  %3612 = sbr.rel (%p4203_p13) target bundleno = 4954 (0x135a), region = 164 }
0x1287   : > { %v3607_v36 = vadd.f32 %v4202_v34, %v3600_v35 }
0x1289   : > { %3608 = vst.msk [vmem:[#allocation2] sm:$0xff] %vm1483_vm2, %v3607_v36 }
0x128a   : > { %v4667_v37 = vld [vmem:[%s5787_s18 + $0x8] sm:$0xff]   ;;  %v4897_v38 = vmov 0.0   ;;  %v4668_v39 = vld [vmem:[%s5788_s14] sm:$0xff]   ;;  %vm4898_vm6 = vmmov 0   ;;  %v3617_v40 = vpack.c.bf16 %v3607_v36, %v3607_v36 }
0x128b   : > { %4463 = vmatprep.subr.bf16.mxu0 %v4897_v38  ;;  %4467 = vmatprep.mubr.msk.bf16.mxu0 %vm4898_vm6, %v4897_v38  ;;  %v4204_v41 = vld [vmem:[#allocation3] ss:$0 sm:$0xff] }
0x128c   : > { %4464 = vmatpush3.bf16.msra.mxu0 %v4667_v37 }
0x128d   : > { %4465 = vmatprep.subr.bf16.mxu0 %v4897_v38 }
0x1290   : > { %4466 = vmatpush3.bf16.msra.mxu0 %v4668_v39 }
0x1293   : > { %4468 = vmatmul.mubr.msk.bf16.vlgmr.msra.gmra.mxu0 %vm1483_vm2, %v3617_v40 }
0x1353   : > { %v3674_v42 = vpop.f32.mrf.mxu0 }
0x1354   : > { %v3675_v43 = vadd.f32 %v4204_v41, %v3674_v42 }
0x1355   : > { %v4469_v44 = vpop.f32.mrf.mxu0 }
0x1356   : > { %3680 = vst [vmem:[%s1448_s20] sm:$0xff] %v3675_v43 }
0x1357   : > { %v3677_v45 = vpop.f32.mrf.mxu0 }
0x1359   : > { %v4470_v46 = vpop.f32.mrf.mxu0 }
0x135a PF: > { %s5791_s7 = sld [smem:[#allocation49_spill]] }
0x135b   : > { %s5792_s15 = sld [smem:[#allocation44_spill]] }
0x135c   : > { %s5793_s16 = sld [smem:[#allocation45_spill]] }
0x135d   : > { %s5794_s18 = sld [smem:[#allocation52_spill]] }
0x135e   : > { %s5795_s22 = sld [smem:[#allocation47_spill]] }
0x135f   : > { %s5796_s23 = sld [smem:[#allocation48_spill]] }
0x1360   : > { %s78_s0 = sadd.s32 1, %s5791_s7   ;;  %s5797_s26 = sld [smem:[#allocation50_spill]] }
0x1361   : > { %p75_p1 = scmp.ge.s32.totalorder %s78_s0, 8   ;;  %s5798_s28 = sld [smem:[#allocation51_spill]] }
0x1363   :  { %77 = sbr.rel (!%p75_p1) target bundleno = 82 (0x52), region = 322 }
0x1368   :  { %3700 = vsyncpa [#allocation4], 1 }
0x1369   :  { %3702 = vsyncpa [#allocation4 + $0x1], 1 }
0x136a   :  { %3703 = vsyncpa [#allocation6], 1 }
0x136b   :  { %3705 = vsyncpa [#allocation6 + $0x1], 1 }
0x136c   :  { %3706 = vsyncpa [#allocation9], 1 }
0x136d   :  { %3708 = vsyncpa [#allocation9 + $0x1], 1 }

</bundles_post_ra>
